<compile_context>
chip_gen: v7x
topology: tpu7x:2x2x1
jax: 0.10.0
libtpu: 0.0.40
codegen_flags: <defaults>
</compile_context>

<pallas_src>
import functools
import math

import jax
import jax.numpy as jnp
import numpy as np
from jax.experimental import pallas as pl
from jax.experimental.pallas import tpu as pltpu


# ----------------------------- Pallas kernel --------------------------------
def _attn_kernel(*refs, num_heads, head_dim, tq, seq_len, causal, matmul_dtype):
    if causal:
        (xq_ref, xkv_ref, wqt_ref, wkt_ref, wvt_ref, wot_ref,
         sin_ne_ref, sin_o_ref, cos_ref,
         o_ref, k_sc, v_sc, a_sc) = refs
        bias_ref = None
    else:
        (xq_ref, xkv_ref, wqt_ref, wkt_ref, wvt_ref, wot_ref,
         sin_ne_ref, sin_o_ref, cos_ref, bias_ref,
         o_ref, k_sc, v_sc, a_sc) = refs

    qi = pl.program_id(1)
    D = num_heads * head_dim
    S = seq_len
    TQ = tq

    def tile_heads(t):
        # (rows, head_dim) -> (rows, D); rope is identical per head.
        if num_heads == 1:
            return t
        return jnp.concatenate([t] * num_heads, axis=1)

    def rope(t, cos, sin_ne, sin_o):
        # rotate_every_two(t)*sin == roll(t, D-1)*(-sin on even lanes)
        #                          + roll(t, 1)*(sin on odd lanes)
        # (wrap lanes are multiplied by 0, so the flat-D roll never mixes heads)
        return (t * cos
                + pltpu.roll(t, shift=D - 1, axis=1) * sin_ne
                + pltpu.roll(t, shift=1, axis=1) * sin_o)

    # ---- K/V projection + rotary, once per batch element (first query tile) ----
    @pl.when(qi == 0)
    def _():
        xkv = xkv_ref[0]                                           # (S, D) bf16
        k = jnp.dot(xkv, wkt_ref[...], preferred_element_type=jnp.float32)
        v = jnp.dot(xkv, wvt_ref[...], preferred_element_type=jnp.float32)
        cos_k = tile_heads(cos_ref[...])
        sne_k = tile_heads(sin_ne_ref[...])
        so_k = tile_heads(sin_o_ref[...])
        k_sc[...] = rope(k, cos_k, sne_k, so_k).astype(k_sc.dtype)
        v_sc[...] = v.astype(v_sc.dtype)

    # ---- Q projection + rotary for this query tile ----
    q_start = qi * TQ
    if TQ % 8 == 0:
        q_start = pl.multiple_of(q_start, 8)
    xq = xq_ref[0]                                                 # (TQ, D) bf16
    # 1/sqrt(head_dim) is folded into Wq^T in the wrapper.
    q = jnp.dot(xq, wqt_ref[...], preferred_element_type=jnp.float32)
    cos_q = tile_heads(cos_ref[pl.ds(q_start, TQ), :])
    sne_q = tile_heads(sin_ne_ref[pl.ds(q_start, TQ), :])
    so_q = tile_heads(sin_o_ref[pl.ds(q_start, TQ), :])
    qb = rope(q, cos_q, sne_q, so_q).astype(matmul_dtype)          # bf16 for MXU

    # ---- additive attention bias (TQ, S) ----
    if causal:
        row = jax.lax.broadcasted_iota(jnp.int32, (TQ, S), 0) + qi * TQ
        col = jax.lax.broadcasted_iota(jnp.int32, (TQ, S), 1)
        bias = jnp.where(col > row, jnp.float32(-1e30), jnp.float32(0.0))
    else:
        bias = bias_ref[...].astype(jnp.float32)

    # ---- per-head attention; results land straight in the merged-head layout ----
    # TODO(synk): for head_dim < 128 on v6e/v7x, process a head group per
    # iteration (batched dot_general) so MXU feeds / stores are >=128 lanes wide.
    for h in range(num_heads):
        lo = h * head_dim
        hi = lo + head_dim
        qh = qb[:, lo:hi]                                          # (TQ, hd) bf16
        kh = k_sc[:, lo:hi]                                        # (S, hd)  bf16
        vh = v_sc[:, lo:hi]
        s = jax.lax.dot_general(qh, kh, (((1,), (1,)), ((), ())),
                                preferred_element_type=jnp.float32)  # (TQ, S) f32
        s = s + bias
        m = jnp.max(s, axis=-1, keepdims=True)
        p = jnp.exp(s - m)
        denom = jnp.sum(p, axis=-1, keepdims=True)
        p = p * pl.reciprocal(denom, approx=True)                  # EUP reciprocal
        a_sc[:, lo:hi] = jnp.dot(p.astype(matmul_dtype), vh,
                                 preferred_element_type=jnp.float32
                                 ).astype(a_sc.dtype)

    # Out projection from the merged-head bf16 scratch: one lane-dense matmul.
    y = jnp.dot(a_sc[...], wot_ref[...], preferred_element_type=jnp.float32)
    o_ref[0] = y.astype(o_ref.dtype)            # resid_dropout == identity (eval)


# ------------------------------- helpers -------------------------------------
def _pick_tq(S, cap=256):
    if S <= cap:
        return S
    for t in range(cap, 7, -8):
        if S % t == 0:
            return t
    return S


def _default_vmem_limit():
    cap = None
    try:
        info = pltpu.get_tpu_info()
        for name in ("vmem_capacity_bytes", "vmem_size_bytes", "vmem_bytes"):
            if hasattr(info, name):
                cap = int(getattr(info, name))
                break
    except Exception:
        cap = None
    if not cap:
        cap = 64 * 1024 * 1024          # conservative: v7x physical VMEM per TC
    # ~80% of physical leaves headroom for compiler scratch / auto double-buffers
    return int(min(cap * 0.8, 110 * 1024 * 1024))


# ------------------------------- wrapper -------------------------------------
def newgpt_attention(x, wq, wk, wv, wo, sin, cos, mask=None, *, num_heads,
                     tq=None, matmul_dtype=jnp.bfloat16, out_dtype=None,
                     vmem_limit_bytes=None):
    """Fused NewGPTJointAttention forward ('rotary' mode, no cache/KNN, eval).

    x: (B, S, D); wq/wk/wv/wo: (D, D) torch layout (out_features, in_features);
    sin/cos: (>=S, head_dim//2) rotary tables; mask: optional (S, S) bool
    (True = disallowed); mask=None means causal (generated in-kernel).
    """
    B, S, D = x.shape
    head_dim = D // num_heads
    assert num_heads * head_dim == D
    assert head_dim % 2 == 0, "rotate_every_two requires an even head_dim"

    if tq is None:
        tq = _pick_tq(S)
    assert S % tq == 0, "query tile must divide the sequence length"
    assert tq == S or tq % 8 == 0, "query tile must be a multiple of 8"
    nq = S // tq

    if out_dtype is None:
        out_dtype = x.dtype
    if vmem_limit_bytes is None:
        vmem_limit_bytes = _default_vmem_limit()

    f32 = jnp.float32
    causal = mask is None

    # (S, head_dim) rotary tables (duplicate-interleaved), parity/sign pre-baked.
    # The kernel tiles them across heads, so table VMEM is D/head_dim smaller.
    sin_d = jnp.repeat(sin.astype(f32)[:S], 2, axis=1)
    cos_d = jnp.repeat(cos.astype(f32)[:S], 2, axis=1)
    even = (jnp.arange(head_dim) % 2 == 0)[None, :]
    sin_neg_even = jnp.where(even, -sin_d, 0.0).astype(f32)   # multiplies roll(t, D-1)
    sin_odd = jnp.where(even, 0.0, sin_d).astype(f32)          # multiplies roll(t, 1)

    # Pre-transpose + cast weights once; fold 1/sqrt(head_dim) into Wq^T
    # (rope is linear, so the scale commutes with it).
    scale = 1.0 / math.sqrt(float(head_dim))
    wqt = (wq.T * scale).astype(matmul_dtype)
    wkt = wk.T.astype(matmul_dtype)
    wvt = wv.T.astype(matmul_dtype)
    wot = wo.T.astype(matmul_dtype)

    xm = x.astype(matmul_dtype)     # bf16 input DMA; x is only a matmul operand

    kernel = functools.partial(
        _attn_kernel, num_heads=num_heads, head_dim=head_dim, tq=tq,
        seq_len=S, causal=causal, matmul_dtype=matmul_dtype)

    args = [xm, xm, wqt, wkt, wvt, wot, sin_neg_even, sin_odd, cos_d]
    if not causal:
        # General attention_mask: additive bias (0 / -1e30) in bf16 (half the
        # DMA); -1e30 instead of finfo.min avoids -inf - -inf -> NaN rows.
        args.append(jnp.where(mask, -1e30, 0.0).astype(jnp.bfloat16))

    def _call(single_buffer_consts):
        def const_spec(shape):
            idx = lambda b, qi: (0,) * len(shape)
            if single_buffer_consts:
                # Constant-index blocks are DMA'd once; single-buffer them.
                return pl.BlockSpec(shape, idx, pipeline_mode=pl.Buffered(1))
            return pl.BlockSpec(shape, idx)

        in_specs = [
            pl.BlockSpec((1, tq, D), lambda b, qi: (b, qi, 0)),  # x -> Q proj (tile)
            pl.BlockSpec((1, S, D), lambda b, qi: (b, 0, 0)),    # x -> K/V proj (full seq; re-DMA'd only when b changes)
            const_spec((D, D)),                                  # Wq^T (pre-scaled)
            const_spec((D, D)),                                  # Wk^T
            const_spec((D, D)),                                  # Wv^T
            const_spec((D, D)),                                  # Wo^T
            const_spec((S, head_dim)),                           # -sin on even lanes
            const_spec((S, head_dim)),                           # sin on odd lanes
            const_spec((S, head_dim)),                           # cos
        ]
        if not causal:
            in_specs.append(pl.BlockSpec((tq, S), lambda b, qi: (qi, 0)))

        # TODO(synk): a 2-kernel split (separate K/V projection kernel) would let
        # the query-tile axis be "parallel" too (better v7x 2-TC occupancy at
        # small batch); here it must stay "arbitrary" for the K/V scratch reuse.
        return pl.pallas_call(
            kernel,
            out_shape=jax.ShapeDtypeStruct((B, S, D), out_dtype),
            grid_spec=pltpu.PrefetchScalarGridSpec(
                num_scalar_prefetch=0,
                grid=(B, nq),
                in_specs=in_specs,
                out_specs=pl.BlockSpec((1, tq, D), lambda b, qi: (b, qi, 0)),
                scratch_shapes=[
                    pltpu.VMEM((S, D), matmul_dtype),   # rope'd K (per batch)
                    pltpu.VMEM((S, D), matmul_dtype),   # V (per batch)
                    pltpu.VMEM((tq, D), matmul_dtype),  # merged-head output
                ]),
            compiler_params=pltpu.CompilerParams(
                dimension_semantics=("parallel", "arbitrary"),
                vmem_limit_bytes=vmem_limit_bytes),
        )(*args)

    try:
        return _call(single_buffer_consts=True)
    except Exception:
        # Fallback for JAX versions without BlockSpec.pipeline_mode / Buffered(1).
        return _call(single_buffer_consts=False)


# ----------------------------- pure-JAX reference ----------------------------
def _ref_forward(x, wq, wk, wv, wo, sin, cos, mask, *, num_heads):
    B, S, D = x.shape
    hd = D // num_heads
    q = x @ wq.T
    k = x @ wk.T
    v = x @ wv.T

    def split(t):
        return t.reshape(B, S, num_heads, hd).transpose(0, 2, 1, 3)

    qs, ks, vs = split(q), split(k), split(v)
    sin_d = jnp.repeat(sin, 2, axis=1)[:S]
    cos_d = jnp.repeat(cos, 2, axis=1)[:S]

    def rope(t):
        x1 = t[..., 0::2]
        x2 = t[..., 1::2]
        rot = jnp.stack([-x2, x1], axis=-1).reshape(t.shape)
        return t * cos_d + rot * sin_d

    qs, ks = rope(qs), rope(ks)
    s = jnp.einsum('bhqd,bhkd->bhqk', qs, ks) / math.sqrt(float(hd))
    s = jnp.where(mask[None, None], jnp.finfo(jnp.float32).min, s)
    p = jax.nn.softmax(s, axis=-1)
    o = jnp.einsum('bhqk,bhkd->bhqd', p, vs)
    o = o.transpose(0, 2, 1, 3).reshape(B, S, D)
    return o @ wo.T


# ------------------------------------ main -----------------------------------
if __name__ == "__main__":
    B, S, D, NH = 2, 32, 32, 4
    HD = D // NH

    key = jax.random.PRNGKey(0)
    kx, kq, kk, kv, ko = jax.random.split(key, 5)
    x = jax.random.normal(kx, (B, S, D), dtype=jnp.float32)
    wq = 0.02 * jax.random.normal(kq, (D, D), dtype=jnp.float32)
    wk = 0.02 * jax.random.normal(kk, (D, D), dtype=jnp.float32)
    wv = 0.02 * jax.random.normal(kv, (D, D), dtype=jnp.float32)
    wo = 0.02 * jax.random.normal(ko, (D, D), dtype=jnp.float32)

    # GPT-J style fixed position encoding (sin, cos) of shape (S, head_dim//2)
    inv_freq = 1.0 / (10000.0 ** (jnp.arange(0, HD, 2, dtype=jnp.float32) / HD))
    sinusoid = jnp.einsum('i,j->ij', jnp.arange(S, dtype=jnp.float32), inv_freq)
    sin, cos = jnp.sin(sinusoid), jnp.cos(sinusoid)

    # causal mask: True where attention is disallowed (masked_fill semantics)
    causal_mask = jnp.triu(jnp.ones((S, S), dtype=jnp.bool_), k=1)

    ref = _ref_forward(x, wq, wk, wv, wo, sin, cos, causal_mask, num_heads=NH)

    # Path 1: causal bias generated in-kernel; query axis tiled (2 tiles of 16).
    out = newgpt_attention(x, wq, wk, wv, wo, sin, cos, num_heads=NH, tq=16)
    out = jax.block_until_ready(out)
    np.testing.assert_allclose(np.asarray(out), np.asarray(ref),
                               rtol=2e-2, atol=3e-3)

    # Path 2: explicit attention_mask (same causal mask) DMA'd as bf16 bias tiles.
    out2 = newgpt_attention(x, wq, wk, wv, wo, sin, cos, causal_mask,
                            num_heads=NH, tq=16)
    out2 = jax.block_until_ready(out2)
    np.testing.assert_allclose(np.asarray(out2), np.asarray(ref),
                               rtol=2e-2, atol=3e-3)

    print("KERNEL_OK")
</pallas_src>

<mosaic_0001>
module attributes {stable_mosaic.version = 11 : i64} {
  func.func @_attn_kernel(%arg0: i32, %arg1: i32, %arg2: memref<1x16x32xbf16, #tpu.memory_space<vmem>>, %arg3: memref<1x32x32xbf16, #tpu.memory_space<vmem>>, %arg4: memref<32x32xbf16, #tpu.memory_space<vmem>>, %arg5: memref<32x32xbf16, #tpu.memory_space<vmem>>, %arg6: memref<32x32xbf16, #tpu.memory_space<vmem>>, %arg7: memref<32x32xbf16, #tpu.memory_space<vmem>>, %arg8: memref<32x8xf32, #tpu.memory_space<vmem>>, %arg9: memref<32x8xf32, #tpu.memory_space<vmem>>, %arg10: memref<32x8xf32, #tpu.memory_space<vmem>>, %arg11: memref<1x16x32xf32, #tpu.memory_space<vmem>>, %arg12: memref<32x32xbf16, #tpu.memory_space<vmem>>, %arg13: memref<32x32xbf16, #tpu.memory_space<vmem>>, %arg14: memref<16x32xbf16, #tpu.memory_space<vmem>>) attributes {dimension_semantics = [#tpu.dimension_semantics<parallel>, #tpu.dimension_semantics<arbitrary>], iteration_bounds = array<i64: 2, 2>, scalar_prefetch = 0 : i64, scratch_operands = 3 : i64, tpu.core_type = #tpu.core_type<tc>, window_params = [{transform_indices = @transform_0, window_bounds = array<i64: 1, 16, 32>}, {transform_indices = @transform_1, window_bounds = array<i64: 1, 32, 32>}, {pipeline_mode = #tpu.pipeline_mode<synchronous>, transform_indices = @transform_2, window_bounds = array<i64: 32, 32>}, {pipeline_mode = #tpu.pipeline_mode<synchronous>, transform_indices = @transform_3, window_bounds = array<i64: 32, 32>}, {pipeline_mode = #tpu.pipeline_mode<synchronous>, transform_indices = @transform_4, window_bounds = array<i64: 32, 32>}, {pipeline_mode = #tpu.pipeline_mode<synchronous>, transform_indices = @transform_5, window_bounds = array<i64: 32, 32>}, {pipeline_mode = #tpu.pipeline_mode<synchronous>, transform_indices = @transform_6, window_bounds = array<i64: 32, 8>}, {pipeline_mode = #tpu.pipeline_mode<synchronous>, transform_indices = @transform_7, window_bounds = array<i64: 32, 8>}, {pipeline_mode = #tpu.pipeline_mode<synchronous>, transform_indices = @transform_8, window_bounds = array<i64: 32, 8>}, {transform_indices = @transform_9, window_bounds = array<i64: 1, 16, 32>}]} {
    %c0_i32 = arith.constant 0 : i32
    %0 = arith.cmpi eq, %arg1, %c0_i32 : i32
    %1 = arith.extui %0 : i1 to i32
    %c0_i32_0 = arith.constant 0 : i32
    %2 = arith.cmpi ne, %1, %c0_i32_0 : i32
    scf.if %2 {
      %c0_56 = arith.constant 0 : index
      %c0_57 = arith.constant 0 : index
      %c0_58 = arith.constant 0 : index
      %117 = vector.load %arg3[%c0_56, %c0_57, %c0_58] : memref<1x32x32xbf16, #tpu.memory_space<vmem>>, vector<1x32x32xbf16>
      %118 = vector.shape_cast %117 : vector<1x32x32xbf16> to vector<32x32xbf16>
      %c0_59 = arith.constant 0 : index
      %c0_60 = arith.constant 0 : index
      %119 = vector.load %arg5[%c0_59, %c0_60] : memref<32x32xbf16, #tpu.memory_space<vmem>>, vector<32x32xbf16>
      %cst_61 = arith.constant dense<0.000000e+00> : vector<32x32xf32>
      %120 = tpu.matmul %118, %119, %cst_61 {dimension_numbers = #tpu.dot_dimension_numbers<[1], [0], [0], [1], [0, 0, 1, 1], [], []>} : vector<32x32xbf16>, vector<32x32xbf16>, vector<32x32xf32> -> vector<32x32xf32>
      %c0_62 = arith.constant 0 : index
      %c0_63 = arith.constant 0 : index
      %121 = vector.load %arg6[%c0_62, %c0_63] : memref<32x32xbf16, #tpu.memory_space<vmem>>, vector<32x32xbf16>
      %cst_64 = arith.constant dense<0.000000e+00> : vector<32x32xf32>
      %122 = tpu.matmul %118, %121, %cst_64 {dimension_numbers = #tpu.dot_dimension_numbers<[1], [0], [0], [1], [0, 0, 1, 1], [], []>} : vector<32x32xbf16>, vector<32x32xbf16>, vector<32x32xf32> -> vector<32x32xf32>
      %c0_65 = arith.constant 0 : index
      %c0_66 = arith.constant 0 : index
      %123 = vector.load %arg10[%c0_65, %c0_66] : memref<32x8xf32, #tpu.memory_space<vmem>>, vector<32x8xf32>
      %124 = tpu.concatenate %123, %123, %123, %123 in 1 : vector<32x8xf32>, vector<32x8xf32>, vector<32x8xf32>, vector<32x8xf32> -> vector<32x32xf32>
      %c0_67 = arith.constant 0 : index
      %c0_68 = arith.constant 0 : index
      %125 = vector.load %arg8[%c0_67, %c0_68] : memref<32x8xf32, #tpu.memory_space<vmem>>, vector<32x8xf32>
      %126 = tpu.concatenate %125, %125, %125, %125 in 1 : vector<32x8xf32>, vector<32x8xf32>, vector<32x8xf32>, vector<32x8xf32> -> vector<32x32xf32>
      %c0_69 = arith.constant 0 : index
      %c0_70 = arith.constant 0 : index
      %127 = vector.load %arg9[%c0_69, %c0_70] : memref<32x8xf32, #tpu.memory_space<vmem>>, vector<32x8xf32>
      %128 = tpu.concatenate %127, %127, %127, %127 in 1 : vector<32x8xf32>, vector<32x8xf32>, vector<32x8xf32>, vector<32x8xf32> -> vector<32x32xf32>
      %129 = arith.mulf %120, %124 : vector<32x32xf32>
      %c31_i32_71 = arith.constant 31 : i32
      %130 = tpu.dynamic_rotate %120 by %c31_i32_71 dim 1 : vector<32x32xf32>, i32 -> vector<32x32xf32>
      %131 = arith.mulf %130, %126 : vector<32x32xf32>
      %132 = arith.addf %129, %131 : vector<32x32xf32>
      %c1_i32_72 = arith.constant 1 : i32
      %133 = tpu.dynamic_rotate %120 by %c1_i32_72 dim 1 : vector<32x32xf32>, i32 -> vector<32x32xf32>
      %134 = arith.mulf %133, %128 : vector<32x32xf32>
      %135 = arith.addf %132, %134 : vector<32x32xf32>
      %136 = arith.truncf %135 : vector<32x32xf32> to vector<32x32xbf16>
      %c0_73 = arith.constant 0 : index
      %c0_74 = arith.constant 0 : index
      %137 = vector.load %arg12[%c0_73, %c0_74] : memref<32x32xbf16, #tpu.memory_space<vmem>>, vector<32x32xbf16>
      tpu.vector_store %arg12[%c0_73, %c0_74], %136 {strides = array<i32>} : memref<32x32xbf16, #tpu.memory_space<vmem>>, vector<32x32xbf16>,
      %138 = arith.truncf %122 : vector<32x32xf32> to vector<32x32xbf16>
      %c0_75 = arith.constant 0 : index
      %c0_76 = arith.constant 0 : index
      %139 = vector.load %arg13[%c0_75, %c0_76] : memref<32x32xbf16, #tpu.memory_space<vmem>>, vector<32x32xbf16>
      tpu.vector_store %arg13[%c0_75, %c0_76], %138 {strides = array<i32>} : memref<32x32xbf16, #tpu.memory_space<vmem>>, vector<32x32xbf16>,
    } else {
    }
    %c16_i32 = arith.constant 16 : i32
    %3 = arith.muli %arg1, %c16_i32 : i32
    %4 = tpu.assume_multiple %3, 8 : i32
    %c0 = arith.constant 0 : index
    %c0_1 = arith.constant 0 : index
    %c0_2 = arith.constant 0 : index
    %5 = vector.load %arg2[%c0, %c0_1, %c0_2] : memref<1x16x32xbf16, #tpu.memory_space<vmem>>, vector<1x16x32xbf16>
    %6 = vector.shape_cast %5 : vector<1x16x32xbf16> to vector<16x32xbf16>
    %c0_3 = arith.constant 0 : index
    %c0_4 = arith.constant 0 : index
    %7 = vector.load %arg4[%c0_3, %c0_4] : memref<32x32xbf16, #tpu.memory_space<vmem>>, vector<32x32xbf16>
    %cst = arith.constant dense<0.000000e+00> : vector<16x32xf32>
    %8 = tpu.matmul %6, %7, %cst {dimension_numbers = #tpu.dot_dimension_numbers<[1], [0], [0], [1], [0, 0, 1, 1], [], []>} : vector<16x32xbf16>, vector<32x32xbf16>, vector<16x32xf32> -> vector<16x32xf32>
    %9 = arith.index_cast %4 : i32 to index
    %c0_5 = arith.constant 0 : index
    %10 = vector.load %arg10[%9, %c0_5] : memref<32x8xf32, #tpu.memory_space<vmem>>, vector<16x8xf32>
    %11 = tpu.concatenate %10, %10, %10, %10 in 1 : vector<16x8xf32>, vector<16x8xf32>, vector<16x8xf32>, vector<16x8xf32> -> vector<16x32xf32>
    %12 = arith.index_cast %4 : i32 to index
    %c0_6 = arith.constant 0 : index
    %13 = vector.load %arg8[%12, %c0_6] : memref<32x8xf32, #tpu.memory_space<vmem>>, vector<16x8xf32>
    %14 = tpu.concatenate %13, %13, %13, %13 in 1 : vector<16x8xf32>, vector<16x8xf32>, vector<16x8xf32>, vector<16x8xf32> -> vector<16x32xf32>
    %15 = arith.index_cast %4 : i32 to index
    %c0_7 = arith.constant 0 : index
    %16 = vector.load %arg9[%15, %c0_7] : memref<32x8xf32, #tpu.memory_space<vmem>>, vector<16x8xf32>
    %17 = tpu.concatenate %16, %16, %16, %16 in 1 : vector<16x8xf32>, vector<16x8xf32>, vector<16x8xf32>, vector<16x8xf32> -> vector<16x32xf32>
    %18 = arith.mulf %8, %11 : vector<16x32xf32>
    %c31_i32 = arith.constant 31 : i32
    %19 = tpu.dynamic_rotate %8 by %c31_i32 dim 1 : vector<16x32xf32>, i32 -> vector<16x32xf32>
    %20 = arith.mulf %19, %14 : vector<16x32xf32>
    %21 = arith.addf %18, %20 : vector<16x32xf32>
    %c1_i32 = arith.constant 1 : i32
    %22 = tpu.dynamic_rotate %8 by %c1_i32 dim 1 : vector<16x32xf32>, i32 -> vector<16x32xf32>
    %23 = arith.mulf %22, %17 : vector<16x32xf32>
    %24 = arith.addf %21, %23 : vector<16x32xf32>
    %25 = arith.truncf %24 : vector<16x32xf32> to vector<16x32xbf16>
    %26 = tpu.iota {dimensions = array<i32: 0>} : vector<16x32xi32>
    %c16_i32_8 = arith.constant 16 : i32
    %27 = arith.muli %arg1, %c16_i32_8 : i32
    %28 = vector.broadcast %27 : i32 to vector<16x32xi32>
    %29 = arith.addi %26, %28 : vector<16x32xi32>
    %30 = tpu.iota {dimensions = array<i32: 1>} : vector<16x32xi32>
    %31 = arith.cmpi sgt, %30, %29 : vector<16x32xi32>
    %cst_9 = arith.constant -1.000000e+30 : f32
    %cst_10 = arith.constant 0.000000e+00 : f32
    %32 = vector.broadcast %cst_9 : f32 to vector<16x32xf32>
    %33 = vector.broadcast %cst_10 : f32 to vector<16x32xf32>
    %34 = arith.select %31, %32, %33 : vector<16x32xi1>, vector<16x32xf32>
    %35 = vector.extract_strided_slice %25 {offsets = [0, 0], sizes = [16, 8], strides = [1, 1]} : vector<16x32xbf16> to vector<16x8xbf16>
    %c0_11 = arith.constant 0 : index
    %c0_12 = arith.constant 0 : index
    %36 = vector.load %arg12[%c0_11, %c0_12] : memref<32x32xbf16, #tpu.memory_space<vmem>>, vector<32x8xbf16>
    %c0_13 = arith.constant 0 : index
    %c0_14 = arith.constant 0 : index
    %37 = vector.load %arg13[%c0_13, %c0_14] : memref<32x32xbf16, #tpu.memory_space<vmem>>, vector<32x8xbf16>
    %cst_15 = arith.constant dense<0.000000e+00> : vector<16x32xf32>
    %38 = tpu.matmul %35, %36, %cst_15 {dimension_numbers = #tpu.dot_dimension_numbers<[1], [1], [0], [0], [0, 0, 1, 0], [], []>} : vector<16x8xbf16>, vector<32x8xbf16>, vector<16x32xf32> -> vector<16x32xf32>
    %39 = arith.addf %38, %34 : vector<16x32xf32>
    %cst_16 = arith.constant dense<0xFF800000> : vector<16xf32>
    %40 = vector.multi_reduction <maximumf>, %39, %cst_16 [1] : vector<16x32xf32> to vector<16xf32>
    %41 = vector.shape_cast %40 : vector<16xf32> to vector<16x1xf32>
    %42 = vector.broadcast %41 : vector<16x1xf32> to vector<16x32xf32>
    %43 = arith.subf %39, %42 : vector<16x32xf32>
    %44 = math.exp %43 : vector<16x32xf32>
    %cst_17 = arith.constant dense<0.000000e+00> : vector<16xf32>
    %45 = vector.multi_reduction <add>, %44, %cst_17 [1] : vector<16x32xf32> to vector<16xf32>
    %46 = vector.shape_cast %45 : vector<16xf32> to vector<16x1xf32>
    %47 = tpu.reciprocal %46 {approx = true} : vector<16x1xf32> -> vector<16x1xf32>
    %48 = vector.broadcast %47 : vector<16x1xf32> to vector<16x32xf32>
    %49 = arith.mulf %44, %48 : vector<16x32xf32>
    %50 = arith.truncf %49 : vector<16x32xf32> to vector<16x32xbf16>
    %cst_18 = arith.constant dense<0.000000e+00> : vector<16x8xf32>
    %51 = tpu.matmul %50, %37, %cst_18 {dimension_numbers = #tpu.dot_dimension_numbers<[1], [0], [0], [1], [0, 0, 1, 1], [], []>} : vector<16x32xbf16>, vector<32x8xbf16>, vector<16x8xf32> -> vector<16x8xf32>
    %52 = arith.truncf %51 : vector<16x8xf32> to vector<16x8xbf16>
    %c0_19 = arith.constant 0 : index
    %c0_20 = arith.constant 0 : index
    %53 = vector.load %arg14[%c0_19, %c0_20] : memref<16x32xbf16, #tpu.memory_space<vmem>>, vector<16x8xbf16>
    tpu.vector_store %arg14[%c0_19, %c0_20], %52 {strides = array<i32>} : memref<16x32xbf16, #tpu.memory_space<vmem>>, vector<16x8xbf16>,
    %54 = vector.extract_strided_slice %25 {offsets = [0, 8], sizes = [16, 8], strides = [1, 1]} : vector<16x32xbf16> to vector<16x8xbf16>
    %c0_21 = arith.constant 0 : index
    %c8 = arith.constant 8 : index
    %55 = vector.load %arg12[%c0_21, %c8] : memref<32x32xbf16, #tpu.memory_space<vmem>>, vector<32x8xbf16>
    %c0_22 = arith.constant 0 : index
    %c8_23 = arith.constant 8 : index
    %56 = vector.load %arg13[%c0_22, %c8_23] : memref<32x32xbf16, #tpu.memory_space<vmem>>, vector<32x8xbf16>
    %cst_24 = arith.constant dense<0.000000e+00> : vector<16x32xf32>
    %57 = tpu.matmul %54, %55, %cst_24 {dimension_numbers = #tpu.dot_dimension_numbers<[1], [1], [0], [0], [0, 0, 1, 0], [], []>} : vector<16x8xbf16>, vector<32x8xbf16>, vector<16x32xf32> -> vector<16x32xf32>
    %58 = arith.addf %57, %34 : vector<16x32xf32>
    %cst_25 = arith.constant dense<0xFF800000> : vector<16xf32>
    %59 = vector.multi_reduction <maximumf>, %58, %cst_25 [1] : vector<16x32xf32> to vector<16xf32>
    %60 = vector.shape_cast %59 : vector<16xf32> to vector<16x1xf32>
    %61 = vector.broadcast %60 : vector<16x1xf32> to vector<16x32xf32>
    %62 = arith.subf %58, %61 : vector<16x32xf32>
    %63 = math.exp %62 : vector<16x32xf32>
    %cst_26 = arith.constant dense<0.000000e+00> : vector<16xf32>
    %64 = vector.multi_reduction <add>, %63, %cst_26 [1] : vector<16x32xf32> to vector<16xf32>
    %65 = vector.shape_cast %64 : vector<16xf32> to vector<16x1xf32>
    %66 = tpu.reciprocal %65 {approx = true} : vector<16x1xf32> -> vector<16x1xf32>
    %67 = vector.broadcast %66 : vector<16x1xf32> to vector<16x32xf32>
    %68 = arith.mulf %63, %67 : vector<16x32xf32>
    %69 = arith.truncf %68 : vector<16x32xf32> to vector<16x32xbf16>
    %cst_27 = arith.constant dense<0.000000e+00> : vector<16x8xf32>
    %70 = tpu.matmul %69, %56, %cst_27 {dimension_numbers = #tpu.dot_dimension_numbers<[1], [0], [0], [1], [0, 0, 1, 1], [], []>} : vector<16x32xbf16>, vector<32x8xbf16>, vector<16x8xf32> -> vector<16x8xf32>
    %71 = arith.truncf %70 : vector<16x8xf32> to vector<16x8xbf16>
    %c0_28 = arith.constant 0 : index
    %c8_29 = arith.constant 8 : index
    %72 = vector.load %arg14[%c0_28, %c8_29] : memref<16x32xbf16, #tpu.memory_space<vmem>>, vector<16x8xbf16>
    tpu.vector_store %arg14[%c0_28, %c8_29], %71 {strides = array<i32>} : memref<16x32xbf16, #tpu.memory_space<vmem>>, vector<16x8xbf16>,
    %73 = vector.extract_strided_slice %25 {offsets = [0, 16], sizes = [16, 8], strides = [1, 1]} : vector<16x32xbf16> to vector<16x8xbf16>
    %c0_30 = arith.constant 0 : index
    %c16 = arith.constant 16 : index
    %74 = vector.load %arg12[%c0_30, %c16] : memref<32x32xbf16, #tpu.memory_space<vmem>>, vector<32x8xbf16>
    %c0_31 = arith.constant 0 : index
    %c16_32 = arith.constant 16 : index
    %75 = vector.load %arg13[%c0_31, %c16_32] : memref<32x32xbf16, #tpu.memory_space<vmem>>, vector<32x8xbf16>
    %cst_33 = arith.constant dense<0.000000e+00> : vector<16x32xf32>
    %76 = tpu.matmul %73, %74, %cst_33 {dimension_numbers = #tpu.dot_dimension_numbers<[1], [1], [0], [0], [0, 0, 1, 0], [], []>} : vector<16x8xbf16>, vector<32x8xbf16>, vector<16x32xf32> -> vector<16x32xf32>
    %77 = arith.addf %76, %34 : vector<16x32xf32>
    %cst_34 = arith.constant dense<0xFF800000> : vector<16xf32>
    %78 = vector.multi_reduction <maximumf>, %77, %cst_34 [1] : vector<16x32xf32> to vector<16xf32>
    %79 = vector.shape_cast %78 : vector<16xf32> to vector<16x1xf32>
    %80 = vector.broadcast %79 : vector<16x1xf32> to vector<16x32xf32>
    %81 = arith.subf %77, %80 : vector<16x32xf32>
    %82 = math.exp %81 : vector<16x32xf32>
    %cst_35 = arith.constant dense<0.000000e+00> : vector<16xf32>
    %83 = vector.multi_reduction <add>, %82, %cst_35 [1] : vector<16x32xf32> to vector<16xf32>
    %84 = vector.shape_cast %83 : vector<16xf32> to vector<16x1xf32>
    %85 = tpu.reciprocal %84 {approx = true} : vector<16x1xf32> -> vector<16x1xf32>
    %86 = vector.broadcast %85 : vector<16x1xf32> to vector<16x32xf32>
    %87 = arith.mulf %82, %86 : vector<16x32xf32>
    %88 = arith.truncf %87 : vector<16x32xf32> to vector<16x32xbf16>
    %cst_36 = arith.constant dense<0.000000e+00> : vector<16x8xf32>
    %89 = tpu.matmul %88, %75, %cst_36 {dimension_numbers = #tpu.dot_dimension_numbers<[1], [0], [0], [1], [0, 0, 1, 1], [], []>} : vector<16x32xbf16>, vector<32x8xbf16>, vector<16x8xf32> -> vector<16x8xf32>
    %90 = arith.truncf %89 : vector<16x8xf32> to vector<16x8xbf16>
    %c0_37 = arith.constant 0 : index
    %c16_38 = arith.constant 16 : index
    %91 = vector.load %arg14[%c0_37, %c16_38] : memref<16x32xbf16, #tpu.memory_space<vmem>>, vector<16x8xbf16>
    tpu.vector_store %arg14[%c0_37, %c16_38], %90 {strides = array<i32>} : memref<16x32xbf16, #tpu.memory_space<vmem>>, vector<16x8xbf16>,
    %92 = vector.extract_strided_slice %25 {offsets = [0, 24], sizes = [16, 8], strides = [1, 1]} : vector<16x32xbf16> to vector<16x8xbf16>
    %c0_39 = arith.constant 0 : index
    %c24 = arith.constant 24 : index
    %93 = vector.load %arg12[%c0_39, %c24] : memref<32x32xbf16, #tpu.memory_space<vmem>>, vector<32x8xbf16>
    %c0_40 = arith.constant 0 : index
    %c24_41 = arith.constant 24 : index
    %94 = vector.load %arg13[%c0_40, %c24_41] : memref<32x32xbf16, #tpu.memory_space<vmem>>, vector<32x8xbf16>
    %cst_42 = arith.constant dense<0.000000e+00> : vector<16x32xf32>
    %95 = tpu.matmul %92, %93, %cst_42 {dimension_numbers = #tpu.dot_dimension_numbers<[1], [1], [0], [0], [0, 0, 1, 0], [], []>} : vector<16x8xbf16>, vector<32x8xbf16>, vector<16x32xf32> -> vector<16x32xf32>
    %96 = arith.addf %95, %34 : vector<16x32xf32>
    %cst_43 = arith.constant dense<0xFF800000> : vector<16xf32>
    %97 = vector.multi_reduction <maximumf>, %96, %cst_43 [1] : vector<16x32xf32> to vector<16xf32>
    %98 = vector.shape_cast %97 : vector<16xf32> to vector<16x1xf32>
    %99 = vector.broadcast %98 : vector<16x1xf32> to vector<16x32xf32>
    %100 = arith.subf %96, %99 : vector<16x32xf32>
    %101 = math.exp %100 : vector<16x32xf32>
    %cst_44 = arith.constant dense<0.000000e+00> : vector<16xf32>
    %102 = vector.multi_reduction <add>, %101, %cst_44 [1] : vector<16x32xf32> to vector<16xf32>
    %103 = vector.shape_cast %102 : vector<16xf32> to vector<16x1xf32>
    %104 = tpu.reciprocal %103 {approx = true} : vector<16x1xf32> -> vector<16x1xf32>
    %105 = vector.broadcast %104 : vector<16x1xf32> to vector<16x32xf32>
    %106 = arith.mulf %101, %105 : vector<16x32xf32>
    %107 = arith.truncf %106 : vector<16x32xf32> to vector<16x32xbf16>
    %cst_45 = arith.constant dense<0.000000e+00> : vector<16x8xf32>
    %108 = tpu.matmul %107, %94, %cst_45 {dimension_numbers = #tpu.dot_dimension_numbers<[1], [0], [0], [1], [0, 0, 1, 1], [], []>} : vector<16x32xbf16>, vector<32x8xbf16>, vector<16x8xf32> -> vector<16x8xf32>
    %109 = arith.truncf %108 : vector<16x8xf32> to vector<16x8xbf16>
    %c0_46 = arith.constant 0 : index
    %c24_47 = arith.constant 24 : index
    %110 = vector.load %arg14[%c0_46, %c24_47] : memref<16x32xbf16, #tpu.memory_space<vmem>>, vector<16x8xbf16>
    tpu.vector_store %arg14[%c0_46, %c24_47], %109 {strides = array<i32>} : memref<16x32xbf16, #tpu.memory_space<vmem>>, vector<16x8xbf16>,
    %c0_48 = arith.constant 0 : index
    %c0_49 = arith.constant 0 : index
    %111 = vector.load %arg14[%c0_48, %c0_49] : memref<16x32xbf16, #tpu.memory_space<vmem>>, vector<16x32xbf16>
    %c0_50 = arith.constant 0 : index
    %c0_51 = arith.constant 0 : index
    %112 = vector.load %arg7[%c0_50, %c0_51] : memref<32x32xbf16, #tpu.memory_space<vmem>>, vector<32x32xbf16>
    %cst_52 = arith.constant dense<0.000000e+00> : vector<16x32xf32>
    %113 = tpu.matmul %111, %112, %cst_52 {dimension_numbers = #tpu.dot_dimension_numbers<[1], [0], [0], [1], [0, 0, 1, 1], [], []>} : vector<16x32xbf16>, vector<32x32xbf16>, vector<16x32xf32> -> vector<16x32xf32>
    %c0_53 = arith.constant 0 : index
    %c0_54 = arith.constant 0 : index
    %c0_55 = arith.constant 0 : index
    %114 = vector.load %arg11[%c0_53, %c0_54, %c0_55] : memref<1x16x32xf32, #tpu.memory_space<vmem>>, vector<1x16x32xf32>
    %115 = vector.shape_cast %114 : vector<1x16x32xf32> to vector<16x32xf32>
    %116 = vector.shape_cast %113 : vector<16x32xf32> to vector<1x16x32xf32>
    tpu.vector_store %arg11[%c0_53, %c0_54, %c0_55], %116 {strides = array<i32>} : memref<1x16x32xf32, #tpu.memory_space<vmem>>, vector<1x16x32xf32>,
    return
  }
  func.func @transform_0(%arg0: i32, %arg1: i32) -> (i32, i32, i32) {
    %c0_i32 = arith.constant 0 : i32
    %c0_i32_0 = arith.constant 0 : i32
    return %arg0, %arg1, %c0_i32 : i32, i32, i32
  }
  func.func @transform_1(%arg0: i32, %arg1: i32) -> (i32, i32, i32) {
    %c0_i32 = arith.constant 0 : i32
    %c0_i32_0 = arith.constant 0 : i32
    %c0_i32_1 = arith.constant 0 : i32
    return %arg0, %c0_i32, %c0_i32_0 : i32, i32, i32
  }
  func.func @transform_2(%arg0: i32, %arg1: i32) -> (i32, i32) {
    %c0_i32 = arith.constant 0 : i32
    %c0_i32_0 = arith.constant 0 : i32
    %c0_i32_1 = arith.constant 0 : i32
    return %c0_i32, %c0_i32_0 : i32, i32
  }
  func.func @transform_3(%arg0: i32, %arg1: i32) -> (i32, i32) {
    %c0_i32 = arith.constant 0 : i32
    %c0_i32_0 = arith.constant 0 : i32
    %c0_i32_1 = arith.constant 0 : i32
    return %c0_i32, %c0_i32_0 : i32, i32
  }
  func.func @transform_4(%arg0: i32, %arg1: i32) -> (i32, i32) {
    %c0_i32 = arith.constant 0 : i32
    %c0_i32_0 = arith.constant 0 : i32
    %c0_i32_1 = arith.constant 0 : i32
    return %c0_i32, %c0_i32_0 : i32, i32
  }
  func.func @transform_5(%arg0: i32, %arg1: i32) -> (i32, i32) {
    %c0_i32 = arith.constant 0 : i32
    %c0_i32_0 = arith.constant 0 : i32
    %c0_i32_1 = arith.constant 0 : i32
    return %c0_i32, %c0_i32_0 : i32, i32
  }
  func.func @transform_6(%arg0: i32, %arg1: i32) -> (i32, i32) {
    %c0_i32 = arith.constant 0 : i32
    %c0_i32_0 = arith.constant 0 : i32
    %c0_i32_1 = arith.constant 0 : i32
    return %c0_i32, %c0_i32_0 : i32, i32
  }
  func.func @transform_7(%arg0: i32, %arg1: i32) -> (i32, i32) {
    %c0_i32 = arith.constant 0 : i32
    %c0_i32_0 = arith.constant 0 : i32
    %c0_i32_1 = arith.constant 0 : i32
    return %c0_i32, %c0_i32_0 : i32, i32
  }
  func.func @transform_8(%arg0: i32, %arg1: i32) -> (i32, i32) {
    %c0_i32 = arith.constant 0 : i32
    %c0_i32_0 = arith.constant 0 : i32
    %c0_i32_1 = arith.constant 0 : i32
    return %c0_i32, %c0_i32_0 : i32, i32
  }
  func.func @transform_9(%arg0: i32, %arg1: i32) -> (i32, i32, i32) {
    %c0_i32 = arith.constant 0 : i32
    %c0_i32_0 = arith.constant 0 : i32
    return %arg0, %arg1, %c0_i32 : i32, i32, i32
  }
}

module attributes {stable_mosaic.version = 11 : i64} {
  func.func @_attn_kernel(%arg0: i32, %arg1: i32, %arg2: memref<1x16x32xbf16, #tpu.memory_space<vmem>>, %arg3: memref<1x32x32xbf16, #tpu.memory_space<vmem>>, %arg4: memref<32x32xbf16, #tpu.memory_space<vmem>>, %arg5: memref<32x32xbf16, #tpu.memory_space<vmem>>, %arg6: memref<32x32xbf16, #tpu.memory_space<vmem>>, %arg7: memref<32x32xbf16, #tpu.memory_space<vmem>>, %arg8: memref<32x8xf32, #tpu.memory_space<vmem>>, %arg9: memref<32x8xf32, #tpu.memory_space<vmem>>, %arg10: memref<32x8xf32, #tpu.memory_space<vmem>>, %arg11: memref<1x16x32xf32, #tpu.memory_space<vmem>>, %arg12: memref<32x32xbf16, #tpu.memory_space<vmem>>, %arg13: memref<32x32xbf16, #tpu.memory_space<vmem>>, %arg14: memref<16x32xbf16, #tpu.memory_space<vmem>>) attributes {dimension_semantics = [#tpu.dimension_semantics<parallel>, #tpu.dimension_semantics<arbitrary>], iteration_bounds = array<i64: 2, 2>, scalar_prefetch = 0 : i64, scratch_operands = 3 : i64, tpu.core_type = #tpu.core_type<tc>, window_params = [{transform_indices = @transform_0, window_bounds = array<i64: 1, 16, 32>}, {transform_indices = @transform_1, window_bounds = array<i64: 1, 32, 32>}, {pipeline_mode = #tpu.pipeline_mode<synchronous>, transform_indices = @transform_2, window_bounds = array<i64: 32, 32>}, {pipeline_mode = #tpu.pipeline_mode<synchronous>, transform_indices = @transform_3, window_bounds = array<i64: 32, 32>}, {pipeline_mode = #tpu.pipeline_mode<synchronous>, transform_indices = @transform_4, window_bounds = array<i64: 32, 32>}, {pipeline_mode = #tpu.pipeline_mode<synchronous>, transform_indices = @transform_5, window_bounds = array<i64: 32, 32>}, {pipeline_mode = #tpu.pipeline_mode<synchronous>, transform_indices = @transform_6, window_bounds = array<i64: 32, 8>}, {pipeline_mode = #tpu.pipeline_mode<synchronous>, transform_indices = @transform_7, window_bounds = array<i64: 32, 8>}, {pipeline_mode = #tpu.pipeline_mode<synchronous>, transform_indices = @transform_8, window_bounds = array<i64: 32, 8>}, {transform_indices = @transform_9, window_bounds = array<i64: 1, 16, 32>}]} {
    %c0_i32 = arith.constant 0 : i32
    %0 = arith.cmpi eq, %arg1, %c0_i32 : i32
    %1 = arith.extui %0 : i1 to i32
    %c0_i32_0 = arith.constant 0 : i32
    %2 = arith.cmpi ne, %1, %c0_i32_0 : i32
    scf.if %2 {
      %c0_56 = arith.constant 0 : index
      %c0_57 = arith.constant 0 : index
      %c0_58 = arith.constant 0 : index
      %117 = vector.load %arg3[%c0_56, %c0_57, %c0_58] : memref<1x32x32xbf16, #tpu.memory_space<vmem>>, vector<1x32x32xbf16>
      %118 = vector.shape_cast %117 : vector<1x32x32xbf16> to vector<32x32xbf16>
      %c0_59 = arith.constant 0 : index
      %c0_60 = arith.constant 0 : index
      %119 = vector.load %arg5[%c0_59, %c0_60] : memref<32x32xbf16, #tpu.memory_space<vmem>>, vector<32x32xbf16>
      %cst_61 = arith.constant dense<0.000000e+00> : vector<32x32xf32>
      %120 = tpu.matmul %118, %119, %cst_61 {dimension_numbers = #tpu.dot_dimension_numbers<[1], [0], [0], [1], [0, 0, 1, 1], [], []>} : vector<32x32xbf16>, vector<32x32xbf16>, vector<32x32xf32> -> vector<32x32xf32>
      %c0_62 = arith.constant 0 : index
      %c0_63 = arith.constant 0 : index
      %121 = vector.load %arg6[%c0_62, %c0_63] : memref<32x32xbf16, #tpu.memory_space<vmem>>, vector<32x32xbf16>
      %cst_64 = arith.constant dense<0.000000e+00> : vector<32x32xf32>
      %122 = tpu.matmul %118, %121, %cst_64 {dimension_numbers = #tpu.dot_dimension_numbers<[1], [0], [0], [1], [0, 0, 1, 1], [], []>} : vector<32x32xbf16>, vector<32x32xbf16>, vector<32x32xf32> -> vector<32x32xf32>
      %c0_65 = arith.constant 0 : index
      %c0_66 = arith.constant 0 : index
      %123 = vector.load %arg10[%c0_65, %c0_66] : memref<32x8xf32, #tpu.memory_space<vmem>>, vector<32x8xf32>
      %124 = tpu.concatenate %123, %123, %123, %123 in 1 : vector<32x8xf32>, vector<32x8xf32>, vector<32x8xf32>, vector<32x8xf32> -> vector<32x32xf32>
      %c0_67 = arith.constant 0 : index
      %c0_68 = arith.constant 0 : index
      %125 = vector.load %arg8[%c0_67, %c0_68] : memref<32x8xf32, #tpu.memory_space<vmem>>, vector<32x8xf32>
      %126 = tpu.concatenate %125, %125, %125, %125 in 1 : vector<32x8xf32>, vector<32x8xf32>, vector<32x8xf32>, vector<32x8xf32> -> vector<32x32xf32>
      %c0_69 = arith.constant 0 : index
      %c0_70 = arith.constant 0 : index
      %127 = vector.load %arg9[%c0_69, %c0_70] : memref<32x8xf32, #tpu.memory_space<vmem>>, vector<32x8xf32>
      %128 = tpu.concatenate %127, %127, %127, %127 in 1 : vector<32x8xf32>, vector<32x8xf32>, vector<32x8xf32>, vector<32x8xf32> -> vector<32x32xf32>
      %129 = arith.mulf %120, %124 : vector<32x32xf32>
      %c31_i32_71 = arith.constant 31 : i32
      %130 = tpu.dynamic_rotate %120 by %c31_i32_71 dim 1 : vector<32x32xf32>, i32 -> vector<32x32xf32>
      %131 = arith.mulf %130, %126 : vector<32x32xf32>
      %132 = arith.addf %129, %131 : vector<32x32xf32>
      %c1_i32_72 = arith.constant 1 : i32
      %133 = tpu.dynamic_rotate %120 by %c1_i32_72 dim 1 : vector<32x32xf32>, i32 -> vector<32x32xf32>
      %134 = arith.mulf %133, %128 : vector<32x32xf32>
      %135 = arith.addf %132, %134 : vector<32x32xf32>
      %136 = arith.truncf %135 : vector<32x32xf32> to vector<32x32xbf16>
      %c0_73 = arith.constant 0 : index
      %c0_74 = arith.constant 0 : index
      %137 = vector.load %arg12[%c0_73, %c0_74] : memref<32x32xbf16, #tpu.memory_space<vmem>>, vector<32x32xbf16>
      tpu.vector_store %arg12[%c0_73, %c0_74], %136 {strides = array<i32>} : memref<32x32xbf16, #tpu.memory_space<vmem>>, vector<32x32xbf16>,
      %138 = arith.truncf %122 : vector<32x32xf32> to vector<32x32xbf16>
      %c0_75 = arith.constant 0 : index
      %c0_76 = arith.constant 0 : index
      %139 = vector.load %arg13[%c0_75, %c0_76] : memref<32x32xbf16, #tpu.memory_space<vmem>>, vector<32x32xbf16>
      tpu.vector_store %arg13[%c0_75, %c0_76], %138 {strides = array<i32>} : memref<32x32xbf16, #tpu.memory_space<vmem>>, vector<32x32xbf16>,
    } else {
    }
    %c16_i32 = arith.constant 16 : i32
    %3 = arith.muli %arg1, %c16_i32 : i32
    %4 = tpu.assume_multiple %3, 8 : i32
    %c0 = arith.constant 0 : index
    %c0_1 = arith.constant 0 : index
    %c0_2 = arith.constant 0 : index
    %5 = vector.load %arg2[%c0, %c0_1, %c0_2] : memref<1x16x32xbf16, #tpu.memory_space<vmem>>, vector<1x16x32xbf16>
    %6 = vector.shape_cast %5 : vector<1x16x32xbf16> to vector<16x32xbf16>
    %c0_3 = arith.constant 0 : index
    %c0_4 = arith.constant 0 : index
    %7 = vector.load %arg4[%c0_3, %c0_4] : memref<32x32xbf16, #tpu.memory_space<vmem>>, vector<32x32xbf16>
    %cst = arith.constant dense<0.000000e+00> : vector<16x32xf32>
    %8 = tpu.matmul %6, %7, %cst {dimension_numbers = #tpu.dot_dimension_numbers<[1], [0], [0], [1], [0, 0, 1, 1], [], []>} : vector<16x32xbf16>, vector<32x32xbf16>, vector<16x32xf32> -> vector<16x32xf32>
    %9 = arith.index_cast %4 : i32 to index
    %c0_5 = arith.constant 0 : index
    %10 = vector.load %arg10[%9, %c0_5] : memref<32x8xf32, #tpu.memory_space<vmem>>, vector<16x8xf32>
    %11 = tpu.concatenate %10, %10, %10, %10 in 1 : vector<16x8xf32>, vector<16x8xf32>, vector<16x8xf32>, vector<16x8xf32> -> vector<16x32xf32>
    %12 = arith.index_cast %4 : i32 to index
    %c0_6 = arith.constant 0 : index
    %13 = vector.load %arg8[%12, %c0_6] : memref<32x8xf32, #tpu.memory_space<vmem>>, vector<16x8xf32>
    %14 = tpu.concatenate %13, %13, %13, %13 in 1 : vector<16x8xf32>, vector<16x8xf32>, vector<16x8xf32>, vector<16x8xf32> -> vector<16x32xf32>
    %15 = arith.index_cast %4 : i32 to index
    %c0_7 = arith.constant 0 : index
    %16 = vector.load %arg9[%15, %c0_7] : memref<32x8xf32, #tpu.memory_space<vmem>>, vector<16x8xf32>
    %17 = tpu.concatenate %16, %16, %16, %16 in 1 : vector<16x8xf32>, vector<16x8xf32>, vector<16x8xf32>, vector<16x8xf32> -> vector<16x32xf32>
    %18 = arith.mulf %8, %11 : vector<16x32xf32>
    %c31_i32 = arith.constant 31 : i32
    %19 = tpu.dynamic_rotate %8 by %c31_i32 dim 1 : vector<16x32xf32>, i32 -> vector<16x32xf32>
    %20 = arith.mulf %19, %14 : vector<16x32xf32>
    %21 = arith.addf %18, %20 : vector<16x32xf32>
    %c1_i32 = arith.constant 1 : i32
    %22 = tpu.dynamic_rotate %8 by %c1_i32 dim 1 : vector<16x32xf32>, i32 -> vector<16x32xf32>
    %23 = arith.mulf %22, %17 : vector<16x32xf32>
    %24 = arith.addf %21, %23 : vector<16x32xf32>
    %25 = arith.truncf %24 : vector<16x32xf32> to vector<16x32xbf16>
    %26 = tpu.iota {dimensions = array<i32: 0>} : vector<16x32xi32>
    %c16_i32_8 = arith.constant 16 : i32
    %27 = arith.muli %arg1, %c16_i32_8 : i32
    %28 = vector.broadcast %27 : i32 to vector<16x32xi32>
    %29 = arith.addi %26, %28 : vector<16x32xi32>
    %30 = tpu.iota {dimensions = array<i32: 1>} : vector<16x32xi32>
    %31 = arith.cmpi sgt, %30, %29 : vector<16x32xi32>
    %cst_9 = arith.constant -1.000000e+30 : f32
    %cst_10 = arith.constant 0.000000e+00 : f32
    %32 = vector.broadcast %cst_9 : f32 to vector<16x32xf32>
    %33 = vector.broadcast %cst_10 : f32 to vector<16x32xf32>
    %34 = arith.select %31, %32, %33 : vector<16x32xi1>, vector<16x32xf32>
    %35 = vector.extract_strided_slice %25 {offsets = [0, 0], sizes = [16, 8], strides = [1, 1]} : vector<16x32xbf16> to vector<16x8xbf16>
    %c0_11 = arith.constant 0 : index
    %c0_12 = arith.constant 0 : index
    %36 = vector.load %arg12[%c0_11, %c0_12] : memref<32x32xbf16, #tpu.memory_space<vmem>>, vector<32x8xbf16>
    %c0_13 = arith.constant 0 : index
    %c0_14 = arith.constant 0 : index
    %37 = vector.load %arg13[%c0_13, %c0_14] : memref<32x32xbf16, #tpu.memory_space<vmem>>, vector<32x8xbf16>
    %cst_15 = arith.constant dense<0.000000e+00> : vector<16x32xf32>
    %38 = tpu.matmul %35, %36, %cst_15 {dimension_numbers = #tpu.dot_dimension_numbers<[1], [1], [0], [0], [0, 0, 1, 0], [], []>} : vector<16x8xbf16>, vector<32x8xbf16>, vector<16x32xf32> -> vector<16x32xf32>
    %39 = arith.addf %38, %34 : vector<16x32xf32>
    %cst_16 = arith.constant dense<0xFF800000> : vector<16xf32>
    %40 = vector.multi_reduction <maximumf>, %39, %cst_16 [1] : vector<16x32xf32> to vector<16xf32>
    %41 = vector.shape_cast %40 : vector<16xf32> to vector<16x1xf32>
    %42 = vector.broadcast %41 : vector<16x1xf32> to vector<16x32xf32>
    %43 = arith.subf %39, %42 : vector<16x32xf32>
    %44 = math.exp %43 : vector<16x32xf32>
    %cst_17 = arith.constant dense<0.000000e+00> : vector<16xf32>
    %45 = vector.multi_reduction <add>, %44, %cst_17 [1] : vector<16x32xf32> to vector<16xf32>
    %46 = vector.shape_cast %45 : vector<16xf32> to vector<16x1xf32>
    %47 = tpu.reciprocal %46 {approx = true} : vector<16x1xf32> -> vector<16x1xf32>
    %48 = vector.broadcast %47 : vector<16x1xf32> to vector<16x32xf32>
    %49 = arith.mulf %44, %48 : vector<16x32xf32>
    %50 = arith.truncf %49 : vector<16x32xf32> to vector<16x32xbf16>
    %cst_18 = arith.constant dense<0.000000e+00> : vector<16x8xf32>
    %51 = tpu.matmul %50, %37, %cst_18 {dimension_numbers = #tpu.dot_dimension_numbers<[1], [0], [0], [1], [0, 0, 1, 1], [], []>} : vector<16x32xbf16>, vector<32x8xbf16>, vector<16x8xf32> -> vector<16x8xf32>
    %52 = arith.truncf %51 : vector<16x8xf32> to vector<16x8xbf16>
    %c0_19 = arith.constant 0 : index
    %c0_20 = arith.constant 0 : index
    %53 = vector.load %arg14[%c0_19, %c0_20] : memref<16x32xbf16, #tpu.memory_space<vmem>>, vector<16x8xbf16>
    tpu.vector_store %arg14[%c0_19, %c0_20], %52 {strides = array<i32>} : memref<16x32xbf16, #tpu.memory_space<vmem>>, vector<16x8xbf16>,
    %54 = vector.extract_strided_slice %25 {offsets = [0, 8], sizes = [16, 8], strides = [1, 1]} : vector<16x32xbf16> to vector<16x8xbf16>
    %c0_21 = arith.constant 0 : index
    %c8 = arith.constant 8 : index
    %55 = vector.load %arg12[%c0_21, %c8] : memref<32x32xbf16, #tpu.memory_space<vmem>>, vector<32x8xbf16>
    %c0_22 = arith.constant 0 : index
    %c8_23 = arith.constant 8 : index
    %56 = vector.load %arg13[%c0_22, %c8_23] : memref<32x32xbf16, #tpu.memory_space<vmem>>, vector<32x8xbf16>
    %cst_24 = arith.constant dense<0.000000e+00> : vector<16x32xf32>
    %57 = tpu.matmul %54, %55, %cst_24 {dimension_numbers = #tpu.dot_dimension_numbers<[1], [1], [0], [0], [0, 0, 1, 0], [], []>} : vector<16x8xbf16>, vector<32x8xbf16>, vector<16x32xf32> -> vector<16x32xf32>
    %58 = arith.addf %57, %34 : vector<16x32xf32>
    %cst_25 = arith.constant dense<0xFF800000> : vector<16xf32>
    %59 = vector.multi_reduction <maximumf>, %58, %cst_25 [1] : vector<16x32xf32> to vector<16xf32>
    %60 = vector.shape_cast %59 : vector<16xf32> to vector<16x1xf32>
    %61 = vector.broadcast %60 : vector<16x1xf32> to vector<16x32xf32>
    %62 = arith.subf %58, %61 : vector<16x32xf32>
    %63 = math.exp %62 : vector<16x32xf32>
    %cst_26 = arith.constant dense<0.000000e+00> : vector<16xf32>
    %64 = vector.multi_reduction <add>, %63, %cst_26 [1] : vector<16x32xf32> to vector<16xf32>
    %65 = vector.shape_cast %64 : vector<16xf32> to vector<16x1xf32>
    %66 = tpu.reciprocal %65 {approx = true} : vector<16x1xf32> -> vector<16x1xf32>
    %67 = vector.broadcast %66 : vector<16x1xf32> to vector<16x32xf32>
    %68 = arith.mulf %63, %67 : vector<16x32xf32>
    %69 = arith.truncf %68 : vector<16x32xf32> to vector<16x32xbf16>
    %cst_27 = arith.constant dense<0.000000e+00> : vector<16x8xf32>
    %70 = tpu.matmul %69, %56, %cst_27 {dimension_numbers = #tpu.dot_dimension_numbers<[1], [0], [0], [1], [0, 0, 1, 1], [], []>} : vector<16x32xbf16>, vector<32x8xbf16>, vector<16x8xf32> -> vector<16x8xf32>
    %71 = arith.truncf %70 : vector<16x8xf32> to vector<16x8xbf16>
    %c0_28 = arith.constant 0 : index
    %c8_29 = arith.constant 8 : index
    %72 = vector.load %arg14[%c0_28, %c8_29] : memref<16x32xbf16, #tpu.memory_space<vmem>>, vector<16x8xbf16>
    tpu.vector_store %arg14[%c0_28, %c8_29], %71 {strides = array<i32>} : memref<16x32xbf16, #tpu.memory_space<vmem>>, vector<16x8xbf16>,
    %73 = vector.extract_strided_slice %25 {offsets = [0, 16], sizes = [16, 8], strides = [1, 1]} : vector<16x32xbf16> to vector<16x8xbf16>
    %c0_30 = arith.constant 0 : index
    %c16 = arith.constant 16 : index
    %74 = vector.load %arg12[%c0_30, %c16] : memref<32x32xbf16, #tpu.memory_space<vmem>>, vector<32x8xbf16>
    %c0_31 = arith.constant 0 : index
    %c16_32 = arith.constant 16 : index
    %75 = vector.load %arg13[%c0_31, %c16_32] : memref<32x32xbf16, #tpu.memory_space<vmem>>, vector<32x8xbf16>
    %cst_33 = arith.constant dense<0.000000e+00> : vector<16x32xf32>
    %76 = tpu.matmul %73, %74, %cst_33 {dimension_numbers = #tpu.dot_dimension_numbers<[1], [1], [0], [0], [0, 0, 1, 0], [], []>} : vector<16x8xbf16>, vector<32x8xbf16>, vector<16x32xf32> -> vector<16x32xf32>
    %77 = arith.addf %76, %34 : vector<16x32xf32>
    %cst_34 = arith.constant dense<0xFF800000> : vector<16xf32>
    %78 = vector.multi_reduction <maximumf>, %77, %cst_34 [1] : vector<16x32xf32> to vector<16xf32>
    %79 = vector.shape_cast %78 : vector<16xf32> to vector<16x1xf32>
    %80 = vector.broadcast %79 : vector<16x1xf32> to vector<16x32xf32>
    %81 = arith.subf %77, %80 : vector<16x32xf32>
    %82 = math.exp %81 : vector<16x32xf32>
    %cst_35 = arith.constant dense<0.000000e+00> : vector<16xf32>
    %83 = vector.multi_reduction <add>, %82, %cst_35 [1] : vector<16x32xf32> to vector<16xf32>
    %84 = vector.shape_cast %83 : vector<16xf32> to vector<16x1xf32>
    %85 = tpu.reciprocal %84 {approx = true} : vector<16x1xf32> -> vector<16x1xf32>
    %86 = vector.broadcast %85 : vector<16x1xf32> to vector<16x32xf32>
    %87 = arith.mulf %82, %86 : vector<16x32xf32>
    %88 = arith.truncf %87 : vector<16x32xf32> to vector<16x32xbf16>
    %cst_36 = arith.constant dense<0.000000e+00> : vector<16x8xf32>
    %89 = tpu.matmul %88, %75, %cst_36 {dimension_numbers = #tpu.dot_dimension_numbers<[1], [0], [0], [1], [0, 0, 1, 1], [], []>} : vector<16x32xbf16>, vector<32x8xbf16>, vector<16x8xf32> -> vector<16x8xf32>
    %90 = arith.truncf %89 : vector<16x8xf32> to vector<16x8xbf16>
    %c0_37 = arith.constant 0 : index
    %c16_38 = arith.constant 16 : index
    %91 = vector.load %arg14[%c0_37, %c16_38] : memref<16x32xbf16, #tpu.memory_space<vmem>>, vector<16x8xbf16>
    tpu.vector_store %arg14[%c0_37, %c16_38], %90 {strides = array<i32>} : memref<16x32xbf16, #tpu.memory_space<vmem>>, vector<16x8xbf16>,
    %92 = vector.extract_strided_slice %25 {offsets = [0, 24], sizes = [16, 8], strides = [1, 1]} : vector<16x32xbf16> to vector<16x8xbf16>
    %c0_39 = arith.constant 0 : index
    %c24 = arith.constant 24 : index
    %93 = vector.load %arg12[%c0_39, %c24] : memref<32x32xbf16, #tpu.memory_space<vmem>>, vector<32x8xbf16>
    %c0_40 = arith.constant 0 : index
    %c24_41 = arith.constant 24 : index
    %94 = vector.load %arg13[%c0_40, %c24_41] : memref<32x32xbf16, #tpu.memory_space<vmem>>, vector<32x8xbf16>
    %cst_42 = arith.constant dense<0.000000e+00> : vector<16x32xf32>
    %95 = tpu.matmul %92, %93, %cst_42 {dimension_numbers = #tpu.dot_dimension_numbers<[1], [1], [0], [0], [0, 0, 1, 0], [], []>} : vector<16x8xbf16>, vector<32x8xbf16>, vector<16x32xf32> -> vector<16x32xf32>
    %96 = arith.addf %95, %34 : vector<16x32xf32>
    %cst_43 = arith.constant dense<0xFF800000> : vector<16xf32>
    %97 = vector.multi_reduction <maximumf>, %96, %cst_43 [1] : vector<16x32xf32> to vector<16xf32>
    %98 = vector.shape_cast %97 : vector<16xf32> to vector<16x1xf32>
    %99 = vector.broadcast %98 : vector<16x1xf32> to vector<16x32xf32>
    %100 = arith.subf %96, %99 : vector<16x32xf32>
    %101 = math.exp %100 : vector<16x32xf32>
    %cst_44 = arith.constant dense<0.000000e+00> : vector<16xf32>
    %102 = vector.multi_reduction <add>, %101, %cst_44 [1] : vector<16x32xf32> to vector<16xf32>
    %103 = vector.shape_cast %102 : vector<16xf32> to vector<16x1xf32>
    %104 = tpu.reciprocal %103 {approx = true} : vector<16x1xf32> -> vector<16x1xf32>
    %105 = vector.broadcast %104 : vector<16x1xf32> to vector<16x32xf32>
    %106 = arith.mulf %101, %105 : vector<16x32xf32>
    %107 = arith.truncf %106 : vector<16x32xf32> to vector<16x32xbf16>
    %cst_45 = arith.constant dense<0.000000e+00> : vector<16x8xf32>
    %108 = tpu.matmul %107, %94, %cst_45 {dimension_numbers = #tpu.dot_dimension_numbers<[1], [0], [0], [1], [0, 0, 1, 1], [], []>} : vector<16x32xbf16>, vector<32x8xbf16>, vector<16x8xf32> -> vector<16x8xf32>
    %109 = arith.truncf %108 : vector<16x8xf32> to vector<16x8xbf16>
    %c0_46 = arith.constant 0 : index
    %c24_47 = arith.constant 24 : index
    %110 = vector.load %arg14[%c0_46, %c24_47] : memref<16x32xbf16, #tpu.memory_space<vmem>>, vector<16x8xbf16>
    tpu.vector_store %arg14[%c0_46, %c24_47], %109 {strides = array<i32>} : memref<16x32xbf16, #tpu.memory_space<vmem>>, vector<16x8xbf16>,
    %c0_48 = arith.constant 0 : index
    %c0_49 = arith.constant 0 : index
    %111 = vector.load %arg14[%c0_48, %c0_49] : memref<16x32xbf16, #tpu.memory_space<vmem>>, vector<16x32xbf16>
    %c0_50 = arith.constant 0 : index
    %c0_51 = arith.constant 0 : index
    %112 = vector.load %arg7[%c0_50, %c0_51] : memref<32x32xbf16, #tpu.memory_space<vmem>>, vector<32x32xbf16>
    %cst_52 = arith.constant dense<0.000000e+00> : vector<16x32xf32>
    %113 = tpu.matmul %111, %112, %cst_52 {dimension_numbers = #tpu.dot_dimension_numbers<[1], [0], [0], [1], [0, 0, 1, 1], [], []>} : vector<16x32xbf16>, vector<32x32xbf16>, vector<16x32xf32> -> vector<16x32xf32>
    %c0_53 = arith.constant 0 : index
    %c0_54 = arith.constant 0 : index
    %c0_55 = arith.constant 0 : index
    %114 = vector.load %arg11[%c0_53, %c0_54, %c0_55] : memref<1x16x32xf32, #tpu.memory_space<vmem>>, vector<1x16x32xf32>
    %115 = vector.shape_cast %114 : vector<1x16x32xf32> to vector<16x32xf32>
    %116 = vector.shape_cast %113 : vector<16x32xf32> to vector<1x16x32xf32>
    tpu.vector_store %arg11[%c0_53, %c0_54, %c0_55], %116 {strides = array<i32>} : memref<1x16x32xf32, #tpu.memory_space<vmem>>, vector<1x16x32xf32>,
    return
  }
  func.func @transform_0(%arg0: i32, %arg1: i32) -> (i32, i32, i32) {
    %c0_i32 = arith.constant 0 : i32
    %c0_i32_0 = arith.constant 0 : i32
    return %arg0, %arg1, %c0_i32 : i32, i32, i32
  }
  func.func @transform_1(%arg0: i32, %arg1: i32) -> (i32, i32, i32) {
    %c0_i32 = arith.constant 0 : i32
    %c0_i32_0 = arith.constant 0 : i32
    %c0_i32_1 = arith.constant 0 : i32
    return %arg0, %c0_i32, %c0_i32_0 : i32, i32, i32
  }
  func.func @transform_2(%arg0: i32, %arg1: i32) -> (i32, i32) {
    %c0_i32 = arith.constant 0 : i32
    %c0_i32_0 = arith.constant 0 : i32
    %c0_i32_1 = arith.constant 0 : i32
    return %c0_i32, %c0_i32_0 : i32, i32
  }
  func.func @transform_3(%arg0: i32, %arg1: i32) -> (i32, i32) {
    %c0_i32 = arith.constant 0 : i32
    %c0_i32_0 = arith.constant 0 : i32
    %c0_i32_1 = arith.constant 0 : i32
    return %c0_i32, %c0_i32_0 : i32, i32
  }
  func.func @transform_4(%arg0: i32, %arg1: i32) -> (i32, i32) {
    %c0_i32 = arith.constant 0 : i32
    %c0_i32_0 = arith.constant 0 : i32
    %c0_i32_1 = arith.constant 0 : i32
    return %c0_i32, %c0_i32_0 : i32, i32
  }
  func.func @transform_5(%arg0: i32, %arg1: i32) -> (i32, i32) {
    %c0_i32 = arith.constant 0 : i32
    %c0_i32_0 = arith.constant 0 : i32
    %c0_i32_1 = arith.constant 0 : i32
    return %c0_i32, %c0_i32_0 : i32, i32
  }
  func.func @transform_6(%arg0: i32, %arg1: i32) -> (i32, i32) {
    %c0_i32 = arith.constant 0 : i32
    %c0_i32_0 = arith.constant 0 : i32
    %c0_i32_1 = arith.constant 0 : i32
    return %c0_i32, %c0_i32_0 : i32, i32
  }
  func.func @transform_7(%arg0: i32, %arg1: i32) -> (i32, i32) {
    %c0_i32 = arith.constant 0 : i32
    %c0_i32_0 = arith.constant 0 : i32
    %c0_i32_1 = arith.constant 0 : i32
    return %c0_i32, %c0_i32_0 : i32, i32
  }
  func.func @transform_8(%arg0: i32, %arg1: i32) -> (i32, i32) {
    %c0_i32 = arith.constant 0 : i32
    %c0_i32_0 = arith.constant 0 : i32
    %c0_i32_1 = arith.constant 0 : i32
    return %c0_i32, %c0_i32_0 : i32, i32
  }
  func.func @transform_9(%arg0: i32, %arg1: i32) -> (i32, i32, i32) {
    %c0_i32 = arith.constant 0 : i32
    %c0_i32_0 = arith.constant 0 : i32
    return %arg0, %arg1, %c0_i32 : i32, i32, i32
  }
}

</mosaic_0001>

<bundles_post_ra>
// kernel: tpu_custom_call.1
= control target key start
LH: loop header
LB: loop body
LE: loop exit
PB: predicated region body
PF: predicated region fallthrough
CT: control target
= control target key end

     0   :  { %14 = vsyncpa [#allocation6], 0  ;;  %s2896_s0 = inlined_call_operand.vmem [shape: bf16[2,32,32], index: 0, kind: input, shape index: {}]   ;;  %s2897_s1 = inlined_call_operand.vmem [shape: bf16[2,32,32], index: 1, kind: input, shape index: {}]   ;;  %s2898_s2 = inlined_call_operand.vmem [shape: bf16[32,32], index: 2, kind: input, shape index: {}]   ;;  %s2899_s3 = inlined_call_operand.vmem [shape: bf16[32,32], index: 3, kind: input, shape index: {}]   ;;  %s2900_s4 = inlined_call_operand.vmem [shape: bf16[32,32], index: 4, kind: input, shape index: {}]   ;;  %s2901_s5 = inlined_call_operand.vmem [shape: bf16[32,32], index: 5, kind: input, shape index: {}]   ;;  %s2902_s6 = inlined_call_operand.vmem [shape: f32[32,8], index: 6, kind: input, shape index: {}]   ;;  %s2903_s7 = inlined_call_operand.vmem [shape: f32[32,8], index: 7, kind: input, shape index: {}]   ;;  %s2904_s8 = inlined_call_operand.vmem [shape: f32[32,8], index: 8, kind: input, shape index: {}]   ;;  %s2905_s9 = inlined_call_operand.hbm [shape: f32[2,32,32], index: 9, kind: output, shape index: {}]  }
   0x1   :  { %16 = vsyncpa [#allocation6 + $0x1], 0  ;;  %s2272_s30 = smov 0   ;;  %s2274_s10 = smov 0  }
   0x2   :  { %s2276_s11 = smov 0   ;;  %s2278_s12 = smov 0  }
   0x3   :  { %s2280_s13 = smov 0   ;;  %s2282_s14 = smov 0  }
   0x4   :  { %s2284_s15 = smov 0   ;;  %s2286_s16 = smov 0  }
   0x5 LB: > { %2916 = sst [smem:[#allocation8_spill]] %s2169_s30  ;;  %s1788_s17 = sadd.s32 4294967295, %s2197_s16   ;;  %s2197_s16 = sphi %s2286_s16, %s22_s16   ;;  %s2193_s15 = sphi %s2284_s15, %s2936_s15   ;;  %s2189_s14 = sphi %s2282_s14, %s2935_s14   ;;  %s2185_s13 = sphi %s2280_s13, %s2934_s13   ;;  %s2181_s12 = sphi %s2278_s12, %s2933_s12   ;;  %s2177_s11 = sphi %s2276_s11, %s2932_s11   ;;  %s2173_s10 = sphi %s2274_s10, %s2938_s10   ;;  %s2169_s30 = sphi %s2272_s30, %s2937_s30  }
   0x6   : > { %2917 = sst [smem:[#allocation9_spill]] %s2177_s11  ;;  %s1789_s18 = sadd.s32 4294967294, %s2197_s16  }
   0x7   : > { %2918 = sst [smem:[#allocation10_spill]] %s2189_s14  ;;  %s31_s19 = sadd.s32 1, %s2189_s14 }
   0x8   : > { %2919 = sst [smem:[#allocation11_spill]] %s2193_s15  ;;  %p32_p0 = scmp.ge.s32.totalorder %s31_s19, 2 }
   0x9   : > { %2920 = sst [smem:[#allocation12_spill]] %s2197_s16  ;;  %s34_s20 = sadd.s32 1, %s2193_s15 }
   0xa   : > { %p254_p1 = scmp.ne.s32.totalorder %s2177_s11, %s2173_s10  ;;  %p255_p2 = scmp.eq.s32.totalorder %s1788_s17, 3 }
   0xb   : > { %s2940_s19 = smov (%p32_p0, %s31_s19), 0  ;;  %s2942_s20 = smov (!%p32_p0, %s34_s20), %s2193_s15 }
   0xc   : > { %2921 = sst [smem:[#allocation13_spill]] %s2940_s19  ;;  %s240_s21 = ssub.s32 %s2189_s14, %s2940_s19 }
   0xd   : > { %p2323_p3 = por %p255_p2, %p254_p1  ;;  %p36_p4 = scmp.ge.s32.totalorder %s2942_s20, 2 }
   0xe   : > { %p260_p5 = scmp.ne.s32.totalorder %s2173_s10, %s2169_s30  ;;  %p261_p6 = scmp.eq.s32.totalorder %s1789_s18, 3 }
   0xf   : > { %p1792_p7 = scmp.ge.s32.totalorder %s2197_s16, 1  ;;  %s2944_s20 = smov (%p36_p4, %s2942_s20), 0 }
  0x10   : > { %2923 = sst [smem:[#allocation14_spill]] %s2944_s20  ;;  %p2332_p8 = por %p261_p6, %p260_p5 }
  0x11   : > { %p321_p9 = scmp.lt.s32.totalorder %s2197_s16, 5  ;;  %s239_s24 = ssub.s32 %s2193_s15, %s2944_s20 }
  0x12   : > { %s2924_s23 = scalar_select %p2332_p8, 1, 0 }
  0x13   : > { %s244_s25 = sadd.s32 1, %s2177_s11  ;;  %s241_s26 = sor.u32 %s240_s21, %s239_s24 }
  0x14   : > { %2925 = sst [smem:[#allocation15_spill]] %s2924_s23  ;;  %p322_p10 = pnand %p1792_p7, %p321_p9 }
  0x15   : > { %p242_p11 = scmp.eq.s32.totalorder %s241_s26, 0  ;;  %s2913_s28 = sand.u32 (!%p322_p10), 1, %s2173_s10  }
  0x16   : > { %325 = sbr.rel (%p322_p10) target bundleno = 3948 (0xf6c), region = 56  ;;  %s2345_s29 = sshll.u32 (!%p322_p10), %s2181_s12, 1 }
  0x17   : > { %s2341_s27 = scalar_select %p242_p11, %s2177_s11, %s244_s25  }
  0x18   : > { %s1793_s17 = sshll.u32 (!%p322_p10), %s2913_s28, 4  ;;  %p367_p12 = scmp.lt.s32.totalorder (!%p322_p10), %s2185_s13, 1 }
  0x19   : > { %2926 = sst [smem:[#allocation16_spill]] %s2341_s27  ;;  %p369_p13 = scmp.lt.s32.totalorder (!%p322_p10), %s2345_s29, 3 }
  0x1a   : > { %s2361_s30 = scalar_lea.vmem (!%p322_p10), [#allocation5], %s1793_s17  ;;  %p1799_p0 = scmp.ne.s32.totalorder (!%p322_p10), %s2181_s12, 0 }
  0x1d   : > { %s368_s18 = scalar_select %p367_p12, %s2185_s13, 1 }
  0x1e   : > { %s370_s21 = scalar_select %p369_p13, %s2345_s29, 3 }
  0x1f   : > { %s1795_s24 = sshll.u32 %s368_s18, 2  ;;  %s1832_s25 = sshll.u32 %s368_s18, 4  ;;  %v2060_v0 = vld [vmem:[%s2899_s3] sm:$0xff] (!%p1799_p0)   ;;  %v2061_v1 = vld [vmem:[%s2899_s3 + $0x8] sm:$0xff] (!%p1799_p0)   ;;  %vm417_vm0 = vcmask (!%p1799_p0), 261120   ;;  %v2379_v4 = vld [vmem:[%s2902_s6 + $0x10] sm:$0xff] (!%p1799_p0) }
  0x20   : > { %s372_s26 = sadd.s32 %s1795_s24, %s370_s21  ;;  %s380_s15 = scalar_lea.vmem %s2897_s1, %s1832_s25  ;;  %1871 = vmatprep.subr.bf16.mxu0 (!%p1799_p0), %v2060_v0  ;;  %v2374_v3 = vld [vmem:[%s2902_s6] sm:$0xff] (!%p1799_p0)  ;;  %v2390_v6 = vld [vmem:[%s2902_s6 + $0x8] sm:$0xff] (!%p1799_p0)  ;;  %v2395_v7 = vld [vmem:[%s2902_s6 + $0x18] sm:$0xff] (!%p1799_p0)  ;;  %vm582_vm1 = vcmask (!%p1799_p0), 64512   ;;  %vm587_vm2 = vcmask (!%p1799_p0), 130048   ;;  %vm592_vm3 = vcmask (!%p1799_p0), 195584  }
  0x21   : > { %s1796_s14 = sshll.u32 %s372_s26, 2  ;;  %386 = sbr.rel (%p1799_p0) target bundleno = 620 (0x26c), region = 60  ;;  %v2062_v2 = vld [vmem:[%s380_s15] sm:$0xff] (!%p1799_p0)   ;;  %1872 = vmatpush3.bf16.msra.mxu0 (!%p1799_p0), %v2060_v0  ;;  %v2385_v5 = vld [vmem:[%s380_s15 + $0x8] sm:$0xff] (!%p1799_p0)   ;;  %v656_v10 = vld [vmem:[%s2903_s7 + $0x18] sm:$0xff] (!%p1799_p0)  ;;  %vm713_vm4 = vcmask (!%p1799_p0), 1047808  }
  0x22   : > { %s2359_s23 = scalar_lea.vmem %s2896_s0, %s1796_s14  ;;  %1873 = vmatprep.subr.bf16.mxu0 (!%p1799_p0), %v2061_v1  ;;  %1875 = vmatprep.mubr.msk.bf16.mxu0 (!%p1799_p0), %vm417_vm0, %v2062_v2  ;;  %s2199_s16 = smov (!%p1799_p0), 8   ;;  %v2423_v8 = vld [vmem:[%s2903_s7 + $0x8] sm:$0xff] (!%p1799_p0)  ;;  %v653_v9 = vld [vmem:[%s2903_s7] sm:$0xff] (!%p1799_p0)  ;;  %v655_v11 = vld [vmem:[%s2903_s7 + $0x10] sm:$0xff] (!%p1799_p0) }
  0x23   : > { %605 = vrot.lane.b32.xlu0 (!%p1799_p0), %v2374_v3, %s2199_s16  ;;  %609 = vrot.lane.b32.xlu1 (!%p1799_p0), %v2379_v4, %s2199_s16  ;;  %s2200_s15 = smov (!%p1799_p0), 16   ;;  %s2201_s25 = smov (!%p1799_p0), 24   ;;  %v2064_v47 = vld [vmem:[%s2900_s4] sm:$0xff] (!%p1799_p0)   ;;  %v2065_v54 = vld [vmem:[%s2900_s4 + $0x8] sm:$0xff] (!%p1799_p0)  }
  0x24   : > { %1883 = vmatprep.mubr.msk.bf16.mxu1 (!%p1799_p0), %vm417_vm0, %v2062_v2  ;;  %s2202_s28 = smov (!%p1799_p0), 32   ;;  %1879 = vmatprep.subr.bf16.mxu1 (!%p1799_p0), %v2064_v47  ;;  %s2203_s26 = smov (!%p1799_p0), 1  }
  0x25   : > { %1874 = vmatpush3.bf16.msra.mxu0 (!%p1799_p0), %v2061_v1  ;;  %1880 = vmatpush3.bf16.msra.mxu1 (!%p1799_p0), %v2064_v47  ;;  %s2204_s11 = smov (!%p1799_p0), 31  }
  0x26   : > { %1881 = vmatprep.subr.bf16.mxu1 (!%p1799_p0), %v2065_v54 }
  0x27   : > { %607 = vrot.lane.b32.xlu0 (!%p1799_p0), %v2390_v6, %s2199_s16  ;;  %611 = vrot.lane.b32.xlu1 (!%p1799_p0), %v2395_v7, %s2199_s16 }
  0x28   : > { %1876 = vmatmul.mubr.msk.bf16.vlgmr.msra.gmra.mrb[0].mxu0 %vm417_vm0, %v2385_v5 }
  0x29   : > { %1882 = vmatpush3.bf16.msra.mxu1 %v2065_v54 }
  0x2b   : > { %617 = vrot.lane.b32.xlu0 %v2374_v3, %s2200_s15  ;;  %619 = vrot.lane.b32.xlu1 %v2390_v6, %s2200_s15 }
  0x2c   : > { %1884 = vmatmul.mubr.msk.bf16.vlgmr.msra.gmra.mrb[0].mxu1 %vm417_vm0, %v2385_v5 }
  0x2f   : > { %621 = vrot.lane.b32.xlu0 %v2379_v4, %s2200_s15  ;;  %623 = vrot.lane.b32.xlu1 %v2395_v7, %s2200_s15 }
  0x33   : > { %629 = vrot.lane.b32.xlu0 %v2374_v3, %s2201_s25  ;;  %631 = vrot.lane.b32.xlu1 %v2390_v6, %s2201_s25 }
  0x37   : > { %633 = vrot.lane.b32.xlu0 %v2379_v4, %s2201_s25  ;;  %635 = vrot.lane.b32.xlu1 %v2395_v7, %s2201_s25 }
  0x3b   : > { %663 = vrot.lane.b32.xlu1 %v2423_v8, %s2199_s16  ;;  %661 = vrot.lane.b32.xlu0 %v653_v9, %s2199_s16 }
  0x3f   : > { %667 = vrot.lane.b32.xlu1 %v656_v10, %s2199_s16  ;;  %665 = vrot.lane.b32.xlu0 %v655_v11, %s2199_s16 }
  0x43   : > { %675 = vrot.lane.b32.xlu1 %v2423_v8, %s2200_s15  ;;  %673 = vrot.lane.b32.xlu0 %v653_v9, %s2200_s15 }
  0x47   : > { %679 = vrot.lane.b32.xlu1 %v656_v10, %s2200_s15  ;;  %677 = vrot.lane.b32.xlu0 %v655_v11, %s2200_s15 }
  0x4b   : > { %687 = vrot.lane.b32.xlu1 %v2423_v8, %s2201_s25  ;;  %685 = vrot.lane.b32.xlu0 %v653_v9, %s2201_s25 }
  0x95   : > { %v606_v12 = vpop.permute.xlu0 %605  ;;  %v610_v13 = vpop.permute.xlu1 %609 }
  0x96   : > { %v641_v40 = vsel %vm582_vm1, %v2374_v3, %v606_v12  ;;  %v643_v43 = vsel %vm582_vm1, %v2379_v4, %v610_v13  ;;  %v2535_v12 = vld [vmem:[%s2904_s8 + $0x10] sm:$0xff]  ;;  %v2542_v13 = vld [vmem:[%s2904_s8 + $0x18] sm:$0xff] }
  0x99   : > { %v608_v14 = vpop.permute.xlu0 %607  ;;  %v612_v15 = vpop.permute.xlu1 %611 }
  0x9a   : > { %v642_v41 = vsel %vm582_vm1, %v2390_v6, %v608_v14  ;;  %v644_v45 = vsel %vm582_vm1, %v2395_v7, %v612_v15 }
  0x9d   : > { %v618_v16 = vpop.permute.xlu0 %617  ;;  %v620_v17 = vpop.permute.xlu1 %619 }
  0x9e   : > { %v645_v42 = vsel %vm587_vm2, %v641_v40, %v618_v16  ;;  %v646_v44 = vsel %vm587_vm2, %v642_v41, %v620_v17 }
  0xa1   : > { %v622_v18 = vpop.permute.xlu0 %621  ;;  %v624_v19 = vpop.permute.xlu1 %623 }
  0xa2   : > { %v647_v48 = vsel %vm587_vm2, %v643_v43, %v622_v18  ;;  %v648_v51 = vsel %vm587_vm2, %v644_v45, %v624_v19 }
  0xa5   : > { %v630_v20 = vpop.permute.xlu0 %629  ;;  %v632_v21 = vpop.permute.xlu1 %631 }
  0xa6   : > { %v649_v46 = vsel %vm592_vm3, %v645_v42, %v630_v20  ;;  %v650_v49 = vsel %vm592_vm3, %v646_v44, %v632_v21 }
  0xa9   : > { %v634_v22 = vpop.permute.xlu0 %633  ;;  %v636_v23 = vpop.permute.xlu1 %635 }
  0xaa   : > { %v651_v52 = vsel %vm592_vm3, %v647_v48, %v634_v22  ;;  %v652_v57 = vsel %vm592_vm3, %v648_v51, %v636_v23 }
  0xad   : > { %v664_v24 = vpop.permute.xlu1 %663  ;;  %v662_v25 = vpop.permute.xlu0 %661 }
  0xae   : > { %v697_v50 = vsel %vm582_vm1, %v653_v9, %v662_v25  ;;  %v698_v53 = vsel %vm582_vm1, %v2423_v8, %v664_v24 }
  0xb1   : > { %v668_v26 = vpop.permute.xlu1 %667  ;;  %v666_v27 = vpop.permute.xlu0 %665 }
  0xb2   : > { %v700_v30 = vsel %vm582_vm1, %v656_v10, %v668_v26  ;;  %v699_v31 = vsel %vm582_vm1, %v655_v11, %v666_v27 }
  0xb5   : > { %v676_v28 = vpop.permute.xlu1 %675  ;;  %v674_v29 = vpop.permute.xlu0 %673 }
  0xb6   : > { %v701_v55 = vsel %vm587_vm2, %v697_v50, %v674_v29  ;;  %v702_v58 = vsel %vm587_vm2, %v698_v53, %v676_v28 }
  0xb9   : > { %v680_v32 = vpop.permute.xlu1 %679  ;;  %v678_v33 = vpop.permute.xlu0 %677 }
  0xba   : > { %v2450_v34 = vsel %vm587_vm2, %v700_v30, %v680_v32  ;;  %v2453_v35 = vsel %vm587_vm2, %v699_v31, %v678_v33 }
  0xbd   : > { %v686_v56 = vpop.permute.xlu0 %685  ;;  %v688_v59 = vpop.permute.xlu1 %687 }
  0xbe   : > { %v705_v60 = vsel %vm592_vm3, %v701_v55, %v686_v56  ;;  %v706_v61 = vsel %vm592_vm3, %v702_v58, %v688_v59 }
  0xfb   : > { %v2455_v36 = vpop.f32.mrb[0].mxu0 }
  0xfc   : > { %720 = vrot.lane.b32.xlu0 %v2455_v36, %s2202_s28  ;;  %v2459_v37 = vpop.f32.mrb[1].mxu0 }
  0xfd   : > { %v2461_v38 = vpop.f32.mrb[2].mxu0 }
  0xfe   : > { %723 = vrot.lane.b32.xlu1 %v2461_v38, %s2202_s28  ;;  %v2465_v39 = vpop.f32.mrb[3].mxu0 }
  0xff   : > { %v1885_v21 = vpop.f32.mrb[0].mxu1 }
 0x100   : > { %714 = vrot.lane.b32.xlu0 %v2459_v37, %s2202_s28  ;;  %v523_v23 = vpop.f32.mrb[1].mxu1 }
 0x101   : > { %v1886_v26 = vpop.f32.mrb[2].mxu1 }
 0x102   : > { %717 = vrot.lane.b32.xlu1 %v2465_v39, %s2202_s28  ;;  %v526_v28 = vpop.f32.mrb[3].mxu1  ;;  %v823_v31 = vpack.c.bf16 %v1886_v26, %v1885_v21 }
 0x103   : > { %v822_v32 = vpack.c.bf16 %v526_v28, %v523_v23 }
 0x104   : > { %689 = vrot.lane.b32.xlu0 %v655_v11, %s2201_s25  ;;  %v2528_v11 = vld [vmem:[%s2904_s8 + $0x8] sm:$0xff]  ;;  %825 = vst.msk [vmem:[#allocation3 + $0x8] sm:$0xff] %vm417_vm0, %v823_v31 }
 0x105   : > { %824 = vst.msk [vmem:[#allocation3] sm:$0xff] %vm417_vm0, %v822_v32 }
 0x106   : > { %691 = vrot.lane.b32.xlu1 %v656_v10, %s2201_s25  ;;  %v2523_v10 = vld [vmem:[%s2904_s8] sm:$0xff] }
 0x108   : > { %742 = vrot.lane.b32.xlu0 %v649_v46, %s2203_s26 }
 0x10a   : > { %744 = vrot.lane.b32.xlu1 %v650_v49, %s2203_s26 }
 0x10c   : > { %746 = vrot.lane.b32.xlu0 %v651_v52, %s2203_s26 }
 0x10e   : > { %748 = vrot.lane.b32.xlu1 %v652_v57, %s2203_s26 }
 0x110   : > { %782 = vrot.lane.b32.xlu0 %v705_v60, %s2204_s11 }
 0x112   : > { %784 = vrot.lane.b32.xlu1 %v706_v61, %s2204_s11 }
 0x16e   : > { %v721_v62 = vpop.permute.xlu0 %720 }
 0x16f   : > { %v722_v63 = vsel %vm713_vm4, %v721_v62, %v2455_v36 }
 0x170   : > { %730 = vrot.lane.b32.xlu0 %v722_v63, %s2202_s28  ;;  %v724_v0 = vpop.permute.xlu1 %723 }
 0x171   : > { %v725_v1 = vsel %vm713_vm4, %v724_v0, %v2461_v38 }
 0x172   : > { %v715_v2 = vpop.permute.xlu0 %714  ;;  %732 = vrot.lane.b32.xlu1 %v725_v1, %s2202_s28 }
 0x173   : > { %v716_v3 = vsel %vm713_vm4, %v715_v2, %v2459_v37 }
 0x174   : > { %726 = vrot.lane.b32.xlu0 %v716_v3, %s2202_s28  ;;  %v718_v4 = vpop.permute.xlu1 %717 }
 0x175   : > { %v719_v5 = vsel %vm713_vm4, %v718_v4, %v2465_v39 }
 0x176   : > { %v690_v6 = vpop.permute.xlu0 %689  ;;  %728 = vrot.lane.b32.xlu1 %v719_v5, %s2202_s28 }
 0x177   : > { %v707_v7 = vsel %vm592_vm3, %v2453_v35, %v690_v6 }
 0x178   : > { %786 = vrot.lane.b32.xlu0 %v707_v7, %s2204_s11  ;;  %v692_v8 = vpop.permute.xlu1 %691 }
 0x179   : > { %v708_v9 = vsel %vm592_vm3, %v2450_v34, %v692_v8 }
 0x17a   : > { %788 = vrot.lane.b32.xlu1 %v708_v9, %s2204_s11  ;;  %v743_v14 = vpop.permute.xlu0 %742 }
 0x17c   : > { %546 = vrot.lane.b32.xlu0 %v2523_v10, %s2199_s16  ;;  %v745_v15 = vpop.permute.xlu1 %744 }
 0x17e   : > { %548 = vrot.lane.b32.xlu1 %v2528_v11, %s2199_s16  ;;  %v747_v16 = vpop.permute.xlu0 %746 }
 0x180   : > { %550 = vrot.lane.b32.xlu0 %v2535_v12, %s2199_s16  ;;  %v749_v17 = vpop.permute.xlu1 %748 }
 0x182   : > { %552 = vrot.lane.b32.xlu1 %v2542_v13, %s2199_s16  ;;  %v783_v18 = vpop.permute.xlu0 %782  ;;  %s2205_s16 = smov 127  }
 0x184   : > { %558 = vrot.lane.b32.xlu0 %v2523_v10, %s2200_s15  ;;  %v785_v19 = vpop.permute.xlu1 %784 }
 0x186   : > { %560 = vrot.lane.b32.xlu1 %v2528_v11, %s2200_s15 }
 0x188   : > { %562 = vrot.lane.b32.xlu0 %v2535_v12, %s2200_s15 }
 0x18a   : > { %564 = vrot.lane.b32.xlu1 %v2542_v13, %s2200_s15  ;;  %s2206_s15 = smov 97  }
 0x18c   : > { %570 = vrot.lane.b32.xlu0 %v2523_v10, %s2201_s25 }
 0x18e   : > { %572 = vrot.lane.b32.xlu1 %v2528_v11, %s2201_s25 }
 0x190   : > { %574 = vrot.lane.b32.xlu0 %v2535_v12, %s2201_s25 }
 0x192   : > { %576 = vrot.lane.b32.xlu1 %v2542_v13, %s2201_s25 }
 0x1e2   : > { %v731_v20 = vpop.permute.xlu0 %730 }
 0x1e3   : > { %v736_v22 = vsel %vm713_vm4, %v731_v20, %v2455_v36 }
 0x1e4   : > { %v756_v24 = vmul.f32 %v747_v16, %v736_v22  ;;  %v733_v25 = vpop.permute.xlu1 %732 }
 0x1e5   : > { %v737_v27 = vsel %vm713_vm4, %v733_v25, %v2461_v38 }
 0x1e6   : > { %v757_v29 = vmul.f32 %v749_v17, %v737_v27  ;;  %766 = vrot.lane.b32.xlu0 %v756_v24, %s2205_s16  ;;  %v727_v30 = vpop.permute.xlu0 %726 }
 0x1e7   : > { %v734_v33 = vsel %vm713_vm4, %v727_v30, %v2459_v37 }
 0x1e8   : > { %v754_v34 = vmul.f32 %v743_v14, %v734_v33  ;;  %768 = vrot.lane.b32.xlu1 %v757_v29, %s2205_s16  ;;  %v729_v35 = vpop.permute.xlu1 %728  ;;  %v794_v42 = vmul.f32 %v783_v18, %v734_v33 }
 0x1e9   : > { %v735_v40 = vsel %vm713_vm4, %v729_v35, %v2465_v39 }
 0x1ea   : > { %v755_v41 = vmul.f32 %v745_v15, %v735_v40  ;;  %762 = vrot.lane.b32.xlu0 %v754_v34, %s2205_s16  ;;  %v787_v43 = vpop.permute.xlu0 %786  ;;  %v795_v44 = vmul.f32 %v785_v19, %v735_v40 }
 0x1eb   : > { %v796_v46 = vmul.f32 %v787_v43, %v736_v22 }
 0x1ec   : > { %764 = vrot.lane.b32.xlu1 %v755_v41, %s2205_s16  ;;  %v789_v45 = vpop.permute.xlu1 %788 }
 0x1ed   : > { %v797_v47 = vmul.f32 %v789_v45, %v737_v27 }
 0x1ee   : > { %802 = vrot.lane.b32.xlu0 %v794_v42, %s2206_s15  ;;  %v547_v48 = vpop.permute.xlu0 %546 }
 0x1ef   : > { %v583_v59 = vsel %vm582_vm1, %v2523_v10, %v547_v48 }
 0x1f0   : > { %804 = vrot.lane.b32.xlu1 %v795_v44, %s2206_s15  ;;  %v549_v49 = vpop.permute.xlu1 %548 }
 0x1f1   : > { %v584_v60 = vsel %vm582_vm1, %v2528_v11, %v549_v49 }
 0x1f2   : > { %806 = vrot.lane.b32.xlu0 %v796_v46, %s2206_s15  ;;  %v551_v50 = vpop.permute.xlu0 %550 }
 0x1f3   : > { %v585_v1 = vsel %vm582_vm1, %v2535_v12, %v551_v50 }
 0x1f4   : > { %808 = vrot.lane.b32.xlu1 %v797_v47, %s2206_s15  ;;  %v553_v51 = vpop.permute.xlu1 %552 }
 0x1f5   : > { %v586_v2 = vsel %vm582_vm1, %v2542_v13, %v553_v51 }
 0x1f6   : > { %v559_v52 = vpop.permute.xlu0 %558 }
 0x1f7   : > { %v588_v63 = vsel %vm587_vm2, %v583_v59, %v559_v52 }
 0x1f8   : > { %v561_v53 = vpop.permute.xlu1 %560 }
 0x1f9   : > { %v589_v0 = vsel %vm587_vm2, %v584_v60, %v561_v53 }
 0x1fa   : > { %v563_v54 = vpop.permute.xlu0 %562 }
 0x1fb   : > { %v590_v7 = vsel %vm587_vm2, %v585_v1, %v563_v54 }
 0x1fc   : > { %v565_v55 = vpop.permute.xlu1 %564 }
 0x1fd   : > { %v591_v8 = vsel %vm587_vm2, %v586_v2, %v565_v55 }
 0x1fe   : > { %v571_v56 = vpop.permute.xlu0 %570 }
 0x1ff   : > { %v593_v4 = vsel %vm592_vm3, %v588_v63, %v571_v56 }
 0x200   : > { %v573_v57 = vpop.permute.xlu1 %572  ;;  %v709_v10 = vmul.f32 %v593_v4, %v2459_v37 }
 0x201   : > { %v594_v5 = vsel %vm592_vm3, %v589_v0, %v573_v57 }
 0x202   : > { %v575_v58 = vpop.permute.xlu0 %574  ;;  %v710_v11 = vmul.f32 %v594_v5, %v2465_v39 }
 0x203   : > { %v595_v12 = vsel %vm592_vm3, %v590_v7, %v575_v58 }
 0x204   : > { %v577_v61 = vpop.permute.xlu1 %576  ;;  %v711_v18 = vmul.f32 %v2455_v36, %v595_v12 }
 0x205   : > { %v596_v14 = vsel %vm592_vm3, %v591_v8, %v577_v61 }
 0x206   : > { %v712_v19 = vmul.f32 %v2461_v38, %v596_v14 }
 0x258   : > { %v767_v62 = vpop.permute.xlu0 %766 }
 0x259   : > { %v776_v23 = vadd.f32 %v767_v62, %v711_v18 }
 0x25a   : > { %v769_v3 = vpop.permute.xlu1 %768 }
 0x25b   : > { %v777_v24 = vadd.f32 %v769_v3, %v712_v19 }
 0x25c   : > { %v763_v6 = vpop.permute.xlu0 %762 }
 0x25d   : > { %v774_v15 = vadd.f32 %v763_v6, %v709_v10 }
 0x25e   : > { %v765_v9 = vpop.permute.xlu1 %764 }
 0x25f   : > { %v775_v16 = vadd.f32 %v765_v9, %v710_v11 }
 0x260   : > { %v803_v13 = vpop.permute.xlu0 %802 }
 0x261   : > { %v814_v20 = vadd.f32 %v803_v13, %v774_v15 }
 0x262   : > { %v805_v17 = vpop.permute.xlu1 %804 }
 0x263   : > { %v815_v21 = vadd.f32 %v805_v17, %v775_v16 }
 0x264   : > { %v807_v22 = vpop.permute.xlu0 %806 }
 0x265   : > { %v818_v37 = vpack.c.bf16 %v815_v21, %v814_v20  ;;  %v816_v39 = vadd.f32 %v807_v22, %v776_v23 }
 0x266   : > { %v809_v25 = vpop.permute.xlu1 %808 }
 0x267   : > { %820 = vst.msk [vmem:[#allocation2] sm:$0xff] %vm417_vm0, %v818_v37  ;;  %v817_v26 = vadd.f32 %v809_v25, %v777_v24 }
 0x269   : > { %v819_v27 = vpack.c.bf16 %v817_v26, %v816_v39 }
 0x26b   : > { %821 = vst.msk [vmem:[#allocation2 + $0x8] sm:$0xff] %vm417_vm0, %v819_v27 }
 0x26c PF: > { %v2066_v36 = vld [vmem:[%s2898_s2] sm:$0xff]   ;;  %v2207_v38 = vmov 0.0   ;;  %v2067_v28 = vld [vmem:[%s2898_s2 + $0x8] sm:$0xff]   ;;  %vm2208_vm5 = vmmov 0   ;;  %s2608_s14 = sshll.u32 %s2181_s12, 4  ;;  %vm850_vm6 = vcmask 261120  }
 0x26d   : > { %1887 = vmatprep.subr.bf16.mxu0 %v2207_v38  ;;  %1895 = vmatprep.subr.bf16.mxu1 %v2207_v38  ;;  %s927_s27 = scalar_lea.vmem %s2902_s6, %s2608_s14  ;;  %v2068_v29 = vld [vmem:[%s2359_s23] sm:$0xff]   ;;  %s2209_s28 = smov 8   ;;  %vm918_vm7 = vcmask 64512   ;;  %vm921_vm8 = vcmask 130048   ;;  %vm924_vm9 = vcmask 195584   ;;  %vm987_vm10 = vcmask 1047808  }
 0x26e   : > { %1888 = vmatpush3.bf16.msra.mxu0 %v2066_v36  ;;  %1891 = vmatprep.mubr.msk.bf16.mxu0 %vm2208_vm5, %v2207_v38  ;;  %v928_v30 = vld [vmem:[%s927_s27] sm:$0xff]  ;;  %s2210_s17 = smov 16   ;;  %v929_v31 = vld [vmem:[%s927_s27 + $0x8] sm:$0xff]  ;;  %s956_s24 = scalar_lea.vmem %s2903_s7, %s2608_s14  ;;  %vm1319_vm13 = vcmask 130112   ;;  %vm1463_vm14 = vcmask 195712   ;;  %vm1607_vm15 = vcmask 261312  }
 0x26f   : > { %1889 = vmatprep.subr.bf16.mxu0 %v2207_v38  ;;  %1899 = vmatprep.mubr.msk.bf16.mxu1 %vm2208_vm5, %v2207_v38  ;;  %s2211_s26 = smov 24   ;;  %v957_v32 = vld [vmem:[%s956_s24] sm:$0xff]  ;;  %v958_v33 = vld [vmem:[%s956_s24 + $0x8] sm:$0xff]  ;;  %s2212_s16 = smov 32  }
 0x270   : > { %932 = vrot.lane.b32.xlu0 %v928_v30, %s2209_s28  ;;  %938 = vrot.lane.b32.xlu1 %v928_v30, %s2210_s17  ;;  %s2213_s15 = smov 1   ;;  %s895_s21 = scalar_lea.vmem %s2904_s8, %s2608_s14  ;;  %v2667_v7 = vld [vmem:[#allocation2] sm:$0xff] }
 0x271   : > { %s2214_s11 = smov 31   ;;  %v896_v6 = vld [vmem:[%s895_s21] sm:$0xff]  ;;  %v1061_v8 = vsel %vm918_vm7, %v2667_v7, 0  ;;  %v897_v9 = vld [vmem:[%s895_s21 + $0x8] sm:$0xff]  ;;  %s2215_s19 = smov 127  }
 0x272   : > { %1890 = vmatpush3.bf16.msra.mxu0 %v2067_v28  ;;  %1896 = vmatpush3.bf16.xpose.msra.mxu1 %v1061_v8  ;;  %v2678_v10 = vld [vmem:[#allocation2 + $0x8] sm:$0xff]  ;;  %s2216_s20 = smov 97   ;;  %s2218_s27 = smov 112  }
 0x273   : > { %1903 = vmatprep.subr.bf16.mxu0 %v2207_v38  ;;  %1897 = vmatprep.subr.bf16.mxu1 %v2207_v38  ;;  %v1064_v11 = vsel %vm918_vm7, %v2678_v10, 0  ;;  %s2219_s12 = smov 104   ;;  %s1688_s21 = sshll.u32 %s2361_s30, 4  ;;  %s2837_s21 = int_to_ptr.vmem [resolvable:$true] %s1688_s21 }
 0x274   : > { %934 = vrot.lane.b32.xlu0 %v929_v31, %s2209_s28  ;;  %940 = vrot.lane.b32.xlu1 %v929_v31, %s2210_s17 }
 0x275   : > { %1892 = vmatmul.mubr.msk.bf16.vlgmr.msra.gmra.mrb[0].mxu0 %vm850_vm6, %v2068_v29 }
 0x276   : > { %1907 = vmatprep.mubr.msk.bf16.mxu0 %vm2208_vm5, %v2207_v38 }
 0x278   : > { %944 = vrot.lane.b32.xlu0 %v928_v30, %s2211_s26  ;;  %946 = vrot.lane.b32.xlu1 %v929_v31, %s2211_s26 }
 0x27a   : > { %1898 = vmatpush3.bf16.xpose.msra.mxu1 %v1064_v11 }
 0x27b   : > { %1919 = vmatprep.subr.bf16.mxu1 %v2207_v38 }
 0x27c   : > { %961 = vrot.lane.b32.xlu0 %v957_v32, %s2209_s28  ;;  %963 = vrot.lane.b32.xlu1 %v958_v33, %s2209_s28 }
 0x280   : > { %967 = vrot.lane.b32.xlu0 %v957_v32, %s2210_s17  ;;  %969 = vrot.lane.b32.xlu1 %v958_v33, %s2210_s17 }
 0x2e2   : > { %v933_v34 = vpop.permute.xlu0 %932  ;;  %v939_v35 = vpop.permute.xlu1 %938 }
 0x2e3   : > { %v950_v43 = vsel %vm918_vm7, %v928_v30, %v933_v34 }
 0x2e4   : > { %v952_v48 = vsel %vm921_vm8, %v950_v43, %v939_v35 }
 0x2e6   : > { %v935_v40 = vpop.permute.xlu0 %934  ;;  %v941_v41 = vpop.permute.xlu1 %940 }
 0x2e7   : > { %v951_v46 = vsel %vm918_vm7, %v929_v31, %v935_v40 }
 0x2e8   : > { %v953_v50 = vsel %vm921_vm8, %v951_v46, %v941_v41 }
 0x2ea   : > { %v945_v49 = vpop.permute.xlu0 %944  ;;  %v947_v51 = vpop.permute.xlu1 %946 }
 0x2eb   : > { %v954_v52 = vsel %vm924_vm9, %v952_v48, %v945_v49  ;;  %v955_v53 = vsel %vm924_vm9, %v953_v50, %v947_v51  ;;  %v1041_v50 = vlaneseq }
 0x2ed   : > { %v1042_v51 = vshrl.u32 %v1041_v50, 7 }
 0x2ee   : > { %v962_v54 = vpop.permute.xlu0 %961  ;;  %v964_v55 = vpop.permute.xlu1 %963 }
 0x2ef   : > { %v979_v59 = vsel %vm918_vm7, %v957_v32, %v962_v54  ;;  %v980_v62 = vsel %vm918_vm7, %v958_v33, %v964_v55 }
 0x2f2   : > { %v968_v56 = vpop.permute.xlu0 %967  ;;  %v970_v57 = vpop.permute.xlu1 %969 }
 0x2f3   : > { %v981_v0 = vsel %vm921_vm8, %v979_v59, %v968_v56  ;;  %v982_v3 = vsel %vm921_vm8, %v980_v62, %v970_v57 }
 0x348   : > { %v2635_v42 = vpop.f32.mrb[0].mxu0 }
 0x349   : > { %v1893_v44 = vpop.f32.mrb[1].mxu0  ;;  %988 = vrot.lane.b32.xlu0 %v2635_v42, %s2212_s16 }
 0x34a   : > { %v2640_v45 = vpop.f32.mrb[2].mxu0 }
 0x34b   : > { %v1894_v47 = vpop.f32.mrb[3].mxu0  ;;  %991 = vrot.lane.b32.xlu1 %v2640_v45, %s2212_s16 }
 0x34d   : > { %973 = vrot.lane.b32.xlu0 %v957_v32, %s2211_s26 }
 0x34f   : > { %975 = vrot.lane.b32.xlu1 %v958_v33, %s2211_s26 }
 0x351   : > { %1002 = vrot.lane.b32.xlu0 %v954_v52, %s2213_s15  ;;  %v1044_v52 = vstv %s2608_s14  ;;  %s2217_s14 = smov 120  }
 0x353   : > { %1004 = vrot.lane.b32.xlu1 %v955_v53, %s2213_s15  ;;  %v1045_v53 = vadd.s32 %v1044_v52, %v1042_v51  ;;  %s1828_s15 = sshll.u32 %s2185_s13, 2  ;;  %s2927_s13 = sand.u32 1, %s2173_s10  }
 0x354   : > { %s1685_s25 = sadd.s32 %s1828_s15, %s2345_s29  ;;  %s2843_s29 = scalar_lea.sflag [#allocation6], %s2927_s13 }
 0x355   : > { %s1829_s18 = sshll.u32 %s1685_s25, 7 }
 0x3bb   : > { %v989_v58 = vpop.permute.xlu0 %988 }
 0x3bc   : > { %v990_v60 = vsel %vm987_vm10, %v989_v58, %v2635_v42 }
 0x3bd   : > { %v992_v61 = vpop.permute.xlu1 %991  ;;  %994 = vrot.lane.b32.xlu0 %v990_v60, %s2212_s16 }
 0x3be   : > { %v993_v63 = vsel %vm987_vm10, %v992_v61, %v2640_v45 }
 0x3bf   : > { %996 = vrot.lane.b32.xlu1 %v993_v63, %s2212_s16  ;;  %v974_v1 = vpop.permute.xlu0 %973 }
 0x3c0   : > { %v983_v2 = vsel %vm924_vm9, %v981_v0, %v974_v1 }
 0x3c1   : > { %v976_v4 = vpop.permute.xlu1 %975  ;;  %1022 = vrot.lane.b32.xlu0 %v983_v2, %s2214_s11 }
 0x3c2   : > { %v984_v5 = vsel %vm924_vm9, %v982_v3, %v976_v4 }
 0x3c3   : > { %1024 = vrot.lane.b32.xlu1 %v984_v5, %s2214_s11  ;;  %v1003_v12 = vpop.permute.xlu0 %1002 }
 0x3c5   : > { %900 = vrot.lane.b32.xlu0 %v896_v6, %s2209_s28  ;;  %v1005_v14 = vpop.permute.xlu1 %1004 }
 0x3c7   : > { %902 = vrot.lane.b32.xlu1 %v897_v9, %s2209_s28 }
 0x3c9   : > { %906 = vrot.lane.b32.xlu0 %v896_v6, %s2210_s17 }
 0x3cb   : > { %908 = vrot.lane.b32.xlu1 %v897_v9, %s2210_s17 }
 0x3cd   : > { %912 = vrot.lane.b32.xlu0 %v896_v6, %s2211_s26 }
 0x3cf   : > { %914 = vrot.lane.b32.xlu1 %v897_v9, %s2211_s26 }
 0x42f   : > { %v995_v13 = vpop.permute.xlu0 %994 }
 0x430   : > { %v998_v15 = vsel %vm987_vm10, %v995_v13, %v2635_v42  ;;  %v2722_v13 = vld [vmem:[#allocation3 + $0x8] sm:$0xff] }
 0x431   : > { %v997_v16 = vpop.permute.xlu1 %996  ;;  %v1008_v17 = vmul.f32 %v1003_v12, %v998_v15 }
 0x432   : > { %v999_v18 = vsel %vm987_vm10, %v997_v16, %v2640_v45 }
 0x433   : > { %v1023_v19 = vpop.permute.xlu0 %1022  ;;  %1012 = vrot.lane.b32.xlu0 %v1008_v17, %s2215_s19  ;;  %v1009_v20 = vmul.f32 %v1005_v14, %v999_v18  ;;  %v2718_v14 = vld [vmem:[#allocation3] sm:$0xff] }
 0x434   : > { %v1028_v21 = vmul.f32 %v1023_v19, %v998_v15  ;;  %1904 = vmatpush3.bf16.msra.mxu0 %v2718_v14 }
 0x435   : > { %v1025_v22 = vpop.permute.xlu1 %1024  ;;  %1014 = vrot.lane.b32.xlu1 %v1009_v20, %s2215_s19  ;;  %1905 = vmatprep.subr.bf16.mxu0 %v2207_v38 }
 0x436   : > { %v1029_v23 = vmul.f32 %v1025_v22, %v999_v18 }
 0x437   : > { %1032 = vrot.lane.b32.xlu0 %v1028_v21, %s2216_s20  ;;  %v901_v24 = vpop.permute.xlu0 %900 }
 0x438   : > { %v919_v26 = vsel %vm918_vm7, %v896_v6, %v901_v24  ;;  %1906 = vmatpush3.bf16.msra.mxu0 %v2722_v13 }
 0x439   : > { %1034 = vrot.lane.b32.xlu1 %v1029_v23, %s2216_s20  ;;  %v903_v37 = vpop.permute.xlu1 %902  ;;  %1911 = vmatprep.subr.bf16.mxu0 %v2207_v38  ;;  %s2833_s20 = scalar_lea.hbm %s2905_s9, %s1829_s18 }
 0x43a   : > { %v920_v27 = vsel %vm918_vm7, %v897_v9, %v903_v37 }
 0x43b   : > { %v907_v25 = vpop.permute.xlu0 %906 }
 0x43c   : > { %v922_v28 = vsel %vm921_vm8, %v919_v26, %v907_v25 }
 0x43d   : > { %v909_v39 = vpop.permute.xlu1 %908 }
 0x43e   : > { %v923_v29 = vsel %vm921_vm8, %v920_v27, %v909_v39 }
 0x43f   : > { %v913_v36 = vpop.permute.xlu0 %912 }
 0x440   : > { %v925_v31 = vsel %vm924_vm9, %v922_v28, %v913_v36 }
 0x441   : > { %v915_v30 = vpop.permute.xlu1 %914  ;;  %v985_v35 = vmul.f32 %v925_v31, %v2635_v42  ;;  %v1043_v42 = vadd.s32 8, %v1042_v51 }
 0x442   : > { %v926_v32 = vsel %vm924_vm9, %v923_v29, %v915_v30 }
 0x443   : > { %v986_v40 = vmul.f32 %v926_v32, %v2640_v45  ;;  %v1048_v45 = vand.u32 127, %v1041_v50  ;;  %v1046_v54 = vadd.s32 %v1044_v52, %v1043_v42 }
 0x445   : > { %vm1049_vm11 = vcmp.gt.s32.totalorder %v1048_v45, %v1045_v53  ;;  %vm1050_vm12 = vcmp.gt.s32.totalorder %v1048_v45, %v1046_v54 }
 0x446   : > { %v2703_v55 = vsel %vm1049_vm11, -1e+30, %v2207_v38  ;;  %v2706_v57 = vsel %vm1050_vm12, -1e+30, %v2207_v38 }
 0x4a5   : > { %v1013_v33 = vpop.permute.xlu0 %1012 }
 0x4a6   : > { %v1018_v43 = vadd.f32 %v1013_v33, %v985_v35 }
 0x4a7   : > { %v1015_v34 = vpop.permute.xlu1 %1014 }
 0x4a8   : > { %v1019_v44 = vadd.f32 %v1015_v34, %v986_v40 }
 0x4a9   : > { %v1033_v41 = vpop.permute.xlu0 %1032 }
 0x4aa   : > { %v1038_v47 = vadd.f32 %v1033_v41, %v1018_v43 }
 0x4ab   : > { %v1035_v46 = vpop.permute.xlu1 %1034 }
 0x4ac   : > { %v1039_v48 = vadd.f32 %v1035_v46, %v1019_v44 }
 0x4ae   : > { %v2695_v49 = vpack.c.bf16 %v1039_v48, %v1038_v47 }
 0x4b0   : > { %1900 = vmatmul.mubr.msk.bf16.vlgmr.msra.gmra.mrb[0].mxu1 %vm918_vm7, %v2695_v49 }
 0x4b1   : > { %1923 = vmatprep.mubr.msk.bf16.mxu1 %vm2208_vm5, %v2207_v38 }
 0x583   : > { %v1100_v56 = vpop.f32.mrb[0].mxu1 }
 0x584   : > { %v1101_v58 = vadd.f32 %v1100_v56, %v2703_v55  ;;  %v1901_v59 = vpop.f32.mrb[1].mxu1 }
 0x585   : > { %v1103_v60 = vpop.f32.mrb[2].mxu1 }
 0x586   : > { %v1104_v61 = vadd.f32 %v1103_v60, %v2706_v57  ;;  %v1902_v62 = vpop.f32.mrb[3].mxu1  ;;  %v1107_v63 = vsel %vm850_vm6, %v1101_v58, -inf }
 0x587   : > { %1108 = vmax.xlane.f32.xlu0 %v1107_v63 }
 0x588   : > { %v1110_v0 = vsel %vm850_vm6, %v1104_v61, -inf }
 0x589   : > { %1111 = vmax.xlane.f32.xlu1 %v1110_v0 }
 0x59a   : > { %1185 = vrot.lane.b32.xlu1 %v2667_v7, %s2217_s14 }
 0x59e   : > { %1181 = vrot.lane.b32.xlu1 %v2695_v49, %s2217_s14 }
 0x614   : > { %v1109_v1 = vpop.xlane.xlu0 %1108 }
 0x615   : > { %v1113_v2 = vsub.f32 %v1101_v58, %v1109_v1 }
 0x616   : > { %v1112_v3 = vpop.xlane.xlu1 %1111 }
 0x617   : > { %v1115_v4 = vmul.f32 1.442695, %v1113_v2  ;;  %v1114_v5 = vsub.f32 %v1104_v61, %v1112_v3 }
 0x619   : > { %2071 = vpow2.f32 %v1115_v4  ;;  %v1117_v6 = vmul.f32 1.442695, %v1114_v5 }
 0x61a   : > { %v1186_v21 = vpop.permute.xlu1 %1185 }
 0x61b   : > { %2073 = vpow2.f32 %v1117_v6  ;;  %v1193_v22 = vsel %vm918_vm7, %v1186_v21, 0 }
 0x61e   : > { %v1182_v25 = vpop.permute.xlu1 %1181 }
 0x623   : > { %v2072_v8 = vpop.eup %2071 }
 0x624   : > { %v1119_v9 = vsel %vm850_vm6, %v2072_v8, 0.0 }
 0x625   : > { %v2074_v11 = vpop.eup %2073  ;;  %1120 = vadd.xlane.f32.xlu0 %v1119_v9 }
 0x626   : > { %v1122_v12 = vsel %vm850_vm6, %v2074_v11, 0.0 }
 0x629   : > { %1123 = vadd.xlane.f32.xlu0 %v1122_v12 }
 0x63f   : > { %1187 = vrot.lane.b32.xlu0 %v2678_v10, %s2217_s14 }
 0x6b2   : > { %v1121_v15 = vpop.xlane.xlu0 %1120 }
 0x6b3   : > { %2075 = vrcp.f32 %v1121_v15 }
 0x6b6   : > { %v1124_v16 = vpop.xlane.xlu0 %1123 }
 0x6b7   : > { %2077 = vrcp.f32 %v1124_v16 }
 0x6ba   : > { %v1188_v24 = vpop.permute.xlu0 %1187 }
 0x6bb   : > { %v1196_v37 = vsel %vm918_vm7, %v1188_v24, 0 }
 0x6bd   : > { %v2076_v17 = vpop.eup %2075 }
 0x6be   : > { %v1127_v19 = vmul.f32 %v2076_v17, %v2072_v8 }
 0x6c1   : > { %v2078_v18 = vpop.eup %2077 }
 0x6c2   : > { %v1128_v20 = vmul.f32 %v2078_v18, %v2074_v11 }
 0x6c4   : > { %v1129_v23 = vpack.c.bf16 %v1128_v20, %v1127_v19 }
 0x6c6   : > { %1908 = vmatmul.mubr.msk.bf16.vlgmr.msra.gmra.mrb[4].mxu0 %vm850_vm6, %v1129_v23 }
 0x6c7   : > { %1912 = vmatpush3.bf16.xpose.msra.mxu0 %v1193_v22  ;;  %1915 = vmatprep.mubr.msk.bf16.mxu0 %vm2208_vm5, %v2207_v38 }
 0x6c8   : > { %1913 = vmatprep.subr.bf16.mxu0 %v2207_v38 }
 0x6cf   : > { %1914 = vmatpush3.bf16.xpose.msra.mxu0 %v1196_v37 }
 0x6d0   : > { %1935 = vmatprep.subr.bf16.mxu0 %v2207_v38 }
 0x6d6   : > { %1916 = vmatmul.mubr.msk.bf16.vlgmr.msra.gmra.mrb[8].mxu0 %vm918_vm7, %v1182_v25 }
 0x6d7   : > { %1939 = vmatprep.mubr.msk.bf16.mxu0 %vm2208_vm5, %v2207_v38 }
 0x799   : > { %v1167_v39 = vpop.f32.mrb[4].mxu0 }
 0x79a   : > { %v1909_v26 = vpop.f32.mrb[5].mxu0 }
 0x79b   : > { %v1170_v27 = vpop.f32.mrb[6].mxu0 }
 0x79c   : > { %v1174_v36 = vpack.c.bf16 %v1170_v27, %v1167_v39  ;;  %v1910_v28 = vpop.f32.mrb[7].mxu0 }
 0x79e   : > { %1175 = vst.msk [vmem:[#allocation4] sm:$0xff] %vm918_vm7, %v1174_v36 }
 0x7a9   : > { %v1232_v29 = vpop.f32.mrb[8].mxu0 }
 0x7aa   : > { %v1233_v30 = vadd.f32 %v1232_v29, %v2703_v55  ;;  %v1917_v31 = vpop.f32.mrb[9].mxu0 }
 0x7ab   : > { %v1235_v32 = vpop.f32.mrb[10].mxu0 }
 0x7ac   : > { %v1236_v33 = vadd.f32 %v1235_v32, %v2706_v57  ;;  %v1918_v34 = vpop.f32.mrb[11].mxu0  ;;  %v1239_v35 = vsel %vm850_vm6, %v1233_v30, -inf }
 0x7ad   : > { %1240 = vmax.xlane.f32.xlu1 %v1239_v35 }
 0x7ae   : > { %v1242_v40 = vsel %vm850_vm6, %v1236_v33, -inf }
 0x7af   : > { %1243 = vmax.xlane.f32.xlu0 %v1242_v40 }
 0x7be   : > { %1266 = vrot.lane.b32.xlu1 %v2722_v13, %s2217_s14 }
 0x83a   : > { %v1241_v41 = vpop.xlane.xlu1 %1240 }
 0x83b   : > { %v1245_v43 = vsub.f32 %v1233_v30, %v1241_v41 }
 0x83c   : > { %v1244_v44 = vpop.xlane.xlu0 %1243 }
 0x83d   : > { %v1247_v46 = vmul.f32 1.442695, %v1245_v43  ;;  %v1246_v47 = vsub.f32 %v1236_v33, %v1244_v44 }
 0x83e   : > { %v1267_v53 = vpop.permute.xlu1 %1266 }
 0x83f   : > { %2079 = vpow2.f32 %v1247_v46  ;;  %v1249_v48 = vmul.f32 1.442695, %v1246_v47 }
 0x841   : > { %2081 = vpow2.f32 %v1249_v48 }
 0x849   : > { %v2080_v50 = vpop.eup %2079 }
 0x84a   : > { %v1251_v51 = vsel %vm850_vm6, %v2080_v50, 0.0 }
 0x84b   : > { %v2082_v52 = vpop.eup %2081  ;;  %1252 = vadd.xlane.f32.xlu0 %v1251_v51 }
 0x84c   : > { %v1254_v42 = vsel %vm850_vm6, %v2082_v52, 0.0 }
 0x84d   : > { %1255 = vadd.xlane.f32.xlu1 %v1254_v42 }
 0x85e   : > { %1329 = vrot.lane.b32.xlu1 %v2667_v7, %s2218_s27 }
 0x861   : > { %1264 = vrot.lane.b32.xlu0 %v2718_v14, %s2217_s14  ;;  %s2220_s14 = smov [#allocation5]  }
 0x862   : > { %1325 = vrot.lane.b32.xlu1 %v2695_v49, %s2218_s27 }
 0x865   : > { %1331 = vrot.lane.b32.xlu0 %v2678_v10, %s2218_s27 }
 0x8d8   : > { %v1253_v45 = vpop.xlane.xlu0 %1252 }
 0x8d9   : > { %2083 = vrcp.f32 %v1253_v45 }
 0x8da   : > { %v1256_v54 = vpop.xlane.xlu1 %1255 }
 0x8db   : > { %2085 = vrcp.f32 %v1256_v54 }
 0x8dc   : > { %v1265_v56 = vpop.permute.xlu0 %1264 }
 0x8dd   : > { %1920 = vmatpush3.bf16.msra.mxu1 %v1265_v56 }
 0x8de   : > { %1921 = vmatprep.subr.bf16.mxu1 %v2207_v38  ;;  %v1330_v62 = vpop.permute.xlu1 %1329 }
 0x8df   : > { %v1337_v63 = vsel %vm918_vm7, %v1330_v62, 0 }
 0x8e0   : > { %v1332_v1 = vpop.permute.xlu0 %1331 }
 0x8e1   : > { %1922 = vmatpush3.bf16.msra.mxu1 %v1267_v53  ;;  %v1340_v2 = vsel %vm918_vm7, %v1332_v1, 0 }
 0x8e2   : > { %1927 = vmatprep.subr.bf16.mxu1 %v2207_v38  ;;  %v1326_v3 = vpop.permute.xlu1 %1325 }
 0x8e3   : > { %v2084_v58 = vpop.eup %2083 }
 0x8e4   : > { %v1259_v60 = vmul.f32 %v2084_v58, %v2080_v50 }
 0x8e5   : > { %v2086_v59 = vpop.eup %2085 }
 0x8e6   : > { %v1260_v61 = vmul.f32 %v2086_v59, %v2082_v52 }
 0x8e8   : > { %v1261_v0 = vpack.c.bf16 %v1260_v61, %v1259_v60 }
 0x8ea   : > { %1924 = vmatmul.mubr.msk.bf16.vlgmr.msra.gmra.mrb[4].mxu1 %vm850_vm6, %v1261_v0 }
 0x8eb   : > { %1928 = vmatpush3.bf16.xpose.msra.mxu1 %v1337_v63  ;;  %1931 = vmatprep.mubr.msk.bf16.mxu1 %vm2208_vm5, %v2207_v38 }
 0x8ec   : > { %1929 = vmatprep.subr.bf16.mxu1 %v2207_v38 }
 0x8f3   : > { %1930 = vmatpush3.bf16.xpose.msra.mxu1 %v1340_v2 }
 0x8f4   : > { %1951 = vmatprep.subr.bf16.mxu1 %v2207_v38 }
 0x8fa   : > { %1932 = vmatmul.mubr.msk.bf16.vlgmr.msra.gmra.mrb[8].mxu1 %vm918_vm7, %v1326_v3 }
 0x8fb   : > { %1955 = vmatprep.mubr.msk.bf16.mxu1 %vm2208_vm5, %v2207_v38 }
 0x9bd   : > { %v2767_v4 = vpop.f32.mrb[4].mxu1 }
 0x9be   : > { %v1925_v5 = vpop.f32.mrb[5].mxu1 }
 0x9bf   : > { %v2769_v6 = vpop.f32.mrb[6].mxu1 }
 0x9c0   : > { %v1314_v8 = vpack.c.bf16 %v2769_v6, %v2767_v4  ;;  %v1926_v9 = vpop.f32.mrb[7].mxu1 }
 0x9cd   : > { %v1376_v11 = vpop.f32.mrb[8].mxu1 }
 0x9ce   : > { %v1377_v12 = vadd.f32 %v1376_v11, %v2703_v55  ;;  %v1933_v15 = vpop.f32.mrb[9].mxu1 }
 0x9cf   : > { %v1379_v16 = vpop.f32.mrb[10].mxu1 }
 0x9d0   : > { %v1380_v17 = vadd.f32 %v1379_v16, %v2706_v57  ;;  %v1934_v18 = vpop.f32.mrb[11].mxu1  ;;  %v1383_v19 = vsel %vm850_vm6, %v1377_v12, -inf  ;;  %v2069_v16 = vld [vmem:[%s2901_s5] sm:$0xff]  }
 0x9d1   : > { %1384 = vmax.xlane.f32.xlu0 %v1383_v19 }
 0x9d2   : > { %v1386_v20 = vsel %vm850_vm6, %v1380_v17, -inf }
 0x9d3   : > { %1387 = vmax.xlane.f32.xlu1 %v1386_v20 }
 0x9e4   : > { %1408 = vrot.lane.b32.xlu1 %v2718_v14, %s2218_s27 }
 0x9e8   : > { %1473 = vrot.lane.b32.xlu1 %v2667_v7, %s2219_s12 }
 0x9ec   : > { %1475 = vrot.lane.b32.xlu1 %v2678_v10, %s2219_s12 }
 0xa5e   : > { %v1385_v21 = vpop.xlane.xlu0 %1384 }
 0xa5f   : > { %v1389_v22 = vsub.f32 %v1377_v12, %v1385_v21 }
 0xa60   : > { %v1388_v23 = vpop.xlane.xlu1 %1387 }
 0xa61   : > { %v1391_v24 = vmul.f32 1.442695, %v1389_v22  ;;  %v1390_v37 = vsub.f32 %v1380_v17, %v1388_v23  ;;  %v2070_v17 = vld [vmem:[%s2901_s5 + $0x8] sm:$0xff]  }
 0xa63   : > { %2087 = vpow2.f32 %v1391_v24  ;;  %v1393_v25 = vmul.f32 1.442695, %v1390_v37 }
 0xa64   : > { %v1409_v7 = vpop.permute.xlu1 %1408 }
 0xa65   : > { %2089 = vpow2.f32 %v1393_v25  ;;  %1936 = vmatpush3.bf16.msra.mxu0 %v1409_v7 }
 0xa66   : > { %1937 = vmatprep.subr.bf16.mxu0 %v2207_v38 }
 0xa68   : > { %v1474_v32 = vpop.permute.xlu1 %1473 }
 0xa69   : > { %v1481_v35 = vsel %vm918_vm7, %v1474_v32, 0 }
 0xa6d   : > { %v2088_v39 = vpop.eup %2087 }
 0xa6e   : > { %v1395_v26 = vsel %vm850_vm6, %v2088_v39, 0.0 }
 0xa6f   : > { %v2090_v27 = vpop.eup %2089  ;;  %1396 = vadd.xlane.f32.xlu0 %v1395_v26 }
 0xa70   : > { %v1398_v36 = vsel %vm850_vm6, %v2090_v27, 0.0 }
 0xa73   : > { %1399 = vadd.xlane.f32.xlu0 %v1398_v36 }
 0xa89   : > { %1410 = vrot.lane.b32.xlu0 %v2722_v13, %s2218_s27  ;;  %s2107_s27 = sshll.u32 %s2220_s14, 4  ;;  %s2108_s27 = int_to_ptr.vmem [resolvable:$false] %s2107_s27 }
 0xa8a   : > { %p2110_p5 = scmp.lt.s32.totalorder %s2837_s21, %s2108_s27 }
 0xa8d   : > { %1469 = vrot.lane.b32.xlu0 %v2695_v49, %s2219_s12  ;;  %v1476_v49 = vpop.permute.xlu1 %1475 }
 0xa8e   : > { %v1484_v41 = vsel %vm918_vm7, %v1476_v49, 0 }
 0xafc   : > { %v1397_v10 = vpop.xlane.xlu0 %1396 }
 0xafd   : > { %2091 = vrcp.f32 %v1397_v10 }
 0xb00   : > { %v1400_v28 = vpop.xlane.xlu0 %1399 }
 0xb01   : > { %2093 = vrcp.f32 %v1400_v28 }
 0xb04   : > { %v1411_v29 = vpop.permute.xlu0 %1410 }
 0xb05   : > { %1938 = vmatpush3.bf16.msra.mxu0 %v1411_v29 }
 0xb06   : > { %1943 = vmatprep.subr.bf16.mxu0 %v2207_v38 }
 0xb07   : > { %v2092_v30 = vpop.eup %2091 }
 0xb08   : > { %v1403_v33 = vmul.f32 %v2092_v30, %v2088_v39  ;;  %v1470_v43 = vpop.permute.xlu0 %1469 }
 0xb0b   : > { %v2094_v31 = vpop.eup %2093 }
 0xb0c   : > { %v1404_v34 = vmul.f32 %v2094_v31, %v2090_v27 }
 0xb0e   : > { %v1405_v40 = vpack.c.bf16 %v1404_v34, %v1403_v33 }
 0xb10   : > { %1940 = vmatmul.mubr.msk.bf16.vlgmr.msra.gmra.mrb[12].mxu0 %vm850_vm6, %v1405_v40 }
 0xb11   : > { %1944 = vmatpush3.bf16.xpose.msra.mxu0 %v1481_v35  ;;  %1947 = vmatprep.mubr.msk.bf16.mxu0 %vm2208_vm5, %v2207_v38 }
 0xb12   : > { %1945 = vmatprep.subr.bf16.mxu0 %v2207_v38 }
 0xb19   : > { %1946 = vmatpush3.bf16.xpose.msra.mxu0 %v1484_v41 }
 0xb20   : > { %1948 = vmatmul.mubr.msk.bf16.vlgmr.msra.gmra.mrb[16].mxu0 %vm918_vm7, %v1470_v43 }
 0xbe3   : > { %v1451_v44 = vpop.f32.mrb[12].mxu0 }
 0xbe4   : > { %v1941_v46 = vpop.f32.mrb[13].mxu0 }
 0xbe5   : > { %v1454_v47 = vpop.f32.mrb[14].mxu0 }
 0xbe6   : > { %v1458_v48 = vpack.c.bf16 %v1454_v47, %v1451_v44  ;;  %v1942_v50 = vpop.f32.mrb[15].mxu0 }
 0xbf3   : > { %v1520_v51 = vpop.f32.mrb[16].mxu0 }
 0xbf4   : > { %v1521_v52 = vadd.f32 %v1520_v51, %v2703_v55  ;;  %v1949_v42 = vpop.f32.mrb[17].mxu0 }
 0xbf5   : > { %v1523_v53 = vpop.f32.mrb[18].mxu0 }
 0xbf6   : > { %v1524_v45 = vadd.f32 %v1523_v53, %v2706_v57  ;;  %v1950_v54 = vpop.f32.mrb[19].mxu0  ;;  %v1527_v56 = vsel %vm850_vm6, %v1521_v52, -inf }
 0xbf7   : > { %1528 = vmax.xlane.f32.xlu1 %v1527_v56 }
 0xbf8   : > { %v1530_v58 = vsel %vm850_vm6, %v1524_v45, -inf }
 0xbf9   : > { %1531 = vmax.xlane.f32.xlu0 %v1530_v58 }
 0xc84   : > { %v1529_v59 = vpop.xlane.xlu1 %1528 }
 0xc85   : > { %v1533_v60 = vsub.f32 %v1521_v52, %v1529_v59 }
 0xc86   : > { %v1532_v61 = vpop.xlane.xlu0 %1531 }
 0xc87   : > { %v1535_v62 = vmul.f32 1.442695, %v1533_v60  ;;  %v1534_v63 = vsub.f32 %v1524_v45, %v1532_v61 }
 0xc89   : > { %2095 = vpow2.f32 %v1535_v62  ;;  %v1537_v0 = vmul.f32 1.442695, %v1534_v63 }
 0xc8b   : > { %2097 = vpow2.f32 %v1537_v0 }
 0xc93   : > { %v2096_v55 = vpop.eup %2095 }
 0xc94   : > { %v1539_v1 = vsel %vm850_vm6, %v2096_v55, 0.0 }
 0xc95   : > { %v2098_v2 = vpop.eup %2097  ;;  %1540 = vadd.xlane.f32.xlu0 %v1539_v1 }
 0xc96   : > { %v1542_v57 = vsel %vm850_vm6, %v2098_v2, 0.0 }
 0xc97   : > { %1543 = vadd.xlane.f32.xlu1 %v1542_v57 }
 0xca8   : > { %1554 = vrot.lane.b32.xlu1 %v2722_v13, %s2219_s12 }
 0xcab   : > { %1552 = vrot.lane.b32.xlu0 %v2718_v14, %s2219_s12  ;;  %s2109_s12 = scalar_lea.vmem %s2108_s27, 512 }
 0xcac   : > { %1316 = vrot.lane.b32.xlu1 %v1314_v8, %s2209_s28 }
 0xcaf   : > { %1460 = vrot.lane.b32.xlu0 %v1458_v48, %s2210_s17 }
 0xd22   : > { %v1541_v3 = vpop.xlane.xlu0 %1540 }
 0xd23   : > { %2099 = vrcp.f32 %v1541_v3 }
 0xd24   : > { %v1544_v5 = vpop.xlane.xlu1 %1543 }
 0xd25   : > { %2101 = vrcp.f32 %v1544_v5 }
 0xd26   : > { %v1553_v9 = vpop.permute.xlu0 %1552 }
 0xd27   : > { %1952 = vmatpush3.bf16.msra.mxu1 %v1553_v9 }
 0xd28   : > { %v1555_v11 = vpop.permute.xlu1 %1554  ;;  %1953 = vmatprep.subr.bf16.mxu1 %v2207_v38 }
 0xd2a   : > { %v1461_v4 = vpop.permute.xlu0 %1460 }
 0xd2b   : > { %1954 = vmatpush3.bf16.msra.mxu1 %v1555_v11 }
 0xd2c   : > { %v1317_v14 = vpop.permute.xlu1 %1316  ;;  %1959 = vmatprep.subr.bf16.mxu1 %v2207_v38 }
 0xd2d   : > { %v2100_v13 = vpop.eup %2099  ;;  %1320 = vst.msk [vmem:[#allocation4] sm:$0xff] %vm1319_vm13, %v1317_v14 }
 0xd2e   : > { %1464 = vst.msk [vmem:[#allocation4] sm:$0xff] %vm1463_vm14, %v1461_v4  ;;  %v1547_v8 = vmul.f32 %v2100_v13, %v2096_v55 }
 0xd2f   : > { %v2102_v6 = vpop.eup %2101 }
 0xd30   : > { %v1548_v12 = vmul.f32 %v2102_v6, %v2098_v2 }
 0xd32   : > { %v1549_v15 = vpack.c.bf16 %v1548_v12, %v1547_v8 }
 0xd34   : > { %1956 = vmatmul.mubr.msk.bf16.vlgmr.msra.gmra.mrb[12].mxu1 %vm850_vm6, %v1549_v15 }
 0xd35   : > { %1963 = vmatprep.mubr.msk.bf16.mxu1 %vm2208_vm5, %v2207_v38  ;;  %1960 = vmatpush3.bf16.msra.mxu1 %v2069_v16 }
 0xd36   : > { %1961 = vmatprep.subr.bf16.mxu1 %v2207_v38 }
 0xd39   : > { %1962 = vmatpush3.bf16.msra.mxu1 %v2070_v17 }
 0xe07   : > { %v1595_v18 = vpop.f32.mrb[12].mxu1 }
 0xe08   : > { %v1957_v19 = vpop.f32.mrb[13].mxu1 }
 0xe09   : > { %v1598_v20 = vpop.f32.mrb[14].mxu1 }
 0xe0a   : > { %v1602_v21 = vpack.c.bf16 %v1598_v20, %v1595_v18  ;;  %v1958_v22 = vpop.f32.mrb[15].mxu1 }
 0xe0c   : > { %1604 = vrot.lane.b32.xlu1 %v1602_v21, %s2211_s26  ;;  %s2103_s26 = scalar_lea.vmem %s2837_s21, 256 }
 0xe0d   : > { %p2104_p1 = scmp.ne.s32.totalorder %s2837_s21, %s2103_s26  ;;  %p2111_p6 = scmp.lt.s32.totalorder %s2109_s12, %s2103_s26 }
 0xe0f   : > { %p2105_p2 = pnand %p2104_p1, %p2323_p3  ;;  %p2112_p7 = por %p2111_p6, %p2110_p5 }
 0xe11   : > { %p2106_p4 = pneg %p2105_p2 }
 0xe13   : > { %p2113_p9 = pnand %p2112_p7, %p2106_p4 }
 0xe7e   : > { %v1605_v23 = vpop.permute.xlu1 %1604 }
 0xe7f   : > { %1608 = vst.msk [vmem:[#allocation4] sm:$0xff] %vm1607_vm15, %v1605_v23 }
 0xe86   : > { %v1609_v24 = vld [vmem:[#allocation4] sm:$0xff] }
 0xe87   : > { %1964 = vmatmul.mubr.msk.bf16.vlgmr.msra.gmra.mrb[16].mxu1 %vm850_vm6, %v1609_v24 }
 0xf5a   : > { %v1663_v38 = vpop.f32.mrb[16].mxu1 }
 0xf5b   : > { %1670 = vst.msk [vmem:[%s2361_s30] sm:$0xff] %vm850_vm6, %v1663_v38  ;;  %v1965_v37 = vpop.f32.mrb[17].mxu1 }
 0xf5c   : > { %v1666_v25 = vpop.f32.mrb[18].mxu1 }
 0xf5d   : > { %1671 = vst.msk [vmem:[%s2361_s30 + $0x8] sm:$0xff] %vm850_vm6, %v1666_v25  ;;  %v1966_v39 = vpop.f32.mrb[19].mxu1 }
 0xf5e   : > { %2116 = shalt.err (!%p2113_p9)
}
 0xf5f   : > { %s2117_s30 = scalar_lea.hbm %s2833_s20, 256  ;;  %s2121_s24 = scalar_lea.hbm %s2905_s9, 1024 }
 0xf60   : > { %p2118_p10 = scmp.ne.s32.totalorder %s2833_s20, %s2117_s30  ;;  %p2122_p13 = scmp.lt.u32.totalorder %s2833_s20, %s2905_s9 }
 0xf61   : > { %p2123_p0 = scmp.lt.u32.totalorder %s2121_s24, %s2117_s30  ;;  %p2125_p2 = scmp.lt.u32.totalorder %s2117_s30, %s2833_s20 }
 0xf62   : > { %p2119_p11 = pnand %p2118_p10, %p2323_p3 }
 0xf63   : > { %p2124_p1 = por %p2123_p0, %p2122_p13 }
 0xf64   : > { %p2120_p12 = pneg %p2119_p11 }
 0xf65   : > { %p2126_p4 = por %p2125_p2, %p2124_p1 }
 0xf67   : > { %p2127_p5 = pnand %p2126_p4, %p2120_p12 }
 0xf69   : > { %2130 = shalt.err (!%p2127_p5)
}
 0xf6a   : > { %s2221_s25 = smov 128  }
 0xf6b   : > { %1967 = dma.vmem_to_hbm [thread:$0]  (%p2323_p3), %s2837_s21, 256, %s2833_s20, %s2843_s29, %s2221_s25, %s2221_s25, %s2209_s28  }
 0xf6c PF: > { %s2928_s18 = sld [smem:[#allocation12_spill]]  ;;  %s2929_s11 = sld [smem:[#allocation8_spill]] }
 0xf72   : > { %p1973_p6 = scmp.ge.s32.totalorder %s2928_s18, 2  ;;  %s1703_s13 = sand.u32 1, %s2929_s11  }
 0xf73   : > { %s1704_s26 = scalar_lea.sflag [#allocation6], %s1703_s13 }
 0xf74   : > { %p1970_p7 = pnand %p1973_p6, %p2332_p8 }
 0xf76   : > { %2164 = dma.done.wait (!%p1970_p7), %s1704_s26, 256  }
 0xf77   : > { %2166 = vsyncadd (!%p1970_p7), %s1704_s26, 4294967040  ;;  %s22_s16 = sadd.s32 1, %s2928_s18   ;;  %s2931_s22 = sld [smem:[#allocation9_spill]] }
 0xf78   : > { %p19_p9 = scmp.ge.s32.totalorder %s22_s16, 6   ;;  %s2932_s11 = sld [smem:[#allocation16_spill]] }
 0xf79   : > { %s2933_s12 = sld [smem:[#allocation10_spill]]  ;;  %s2934_s13 = sld [smem:[#allocation11_spill]] }
 0xf7a   : > { %s2935_s14 = sld [smem:[#allocation13_spill]]  ;;  %s2936_s15 = sld [smem:[#allocation14_spill]] }
 0xf7b   : > { %s2937_s30 = smov %s2173_s10  ;;  %21 = sbr.rel (!%p19_p9) target bundleno = 5 (0x5), region = 101 }
 0xf7d   : > { %s2938_s10 = smov %s2931_s22 }
 0xf82   :  { %1709 = vsyncpa [#allocation6], 1 }
 0xf83   :  { %1711 = vsyncpa [#allocation6 + $0x1], 1 }

// kernel: tpu_custom_call.1
= control target key start
LH: loop header
LB: loop body
LE: loop exit
PB: predicated region body
PF: predicated region fallthrough
CT: control target
= control target key end

     0   :  { %14 = vsyncpa [#allocation6], 0  ;;  %s2896_s0 = inlined_call_operand.vmem [shape: bf16[2,32,32], index: 0, kind: input, shape index: {}]   ;;  %s2897_s1 = inlined_call_operand.vmem [shape: bf16[2,32,32], index: 1, kind: input, shape index: {}]   ;;  %s2898_s2 = inlined_call_operand.vmem [shape: bf16[32,32], index: 2, kind: input, shape index: {}]   ;;  %s2899_s3 = inlined_call_operand.vmem [shape: bf16[32,32], index: 3, kind: input, shape index: {}]   ;;  %s2900_s4 = inlined_call_operand.vmem [shape: bf16[32,32], index: 4, kind: input, shape index: {}]   ;;  %s2901_s5 = inlined_call_operand.vmem [shape: bf16[32,32], index: 5, kind: input, shape index: {}]   ;;  %s2902_s6 = inlined_call_operand.vmem [shape: f32[32,8], index: 6, kind: input, shape index: {}]   ;;  %s2903_s7 = inlined_call_operand.vmem [shape: f32[32,8], index: 7, kind: input, shape index: {}]   ;;  %s2904_s8 = inlined_call_operand.vmem [shape: f32[32,8], index: 8, kind: input, shape index: {}]   ;;  %s2905_s9 = inlined_call_operand.hbm [shape: f32[2,32,32], index: 9, kind: output, shape index: {}]  }
   0x1   :  { %16 = vsyncpa [#allocation6 + $0x1], 0  ;;  %s2272_s30 = smov 0   ;;  %s2274_s10 = smov 0  }
   0x2   :  { %s2276_s11 = smov 0   ;;  %s2278_s12 = smov 0  }
   0x3   :  { %s2280_s13 = smov 0   ;;  %s2282_s14 = smov 0  }
   0x4   :  { %s2284_s15 = smov 0   ;;  %s2286_s16 = smov 0  }
   0x5 LB: > { %2916 = sst [smem:[#allocation8_spill]] %s2169_s30  ;;  %s1788_s17 = sadd.s32 4294967295, %s2197_s16   ;;  %s2197_s16 = sphi %s2286_s16, %s22_s16   ;;  %s2193_s15 = sphi %s2284_s15, %s2936_s15   ;;  %s2189_s14 = sphi %s2282_s14, %s2935_s14   ;;  %s2185_s13 = sphi %s2280_s13, %s2934_s13   ;;  %s2181_s12 = sphi %s2278_s12, %s2933_s12   ;;  %s2177_s11 = sphi %s2276_s11, %s2932_s11   ;;  %s2173_s10 = sphi %s2274_s10, %s2938_s10   ;;  %s2169_s30 = sphi %s2272_s30, %s2937_s30  }
   0x6   : > { %2917 = sst [smem:[#allocation9_spill]] %s2177_s11  ;;  %s1789_s18 = sadd.s32 4294967294, %s2197_s16  }
   0x7   : > { %2918 = sst [smem:[#allocation10_spill]] %s2189_s14  ;;  %s31_s19 = sadd.s32 1, %s2189_s14 }
   0x8   : > { %2919 = sst [smem:[#allocation11_spill]] %s2193_s15  ;;  %p32_p0 = scmp.ge.s32.totalorder %s31_s19, 2 }
   0x9   : > { %2920 = sst [smem:[#allocation12_spill]] %s2197_s16  ;;  %s34_s20 = sadd.s32 1, %s2193_s15 }
   0xa   : > { %p254_p1 = scmp.ne.s32.totalorder %s2177_s11, %s2173_s10  ;;  %p255_p2 = scmp.eq.s32.totalorder %s1788_s17, 3 }
   0xb   : > { %s2940_s19 = smov (%p32_p0, %s31_s19), 0  ;;  %s2942_s20 = smov (!%p32_p0, %s34_s20), %s2193_s15 }
   0xc   : > { %2921 = sst [smem:[#allocation13_spill]] %s2940_s19  ;;  %s240_s21 = ssub.s32 %s2189_s14, %s2940_s19 }
   0xd   : > { %p2323_p3 = por %p255_p2, %p254_p1  ;;  %p36_p4 = scmp.ge.s32.totalorder %s2942_s20, 2 }
   0xe   : > { %p260_p5 = scmp.ne.s32.totalorder %s2173_s10, %s2169_s30  ;;  %p261_p6 = scmp.eq.s32.totalorder %s1789_s18, 3 }
   0xf   : > { %p1792_p7 = scmp.ge.s32.totalorder %s2197_s16, 1  ;;  %s2944_s20 = smov (%p36_p4, %s2942_s20), 0 }
  0x10   : > { %2923 = sst [smem:[#allocation14_spill]] %s2944_s20  ;;  %p2332_p8 = por %p261_p6, %p260_p5 }
  0x11   : > { %p321_p9 = scmp.lt.s32.totalorder %s2197_s16, 5  ;;  %s239_s24 = ssub.s32 %s2193_s15, %s2944_s20 }
  0x12   : > { %s2924_s23 = scalar_select %p2332_p8, 1, 0 }
  0x13   : > { %s244_s25 = sadd.s32 1, %s2177_s11  ;;  %s241_s26 = sor.u32 %s240_s21, %s239_s24 }
  0x14   : > { %2925 = sst [smem:[#allocation15_spill]] %s2924_s23  ;;  %p322_p10 = pnand %p1792_p7, %p321_p9 }
  0x15   : > { %p242_p11 = scmp.eq.s32.totalorder %s241_s26, 0  ;;  %s2913_s28 = sand.u32 (!%p322_p10), 1, %s2173_s10  }
  0x16   : > { %325 = sbr.rel (%p322_p10) target bundleno = 3948 (0xf6c), region = 56  ;;  %s2345_s29 = sshll.u32 (!%p322_p10), %s2181_s12, 1 }
  0x17   : > { %s2341_s27 = scalar_select %p242_p11, %s2177_s11, %s244_s25  }
  0x18   : > { %s1793_s17 = sshll.u32 (!%p322_p10), %s2913_s28, 4  ;;  %p367_p12 = scmp.lt.s32.totalorder (!%p322_p10), %s2185_s13, 1 }
  0x19   : > { %2926 = sst [smem:[#allocation16_spill]] %s2341_s27  ;;  %p369_p13 = scmp.lt.s32.totalorder (!%p322_p10), %s2345_s29, 3 }
  0x1a   : > { %s2361_s30 = scalar_lea.vmem (!%p322_p10), [#allocation5], %s1793_s17  ;;  %p1799_p0 = scmp.ne.s32.totalorder (!%p322_p10), %s2181_s12, 0 }
  0x1d   : > { %s368_s18 = scalar_select %p367_p12, %s2185_s13, 1 }
  0x1e   : > { %s370_s21 = scalar_select %p369_p13, %s2345_s29, 3 }
  0x1f   : > { %s1795_s24 = sshll.u32 %s368_s18, 2  ;;  %s1832_s25 = sshll.u32 %s368_s18, 4  ;;  %v2060_v0 = vld [vmem:[%s2899_s3] sm:$0xff] (!%p1799_p0)   ;;  %v2061_v1 = vld [vmem:[%s2899_s3 + $0x8] sm:$0xff] (!%p1799_p0)   ;;  %vm417_vm0 = vcmask (!%p1799_p0), 261120   ;;  %v2379_v4 = vld [vmem:[%s2902_s6 + $0x10] sm:$0xff] (!%p1799_p0) }
  0x20   : > { %s372_s26 = sadd.s32 %s1795_s24, %s370_s21  ;;  %s380_s15 = scalar_lea.vmem %s2897_s1, %s1832_s25  ;;  %1871 = vmatprep.subr.bf16.mxu0 (!%p1799_p0), %v2060_v0  ;;  %v2374_v3 = vld [vmem:[%s2902_s6] sm:$0xff] (!%p1799_p0)  ;;  %v2390_v6 = vld [vmem:[%s2902_s6 + $0x8] sm:$0xff] (!%p1799_p0)  ;;  %v2395_v7 = vld [vmem:[%s2902_s6 + $0x18] sm:$0xff] (!%p1799_p0)  ;;  %vm582_vm1 = vcmask (!%p1799_p0), 64512   ;;  %vm587_vm2 = vcmask (!%p1799_p0), 130048   ;;  %vm592_vm3 = vcmask (!%p1799_p0), 195584  }
  0x21   : > { %s1796_s14 = sshll.u32 %s372_s26, 2  ;;  %386 = sbr.rel (%p1799_p0) target bundleno = 620 (0x26c), region = 60  ;;  %v2062_v2 = vld [vmem:[%s380_s15] sm:$0xff] (!%p1799_p0)   ;;  %1872 = vmatpush3.bf16.msra.mxu0 (!%p1799_p0), %v2060_v0  ;;  %v2385_v5 = vld [vmem:[%s380_s15 + $0x8] sm:$0xff] (!%p1799_p0)   ;;  %v656_v10 = vld [vmem:[%s2903_s7 + $0x18] sm:$0xff] (!%p1799_p0)  ;;  %vm713_vm4 = vcmask (!%p1799_p0), 1047808  }
  0x22   : > { %s2359_s23 = scalar_lea.vmem %s2896_s0, %s1796_s14  ;;  %1873 = vmatprep.subr.bf16.mxu0 (!%p1799_p0), %v2061_v1  ;;  %1875 = vmatprep.mubr.msk.bf16.mxu0 (!%p1799_p0), %vm417_vm0, %v2062_v2  ;;  %s2199_s16 = smov (!%p1799_p0), 8   ;;  %v2423_v8 = vld [vmem:[%s2903_s7 + $0x8] sm:$0xff] (!%p1799_p0)  ;;  %v653_v9 = vld [vmem:[%s2903_s7] sm:$0xff] (!%p1799_p0)  ;;  %v655_v11 = vld [vmem:[%s2903_s7 + $0x10] sm:$0xff] (!%p1799_p0) }
  0x23   : > { %605 = vrot.lane.b32.xlu0 (!%p1799_p0), %v2374_v3, %s2199_s16  ;;  %609 = vrot.lane.b32.xlu1 (!%p1799_p0), %v2379_v4, %s2199_s16  ;;  %s2200_s15 = smov (!%p1799_p0), 16   ;;  %s2201_s25 = smov (!%p1799_p0), 24   ;;  %v2064_v47 = vld [vmem:[%s2900_s4] sm:$0xff] (!%p1799_p0)   ;;  %v2065_v54 = vld [vmem:[%s2900_s4 + $0x8] sm:$0xff] (!%p1799_p0)  }
  0x24   : > { %1883 = vmatprep.mubr.msk.bf16.mxu1 (!%p1799_p0), %vm417_vm0, %v2062_v2  ;;  %s2202_s28 = smov (!%p1799_p0), 32   ;;  %1879 = vmatprep.subr.bf16.mxu1 (!%p1799_p0), %v2064_v47  ;;  %s2203_s26 = smov (!%p1799_p0), 1  }
  0x25   : > { %1874 = vmatpush3.bf16.msra.mxu0 (!%p1799_p0), %v2061_v1  ;;  %1880 = vmatpush3.bf16.msra.mxu1 (!%p1799_p0), %v2064_v47  ;;  %s2204_s11 = smov (!%p1799_p0), 31  }
  0x26   : > { %1881 = vmatprep.subr.bf16.mxu1 (!%p1799_p0), %v2065_v54 }
  0x27   : > { %607 = vrot.lane.b32.xlu0 (!%p1799_p0), %v2390_v6, %s2199_s16  ;;  %611 = vrot.lane.b32.xlu1 (!%p1799_p0), %v2395_v7, %s2199_s16 }
  0x28   : > { %1876 = vmatmul.mubr.msk.bf16.vlgmr.msra.gmra.mrb[0].mxu0 %vm417_vm0, %v2385_v5 }
  0x29   : > { %1882 = vmatpush3.bf16.msra.mxu1 %v2065_v54 }
  0x2b   : > { %617 = vrot.lane.b32.xlu0 %v2374_v3, %s2200_s15  ;;  %619 = vrot.lane.b32.xlu1 %v2390_v6, %s2200_s15 }
  0x2c   : > { %1884 = vmatmul.mubr.msk.bf16.vlgmr.msra.gmra.mrb[0].mxu1 %vm417_vm0, %v2385_v5 }
  0x2f   : > { %621 = vrot.lane.b32.xlu0 %v2379_v4, %s2200_s15  ;;  %623 = vrot.lane.b32.xlu1 %v2395_v7, %s2200_s15 }
  0x33   : > { %629 = vrot.lane.b32.xlu0 %v2374_v3, %s2201_s25  ;;  %631 = vrot.lane.b32.xlu1 %v2390_v6, %s2201_s25 }
  0x37   : > { %633 = vrot.lane.b32.xlu0 %v2379_v4, %s2201_s25  ;;  %635 = vrot.lane.b32.xlu1 %v2395_v7, %s2201_s25 }
  0x3b   : > { %663 = vrot.lane.b32.xlu1 %v2423_v8, %s2199_s16  ;;  %661 = vrot.lane.b32.xlu0 %v653_v9, %s2199_s16 }
  0x3f   : > { %667 = vrot.lane.b32.xlu1 %v656_v10, %s2199_s16  ;;  %665 = vrot.lane.b32.xlu0 %v655_v11, %s2199_s16 }
  0x43   : > { %675 = vrot.lane.b32.xlu1 %v2423_v8, %s2200_s15  ;;  %673 = vrot.lane.b32.xlu0 %v653_v9, %s2200_s15 }
  0x47   : > { %679 = vrot.lane.b32.xlu1 %v656_v10, %s2200_s15  ;;  %677 = vrot.lane.b32.xlu0 %v655_v11, %s2200_s15 }
  0x4b   : > { %687 = vrot.lane.b32.xlu1 %v2423_v8, %s2201_s25  ;;  %685 = vrot.lane.b32.xlu0 %v653_v9, %s2201_s25 }
  0x95   : > { %v606_v12 = vpop.permute.xlu0 %605  ;;  %v610_v13 = vpop.permute.xlu1 %609 }
  0x96   : > { %v641_v40 = vsel %vm582_vm1, %v2374_v3, %v606_v12  ;;  %v643_v43 = vsel %vm582_vm1, %v2379_v4, %v610_v13  ;;  %v2535_v12 = vld [vmem:[%s2904_s8 + $0x10] sm:$0xff]  ;;  %v2542_v13 = vld [vmem:[%s2904_s8 + $0x18] sm:$0xff] }
  0x99   : > { %v608_v14 = vpop.permute.xlu0 %607  ;;  %v612_v15 = vpop.permute.xlu1 %611 }
  0x9a   : > { %v642_v41 = vsel %vm582_vm1, %v2390_v6, %v608_v14  ;;  %v644_v45 = vsel %vm582_vm1, %v2395_v7, %v612_v15 }
  0x9d   : > { %v618_v16 = vpop.permute.xlu0 %617  ;;  %v620_v17 = vpop.permute.xlu1 %619 }
  0x9e   : > { %v645_v42 = vsel %vm587_vm2, %v641_v40, %v618_v16  ;;  %v646_v44 = vsel %vm587_vm2, %v642_v41, %v620_v17 }
  0xa1   : > { %v622_v18 = vpop.permute.xlu0 %621  ;;  %v624_v19 = vpop.permute.xlu1 %623 }
  0xa2   : > { %v647_v48 = vsel %vm587_vm2, %v643_v43, %v622_v18  ;;  %v648_v51 = vsel %vm587_vm2, %v644_v45, %v624_v19 }
  0xa5   : > { %v630_v20 = vpop.permute.xlu0 %629  ;;  %v632_v21 = vpop.permute.xlu1 %631 }
  0xa6   : > { %v649_v46 = vsel %vm592_vm3, %v645_v42, %v630_v20  ;;  %v650_v49 = vsel %vm592_vm3, %v646_v44, %v632_v21 }
  0xa9   : > { %v634_v22 = vpop.permute.xlu0 %633  ;;  %v636_v23 = vpop.permute.xlu1 %635 }
  0xaa   : > { %v651_v52 = vsel %vm592_vm3, %v647_v48, %v634_v22  ;;  %v652_v57 = vsel %vm592_vm3, %v648_v51, %v636_v23 }
  0xad   : > { %v664_v24 = vpop.permute.xlu1 %663  ;;  %v662_v25 = vpop.permute.xlu0 %661 }
  0xae   : > { %v697_v50 = vsel %vm582_vm1, %v653_v9, %v662_v25  ;;  %v698_v53 = vsel %vm582_vm1, %v2423_v8, %v664_v24 }
  0xb1   : > { %v668_v26 = vpop.permute.xlu1 %667  ;;  %v666_v27 = vpop.permute.xlu0 %665 }
  0xb2   : > { %v700_v30 = vsel %vm582_vm1, %v656_v10, %v668_v26  ;;  %v699_v31 = vsel %vm582_vm1, %v655_v11, %v666_v27 }
  0xb5   : > { %v676_v28 = vpop.permute.xlu1 %675  ;;  %v674_v29 = vpop.permute.xlu0 %673 }
  0xb6   : > { %v701_v55 = vsel %vm587_vm2, %v697_v50, %v674_v29  ;;  %v702_v58 = vsel %vm587_vm2, %v698_v53, %v676_v28 }
  0xb9   : > { %v680_v32 = vpop.permute.xlu1 %679  ;;  %v678_v33 = vpop.permute.xlu0 %677 }
  0xba   : > { %v2450_v34 = vsel %vm587_vm2, %v700_v30, %v680_v32  ;;  %v2453_v35 = vsel %vm587_vm2, %v699_v31, %v678_v33 }
  0xbd   : > { %v686_v56 = vpop.permute.xlu0 %685  ;;  %v688_v59 = vpop.permute.xlu1 %687 }
  0xbe   : > { %v705_v60 = vsel %vm592_vm3, %v701_v55, %v686_v56  ;;  %v706_v61 = vsel %vm592_vm3, %v702_v58, %v688_v59 }
  0xfb   : > { %v2455_v36 = vpop.f32.mrb[0].mxu0 }
  0xfc   : > { %720 = vrot.lane.b32.xlu0 %v2455_v36, %s2202_s28  ;;  %v2459_v37 = vpop.f32.mrb[1].mxu0 }
  0xfd   : > { %v2461_v38 = vpop.f32.mrb[2].mxu0 }
  0xfe   : > { %723 = vrot.lane.b32.xlu1 %v2461_v38, %s2202_s28  ;;  %v2465_v39 = vpop.f32.mrb[3].mxu0 }
  0xff   : > { %v1885_v21 = vpop.f32.mrb[0].mxu1 }
 0x100   : > { %714 = vrot.lane.b32.xlu0 %v2459_v37, %s2202_s28  ;;  %v523_v23 = vpop.f32.mrb[1].mxu1 }
 0x101   : > { %v1886_v26 = vpop.f32.mrb[2].mxu1 }
 0x102   : > { %717 = vrot.lane.b32.xlu1 %v2465_v39, %s2202_s28  ;;  %v526_v28 = vpop.f32.mrb[3].mxu1  ;;  %v823_v31 = vpack.c.bf16 %v1886_v26, %v1885_v21 }
 0x103   : > { %v822_v32 = vpack.c.bf16 %v526_v28, %v523_v23 }
 0x104   : > { %689 = vrot.lane.b32.xlu0 %v655_v11, %s2201_s25  ;;  %v2528_v11 = vld [vmem:[%s2904_s8 + $0x8] sm:$0xff]  ;;  %825 = vst.msk [vmem:[#allocation3 + $0x8] sm:$0xff] %vm417_vm0, %v823_v31 }
 0x105   : > { %824 = vst.msk [vmem:[#allocation3] sm:$0xff] %vm417_vm0, %v822_v32 }
 0x106   : > { %691 = vrot.lane.b32.xlu1 %v656_v10, %s2201_s25  ;;  %v2523_v10 = vld [vmem:[%s2904_s8] sm:$0xff] }
 0x108   : > { %742 = vrot.lane.b32.xlu0 %v649_v46, %s2203_s26 }
 0x10a   : > { %744 = vrot.lane.b32.xlu1 %v650_v49, %s2203_s26 }
 0x10c   : > { %746 = vrot.lane.b32.xlu0 %v651_v52, %s2203_s26 }
 0x10e   : > { %748 = vrot.lane.b32.xlu1 %v652_v57, %s2203_s26 }
 0x110   : > { %782 = vrot.lane.b32.xlu0 %v705_v60, %s2204_s11 }
 0x112   : > { %784 = vrot.lane.b32.xlu1 %v706_v61, %s2204_s11 }
 0x16e   : > { %v721_v62 = vpop.permute.xlu0 %720 }
 0x16f   : > { %v722_v63 = vsel %vm713_vm4, %v721_v62, %v2455_v36 }
 0x170   : > { %730 = vrot.lane.b32.xlu0 %v722_v63, %s2202_s28  ;;  %v724_v0 = vpop.permute.xlu1 %723 }
 0x171   : > { %v725_v1 = vsel %vm713_vm4, %v724_v0, %v2461_v38 }
 0x172   : > { %v715_v2 = vpop.permute.xlu0 %714  ;;  %732 = vrot.lane.b32.xlu1 %v725_v1, %s2202_s28 }
 0x173   : > { %v716_v3 = vsel %vm713_vm4, %v715_v2, %v2459_v37 }
 0x174   : > { %726 = vrot.lane.b32.xlu0 %v716_v3, %s2202_s28  ;;  %v718_v4 = vpop.permute.xlu1 %717 }
 0x175   : > { %v719_v5 = vsel %vm713_vm4, %v718_v4, %v2465_v39 }
 0x176   : > { %v690_v6 = vpop.permute.xlu0 %689  ;;  %728 = vrot.lane.b32.xlu1 %v719_v5, %s2202_s28 }
 0x177   : > { %v707_v7 = vsel %vm592_vm3, %v2453_v35, %v690_v6 }
 0x178   : > { %786 = vrot.lane.b32.xlu0 %v707_v7, %s2204_s11  ;;  %v692_v8 = vpop.permute.xlu1 %691 }
 0x179   : > { %v708_v9 = vsel %vm592_vm3, %v2450_v34, %v692_v8 }
 0x17a   : > { %788 = vrot.lane.b32.xlu1 %v708_v9, %s2204_s11  ;;  %v743_v14 = vpop.permute.xlu0 %742 }
 0x17c   : > { %546 = vrot.lane.b32.xlu0 %v2523_v10, %s2199_s16  ;;  %v745_v15 = vpop.permute.xlu1 %744 }
 0x17e   : > { %548 = vrot.lane.b32.xlu1 %v2528_v11, %s2199_s16  ;;  %v747_v16 = vpop.permute.xlu0 %746 }
 0x180   : > { %550 = vrot.lane.b32.xlu0 %v2535_v12, %s2199_s16  ;;  %v749_v17 = vpop.permute.xlu1 %748 }
 0x182   : > { %552 = vrot.lane.b32.xlu1 %v2542_v13, %s2199_s16  ;;  %v783_v18 = vpop.permute.xlu0 %782  ;;  %s2205_s16 = smov 127  }
 0x184   : > { %558 = vrot.lane.b32.xlu0 %v2523_v10, %s2200_s15  ;;  %v785_v19 = vpop.permute.xlu1 %784 }
 0x186   : > { %560 = vrot.lane.b32.xlu1 %v2528_v11, %s2200_s15 }
 0x188   : > { %562 = vrot.lane.b32.xlu0 %v2535_v12, %s2200_s15 }
 0x18a   : > { %564 = vrot.lane.b32.xlu1 %v2542_v13, %s2200_s15  ;;  %s2206_s15 = smov 97  }
 0x18c   : > { %570 = vrot.lane.b32.xlu0 %v2523_v10, %s2201_s25 }
 0x18e   : > { %572 = vrot.lane.b32.xlu1 %v2528_v11, %s2201_s25 }
 0x190   : > { %574 = vrot.lane.b32.xlu0 %v2535_v12, %s2201_s25 }
 0x192   : > { %576 = vrot.lane.b32.xlu1 %v2542_v13, %s2201_s25 }
 0x1e2   : > { %v731_v20 = vpop.permute.xlu0 %730 }
 0x1e3   : > { %v736_v22 = vsel %vm713_vm4, %v731_v20, %v2455_v36 }
 0x1e4   : > { %v756_v24 = vmul.f32 %v747_v16, %v736_v22  ;;  %v733_v25 = vpop.permute.xlu1 %732 }
 0x1e5   : > { %v737_v27 = vsel %vm713_vm4, %v733_v25, %v2461_v38 }
 0x1e6   : > { %v757_v29 = vmul.f32 %v749_v17, %v737_v27  ;;  %766 = vrot.lane.b32.xlu0 %v756_v24, %s2205_s16  ;;  %v727_v30 = vpop.permute.xlu0 %726 }
 0x1e7   : > { %v734_v33 = vsel %vm713_vm4, %v727_v30, %v2459_v37 }
 0x1e8   : > { %v754_v34 = vmul.f32 %v743_v14, %v734_v33  ;;  %768 = vrot.lane.b32.xlu1 %v757_v29, %s2205_s16  ;;  %v729_v35 = vpop.permute.xlu1 %728  ;;  %v794_v42 = vmul.f32 %v783_v18, %v734_v33 }
 0x1e9   : > { %v735_v40 = vsel %vm713_vm4, %v729_v35, %v2465_v39 }
 0x1ea   : > { %v755_v41 = vmul.f32 %v745_v15, %v735_v40  ;;  %762 = vrot.lane.b32.xlu0 %v754_v34, %s2205_s16  ;;  %v787_v43 = vpop.permute.xlu0 %786  ;;  %v795_v44 = vmul.f32 %v785_v19, %v735_v40 }
 0x1eb   : > { %v796_v46 = vmul.f32 %v787_v43, %v736_v22 }
 0x1ec   : > { %764 = vrot.lane.b32.xlu1 %v755_v41, %s2205_s16  ;;  %v789_v45 = vpop.permute.xlu1 %788 }
 0x1ed   : > { %v797_v47 = vmul.f32 %v789_v45, %v737_v27 }
 0x1ee   : > { %802 = vrot.lane.b32.xlu0 %v794_v42, %s2206_s15  ;;  %v547_v48 = vpop.permute.xlu0 %546 }
 0x1ef   : > { %v583_v59 = vsel %vm582_vm1, %v2523_v10, %v547_v48 }
 0x1f0   : > { %804 = vrot.lane.b32.xlu1 %v795_v44, %s2206_s15  ;;  %v549_v49 = vpop.permute.xlu1 %548 }
 0x1f1   : > { %v584_v60 = vsel %vm582_vm1, %v2528_v11, %v549_v49 }
 0x1f2   : > { %806 = vrot.lane.b32.xlu0 %v796_v46, %s2206_s15  ;;  %v551_v50 = vpop.permute.xlu0 %550 }
 0x1f3   : > { %v585_v1 = vsel %vm582_vm1, %v2535_v12, %v551_v50 }
 0x1f4   : > { %808 = vrot.lane.b32.xlu1 %v797_v47, %s2206_s15  ;;  %v553_v51 = vpop.permute.xlu1 %552 }
 0x1f5   : > { %v586_v2 = vsel %vm582_vm1, %v2542_v13, %v553_v51 }
 0x1f6   : > { %v559_v52 = vpop.permute.xlu0 %558 }
 0x1f7   : > { %v588_v63 = vsel %vm587_vm2, %v583_v59, %v559_v52 }
 0x1f8   : > { %v561_v53 = vpop.permute.xlu1 %560 }
 0x1f9   : > { %v589_v0 = vsel %vm587_vm2, %v584_v60, %v561_v53 }
 0x1fa   : > { %v563_v54 = vpop.permute.xlu0 %562 }
 0x1fb   : > { %v590_v7 = vsel %vm587_vm2, %v585_v1, %v563_v54 }
 0x1fc   : > { %v565_v55 = vpop.permute.xlu1 %564 }
 0x1fd   : > { %v591_v8 = vsel %vm587_vm2, %v586_v2, %v565_v55 }
 0x1fe   : > { %v571_v56 = vpop.permute.xlu0 %570 }
 0x1ff   : > { %v593_v4 = vsel %vm592_vm3, %v588_v63, %v571_v56 }
 0x200   : > { %v573_v57 = vpop.permute.xlu1 %572  ;;  %v709_v10 = vmul.f32 %v593_v4, %v2459_v37 }
 0x201   : > { %v594_v5 = vsel %vm592_vm3, %v589_v0, %v573_v57 }
 0x202   : > { %v575_v58 = vpop.permute.xlu0 %574  ;;  %v710_v11 = vmul.f32 %v594_v5, %v2465_v39 }
 0x203   : > { %v595_v12 = vsel %vm592_vm3, %v590_v7, %v575_v58 }
 0x204   : > { %v577_v61 = vpop.permute.xlu1 %576  ;;  %v711_v18 = vmul.f32 %v2455_v36, %v595_v12 }
 0x205   : > { %v596_v14 = vsel %vm592_vm3, %v591_v8, %v577_v61 }
 0x206   : > { %v712_v19 = vmul.f32 %v2461_v38, %v596_v14 }
 0x258   : > { %v767_v62 = vpop.permute.xlu0 %766 }
 0x259   : > { %v776_v23 = vadd.f32 %v767_v62, %v711_v18 }
 0x25a   : > { %v769_v3 = vpop.permute.xlu1 %768 }
 0x25b   : > { %v777_v24 = vadd.f32 %v769_v3, %v712_v19 }
 0x25c   : > { %v763_v6 = vpop.permute.xlu0 %762 }
 0x25d   : > { %v774_v15 = vadd.f32 %v763_v6, %v709_v10 }
 0x25e   : > { %v765_v9 = vpop.permute.xlu1 %764 }
 0x25f   : > { %v775_v16 = vadd.f32 %v765_v9, %v710_v11 }
 0x260   : > { %v803_v13 = vpop.permute.xlu0 %802 }
 0x261   : > { %v814_v20 = vadd.f32 %v803_v13, %v774_v15 }
 0x262   : > { %v805_v17 = vpop.permute.xlu1 %804 }
 0x263   : > { %v815_v21 = vadd.f32 %v805_v17, %v775_v16 }
 0x264   : > { %v807_v22 = vpop.permute.xlu0 %806 }
 0x265   : > { %v818_v37 = vpack.c.bf16 %v815_v21, %v814_v20  ;;  %v816_v39 = vadd.f32 %v807_v22, %v776_v23 }
 0x266   : > { %v809_v25 = vpop.permute.xlu1 %808 }
 0x267   : > { %820 = vst.msk [vmem:[#allocation2] sm:$0xff] %vm417_vm0, %v818_v37  ;;  %v817_v26 = vadd.f32 %v809_v25, %v777_v24 }
 0x269   : > { %v819_v27 = vpack.c.bf16 %v817_v26, %v816_v39 }
 0x26b   : > { %821 = vst.msk [vmem:[#allocation2 + $0x8] sm:$0xff] %vm417_vm0, %v819_v27 }
 0x26c PF: > { %v2066_v36 = vld [vmem:[%s2898_s2] sm:$0xff]   ;;  %v2207_v38 = vmov 0.0   ;;  %v2067_v28 = vld [vmem:[%s2898_s2 + $0x8] sm:$0xff]   ;;  %vm2208_vm5 = vmmov 0   ;;  %s2608_s14 = sshll.u32 %s2181_s12, 4  ;;  %vm850_vm6 = vcmask 261120  }
 0x26d   : > { %1887 = vmatprep.subr.bf16.mxu0 %v2207_v38  ;;  %1895 = vmatprep.subr.bf16.mxu1 %v2207_v38  ;;  %s927_s27 = scalar_lea.vmem %s2902_s6, %s2608_s14  ;;  %v2068_v29 = vld [vmem:[%s2359_s23] sm:$0xff]   ;;  %s2209_s28 = smov 8   ;;  %vm918_vm7 = vcmask 64512   ;;  %vm921_vm8 = vcmask 130048   ;;  %vm924_vm9 = vcmask 195584   ;;  %vm987_vm10 = vcmask 1047808  }
 0x26e   : > { %1888 = vmatpush3.bf16.msra.mxu0 %v2066_v36  ;;  %1891 = vmatprep.mubr.msk.bf16.mxu0 %vm2208_vm5, %v2207_v38  ;;  %v928_v30 = vld [vmem:[%s927_s27] sm:$0xff]  ;;  %s2210_s17 = smov 16   ;;  %v929_v31 = vld [vmem:[%s927_s27 + $0x8] sm:$0xff]  ;;  %s956_s24 = scalar_lea.vmem %s2903_s7, %s2608_s14  ;;  %vm1319_vm13 = vcmask 130112   ;;  %vm1463_vm14 = vcmask 195712   ;;  %vm1607_vm15 = vcmask 261312  }
 0x26f   : > { %1889 = vmatprep.subr.bf16.mxu0 %v2207_v38  ;;  %1899 = vmatprep.mubr.msk.bf16.mxu1 %vm2208_vm5, %v2207_v38  ;;  %s2211_s26 = smov 24   ;;  %v957_v32 = vld [vmem:[%s956_s24] sm:$0xff]  ;;  %v958_v33 = vld [vmem:[%s956_s24 + $0x8] sm:$0xff]  ;;  %s2212_s16 = smov 32  }
 0x270   : > { %932 = vrot.lane.b32.xlu0 %v928_v30, %s2209_s28  ;;  %938 = vrot.lane.b32.xlu1 %v928_v30, %s2210_s17  ;;  %s2213_s15 = smov 1   ;;  %s895_s21 = scalar_lea.vmem %s2904_s8, %s2608_s14  ;;  %v2667_v7 = vld [vmem:[#allocation2] sm:$0xff] }
 0x271   : > { %s2214_s11 = smov 31   ;;  %v896_v6 = vld [vmem:[%s895_s21] sm:$0xff]  ;;  %v1061_v8 = vsel %vm918_vm7, %v2667_v7, 0  ;;  %v897_v9 = vld [vmem:[%s895_s21 + $0x8] sm:$0xff]  ;;  %s2215_s19 = smov 127  }
 0x272   : > { %1890 = vmatpush3.bf16.msra.mxu0 %v2067_v28  ;;  %1896 = vmatpush3.bf16.xpose.msra.mxu1 %v1061_v8  ;;  %v2678_v10 = vld [vmem:[#allocation2 + $0x8] sm:$0xff]  ;;  %s2216_s20 = smov 97   ;;  %s2218_s27 = smov 112  }
 0x273   : > { %1903 = vmatprep.subr.bf16.mxu0 %v2207_v38  ;;  %1897 = vmatprep.subr.bf16.mxu1 %v2207_v38  ;;  %v1064_v11 = vsel %vm918_vm7, %v2678_v10, 0  ;;  %s2219_s12 = smov 104   ;;  %s1688_s21 = sshll.u32 %s2361_s30, 4  ;;  %s2837_s21 = int_to_ptr.vmem [resolvable:$true] %s1688_s21 }
 0x274   : > { %934 = vrot.lane.b32.xlu0 %v929_v31, %s2209_s28  ;;  %940 = vrot.lane.b32.xlu1 %v929_v31, %s2210_s17 }
 0x275   : > { %1892 = vmatmul.mubr.msk.bf16.vlgmr.msra.gmra.mrb[0].mxu0 %vm850_vm6, %v2068_v29 }
 0x276   : > { %1907 = vmatprep.mubr.msk.bf16.mxu0 %vm2208_vm5, %v2207_v38 }
 0x278   : > { %944 = vrot.lane.b32.xlu0 %v928_v30, %s2211_s26  ;;  %946 = vrot.lane.b32.xlu1 %v929_v31, %s2211_s26 }
 0x27a   : > { %1898 = vmatpush3.bf16.xpose.msra.mxu1 %v1064_v11 }
 0x27b   : > { %1919 = vmatprep.subr.bf16.mxu1 %v2207_v38 }
 0x27c   : > { %961 = vrot.lane.b32.xlu0 %v957_v32, %s2209_s28  ;;  %963 = vrot.lane.b32.xlu1 %v958_v33, %s2209_s28 }
 0x280   : > { %967 = vrot.lane.b32.xlu0 %v957_v32, %s2210_s17  ;;  %969 = vrot.lane.b32.xlu1 %v958_v33, %s2210_s17 }
 0x2e2   : > { %v933_v34 = vpop.permute.xlu0 %932  ;;  %v939_v35 = vpop.permute.xlu1 %938 }
 0x2e3   : > { %v950_v43 = vsel %vm918_vm7, %v928_v30, %v933_v34 }
 0x2e4   : > { %v952_v48 = vsel %vm921_vm8, %v950_v43, %v939_v35 }
 0x2e6   : > { %v935_v40 = vpop.permute.xlu0 %934  ;;  %v941_v41 = vpop.permute.xlu1 %940 }
 0x2e7   : > { %v951_v46 = vsel %vm918_vm7, %v929_v31, %v935_v40 }
 0x2e8   : > { %v953_v50 = vsel %vm921_vm8, %v951_v46, %v941_v41 }
 0x2ea   : > { %v945_v49 = vpop.permute.xlu0 %944  ;;  %v947_v51 = vpop.permute.xlu1 %946 }
 0x2eb   : > { %v954_v52 = vsel %vm924_vm9, %v952_v48, %v945_v49  ;;  %v955_v53 = vsel %vm924_vm9, %v953_v50, %v947_v51  ;;  %v1041_v50 = vlaneseq }
 0x2ed   : > { %v1042_v51 = vshrl.u32 %v1041_v50, 7 }
 0x2ee   : > { %v962_v54 = vpop.permute.xlu0 %961  ;;  %v964_v55 = vpop.permute.xlu1 %963 }
 0x2ef   : > { %v979_v59 = vsel %vm918_vm7, %v957_v32, %v962_v54  ;;  %v980_v62 = vsel %vm918_vm7, %v958_v33, %v964_v55 }
 0x2f2   : > { %v968_v56 = vpop.permute.xlu0 %967  ;;  %v970_v57 = vpop.permute.xlu1 %969 }
 0x2f3   : > { %v981_v0 = vsel %vm921_vm8, %v979_v59, %v968_v56  ;;  %v982_v3 = vsel %vm921_vm8, %v980_v62, %v970_v57 }
 0x348   : > { %v2635_v42 = vpop.f32.mrb[0].mxu0 }
 0x349   : > { %v1893_v44 = vpop.f32.mrb[1].mxu0  ;;  %988 = vrot.lane.b32.xlu0 %v2635_v42, %s2212_s16 }
 0x34a   : > { %v2640_v45 = vpop.f32.mrb[2].mxu0 }
 0x34b   : > { %v1894_v47 = vpop.f32.mrb[3].mxu0  ;;  %991 = vrot.lane.b32.xlu1 %v2640_v45, %s2212_s16 }
 0x34d   : > { %973 = vrot.lane.b32.xlu0 %v957_v32, %s2211_s26 }
 0x34f   : > { %975 = vrot.lane.b32.xlu1 %v958_v33, %s2211_s26 }
 0x351   : > { %1002 = vrot.lane.b32.xlu0 %v954_v52, %s2213_s15  ;;  %v1044_v52 = vstv %s2608_s14  ;;  %s2217_s14 = smov 120  }
 0x353   : > { %1004 = vrot.lane.b32.xlu1 %v955_v53, %s2213_s15  ;;  %v1045_v53 = vadd.s32 %v1044_v52, %v1042_v51  ;;  %s1828_s15 = sshll.u32 %s2185_s13, 2  ;;  %s2927_s13 = sand.u32 1, %s2173_s10  }
 0x354   : > { %s1685_s25 = sadd.s32 %s1828_s15, %s2345_s29  ;;  %s2843_s29 = scalar_lea.sflag [#allocation6], %s2927_s13 }
 0x355   : > { %s1829_s18 = sshll.u32 %s1685_s25, 7 }
 0x3bb   : > { %v989_v58 = vpop.permute.xlu0 %988 }
 0x3bc   : > { %v990_v60 = vsel %vm987_vm10, %v989_v58, %v2635_v42 }
 0x3bd   : > { %v992_v61 = vpop.permute.xlu1 %991  ;;  %994 = vrot.lane.b32.xlu0 %v990_v60, %s2212_s16 }
 0x3be   : > { %v993_v63 = vsel %vm987_vm10, %v992_v61, %v2640_v45 }
 0x3bf   : > { %996 = vrot.lane.b32.xlu1 %v993_v63, %s2212_s16  ;;  %v974_v1 = vpop.permute.xlu0 %973 }
 0x3c0   : > { %v983_v2 = vsel %vm924_vm9, %v981_v0, %v974_v1 }
 0x3c1   : > { %v976_v4 = vpop.permute.xlu1 %975  ;;  %1022 = vrot.lane.b32.xlu0 %v983_v2, %s2214_s11 }
 0x3c2   : > { %v984_v5 = vsel %vm924_vm9, %v982_v3, %v976_v4 }
 0x3c3   : > { %1024 = vrot.lane.b32.xlu1 %v984_v5, %s2214_s11  ;;  %v1003_v12 = vpop.permute.xlu0 %1002 }
 0x3c5   : > { %900 = vrot.lane.b32.xlu0 %v896_v6, %s2209_s28  ;;  %v1005_v14 = vpop.permute.xlu1 %1004 }
 0x3c7   : > { %902 = vrot.lane.b32.xlu1 %v897_v9, %s2209_s28 }
 0x3c9   : > { %906 = vrot.lane.b32.xlu0 %v896_v6, %s2210_s17 }
 0x3cb   : > { %908 = vrot.lane.b32.xlu1 %v897_v9, %s2210_s17 }
 0x3cd   : > { %912 = vrot.lane.b32.xlu0 %v896_v6, %s2211_s26 }
 0x3cf   : > { %914 = vrot.lane.b32.xlu1 %v897_v9, %s2211_s26 }
 0x42f   : > { %v995_v13 = vpop.permute.xlu0 %994 }
 0x430   : > { %v998_v15 = vsel %vm987_vm10, %v995_v13, %v2635_v42  ;;  %v2722_v13 = vld [vmem:[#allocation3 + $0x8] sm:$0xff] }
 0x431   : > { %v997_v16 = vpop.permute.xlu1 %996  ;;  %v1008_v17 = vmul.f32 %v1003_v12, %v998_v15 }
 0x432   : > { %v999_v18 = vsel %vm987_vm10, %v997_v16, %v2640_v45 }
 0x433   : > { %v1023_v19 = vpop.permute.xlu0 %1022  ;;  %1012 = vrot.lane.b32.xlu0 %v1008_v17, %s2215_s19  ;;  %v1009_v20 = vmul.f32 %v1005_v14, %v999_v18  ;;  %v2718_v14 = vld [vmem:[#allocation3] sm:$0xff] }
 0x434   : > { %v1028_v21 = vmul.f32 %v1023_v19, %v998_v15  ;;  %1904 = vmatpush3.bf16.msra.mxu0 %v2718_v14 }
 0x435   : > { %v1025_v22 = vpop.permute.xlu1 %1024  ;;  %1014 = vrot.lane.b32.xlu1 %v1009_v20, %s2215_s19  ;;  %1905 = vmatprep.subr.bf16.mxu0 %v2207_v38 }
 0x436   : > { %v1029_v23 = vmul.f32 %v1025_v22, %v999_v18 }
 0x437   : > { %1032 = vrot.lane.b32.xlu0 %v1028_v21, %s2216_s20  ;;  %v901_v24 = vpop.permute.xlu0 %900 }
 0x438   : > { %v919_v26 = vsel %vm918_vm7, %v896_v6, %v901_v24  ;;  %1906 = vmatpush3.bf16.msra.mxu0 %v2722_v13 }
 0x439   : > { %1034 = vrot.lane.b32.xlu1 %v1029_v23, %s2216_s20  ;;  %v903_v37 = vpop.permute.xlu1 %902  ;;  %1911 = vmatprep.subr.bf16.mxu0 %v2207_v38  ;;  %s2833_s20 = scalar_lea.hbm %s2905_s9, %s1829_s18 }
 0x43a   : > { %v920_v27 = vsel %vm918_vm7, %v897_v9, %v903_v37 }
 0x43b   : > { %v907_v25 = vpop.permute.xlu0 %906 }
 0x43c   : > { %v922_v28 = vsel %vm921_vm8, %v919_v26, %v907_v25 }
 0x43d   : > { %v909_v39 = vpop.permute.xlu1 %908 }
 0x43e   : > { %v923_v29 = vsel %vm921_vm8, %v920_v27, %v909_v39 }
 0x43f   : > { %v913_v36 = vpop.permute.xlu0 %912 }
 0x440   : > { %v925_v31 = vsel %vm924_vm9, %v922_v28, %v913_v36 }
 0x441   : > { %v915_v30 = vpop.permute.xlu1 %914  ;;  %v985_v35 = vmul.f32 %v925_v31, %v2635_v42  ;;  %v1043_v42 = vadd.s32 8, %v1042_v51 }
 0x442   : > { %v926_v32 = vsel %vm924_vm9, %v923_v29, %v915_v30 }
 0x443   : > { %v986_v40 = vmul.f32 %v926_v32, %v2640_v45  ;;  %v1048_v45 = vand.u32 127, %v1041_v50  ;;  %v1046_v54 = vadd.s32 %v1044_v52, %v1043_v42 }
 0x445   : > { %vm1049_vm11 = vcmp.gt.s32.totalorder %v1048_v45, %v1045_v53  ;;  %vm1050_vm12 = vcmp.gt.s32.totalorder %v1048_v45, %v1046_v54 }
 0x446   : > { %v2703_v55 = vsel %vm1049_vm11, -1e+30, %v2207_v38  ;;  %v2706_v57 = vsel %vm1050_vm12, -1e+30, %v2207_v38 }
 0x4a5   : > { %v1013_v33 = vpop.permute.xlu0 %1012 }
 0x4a6   : > { %v1018_v43 = vadd.f32 %v1013_v33, %v985_v35 }
 0x4a7   : > { %v1015_v34 = vpop.permute.xlu1 %1014 }
 0x4a8   : > { %v1019_v44 = vadd.f32 %v1015_v34, %v986_v40 }
 0x4a9   : > { %v1033_v41 = vpop.permute.xlu0 %1032 }
 0x4aa   : > { %v1038_v47 = vadd.f32 %v1033_v41, %v1018_v43 }
 0x4ab   : > { %v1035_v46 = vpop.permute.xlu1 %1034 }
 0x4ac   : > { %v1039_v48 = vadd.f32 %v1035_v46, %v1019_v44 }
 0x4ae   : > { %v2695_v49 = vpack.c.bf16 %v1039_v48, %v1038_v47 }
 0x4b0   : > { %1900 = vmatmul.mubr.msk.bf16.vlgmr.msra.gmra.mrb[0].mxu1 %vm918_vm7, %v2695_v49 }
 0x4b1   : > { %1923 = vmatprep.mubr.msk.bf16.mxu1 %vm2208_vm5, %v2207_v38 }
 0x583   : > { %v1100_v56 = vpop.f32.mrb[0].mxu1 }
 0x584   : > { %v1101_v58 = vadd.f32 %v1100_v56, %v2703_v55  ;;  %v1901_v59 = vpop.f32.mrb[1].mxu1 }
 0x585   : > { %v1103_v60 = vpop.f32.mrb[2].mxu1 }
 0x586   : > { %v1104_v61 = vadd.f32 %v1103_v60, %v2706_v57  ;;  %v1902_v62 = vpop.f32.mrb[3].mxu1  ;;  %v1107_v63 = vsel %vm850_vm6, %v1101_v58, -inf }
 0x587   : > { %1108 = vmax.xlane.f32.xlu0 %v1107_v63 }
 0x588   : > { %v1110_v0 = vsel %vm850_vm6, %v1104_v61, -inf }
 0x589   : > { %1111 = vmax.xlane.f32.xlu1 %v1110_v0 }
 0x59a   : > { %1185 = vrot.lane.b32.xlu1 %v2667_v7, %s2217_s14 }
 0x59e   : > { %1181 = vrot.lane.b32.xlu1 %v2695_v49, %s2217_s14 }
 0x614   : > { %v1109_v1 = vpop.xlane.xlu0 %1108 }
 0x615   : > { %v1113_v2 = vsub.f32 %v1101_v58, %v1109_v1 }
 0x616   : > { %v1112_v3 = vpop.xlane.xlu1 %1111 }
 0x617   : > { %v1115_v4 = vmul.f32 1.442695, %v1113_v2  ;;  %v1114_v5 = vsub.f32 %v1104_v61, %v1112_v3 }
 0x619   : > { %2071 = vpow2.f32 %v1115_v4  ;;  %v1117_v6 = vmul.f32 1.442695, %v1114_v5 }
 0x61a   : > { %v1186_v21 = vpop.permute.xlu1 %1185 }
 0x61b   : > { %2073 = vpow2.f32 %v1117_v6  ;;  %v1193_v22 = vsel %vm918_vm7, %v1186_v21, 0 }
 0x61e   : > { %v1182_v25 = vpop.permute.xlu1 %1181 }
 0x623   : > { %v2072_v8 = vpop.eup %2071 }
 0x624   : > { %v1119_v9 = vsel %vm850_vm6, %v2072_v8, 0.0 }
 0x625   : > { %v2074_v11 = vpop.eup %2073  ;;  %1120 = vadd.xlane.f32.xlu0 %v1119_v9 }
 0x626   : > { %v1122_v12 = vsel %vm850_vm6, %v2074_v11, 0.0 }
 0x629   : > { %1123 = vadd.xlane.f32.xlu0 %v1122_v12 }
 0x63f   : > { %1187 = vrot.lane.b32.xlu0 %v2678_v10, %s2217_s14 }
 0x6b2   : > { %v1121_v15 = vpop.xlane.xlu0 %1120 }
 0x6b3   : > { %2075 = vrcp.f32 %v1121_v15 }
 0x6b6   : > { %v1124_v16 = vpop.xlane.xlu0 %1123 }
 0x6b7   : > { %2077 = vrcp.f32 %v1124_v16 }
 0x6ba   : > { %v1188_v24 = vpop.permute.xlu0 %1187 }
 0x6bb   : > { %v1196_v37 = vsel %vm918_vm7, %v1188_v24, 0 }
 0x6bd   : > { %v2076_v17 = vpop.eup %2075 }
 0x6be   : > { %v1127_v19 = vmul.f32 %v2076_v17, %v2072_v8 }
 0x6c1   : > { %v2078_v18 = vpop.eup %2077 }
 0x6c2   : > { %v1128_v20 = vmul.f32 %v2078_v18, %v2074_v11 }
 0x6c4   : > { %v1129_v23 = vpack.c.bf16 %v1128_v20, %v1127_v19 }
 0x6c6   : > { %1908 = vmatmul.mubr.msk.bf16.vlgmr.msra.gmra.mrb[4].mxu0 %vm850_vm6, %v1129_v23 }
 0x6c7   : > { %1912 = vmatpush3.bf16.xpose.msra.mxu0 %v1193_v22  ;;  %1915 = vmatprep.mubr.msk.bf16.mxu0 %vm2208_vm5, %v2207_v38 }
 0x6c8   : > { %1913 = vmatprep.subr.bf16.mxu0 %v2207_v38 }
 0x6cf   : > { %1914 = vmatpush3.bf16.xpose.msra.mxu0 %v1196_v37 }
 0x6d0   : > { %1935 = vmatprep.subr.bf16.mxu0 %v2207_v38 }
 0x6d6   : > { %1916 = vmatmul.mubr.msk.bf16.vlgmr.msra.gmra.mrb[8].mxu0 %vm918_vm7, %v1182_v25 }
 0x6d7   : > { %1939 = vmatprep.mubr.msk.bf16.mxu0 %vm2208_vm5, %v2207_v38 }
 0x799   : > { %v1167_v39 = vpop.f32.mrb[4].mxu0 }
 0x79a   : > { %v1909_v26 = vpop.f32.mrb[5].mxu0 }
 0x79b   : > { %v1170_v27 = vpop.f32.mrb[6].mxu0 }
 0x79c   : > { %v1174_v36 = vpack.c.bf16 %v1170_v27, %v1167_v39  ;;  %v1910_v28 = vpop.f32.mrb[7].mxu0 }
 0x79e   : > { %1175 = vst.msk [vmem:[#allocation4] sm:$0xff] %vm918_vm7, %v1174_v36 }
 0x7a9   : > { %v1232_v29 = vpop.f32.mrb[8].mxu0 }
 0x7aa   : > { %v1233_v30 = vadd.f32 %v1232_v29, %v2703_v55  ;;  %v1917_v31 = vpop.f32.mrb[9].mxu0 }
 0x7ab   : > { %v1235_v32 = vpop.f32.mrb[10].mxu0 }
 0x7ac   : > { %v1236_v33 = vadd.f32 %v1235_v32, %v2706_v57  ;;  %v1918_v34 = vpop.f32.mrb[11].mxu0  ;;  %v1239_v35 = vsel %vm850_vm6, %v1233_v30, -inf }
 0x7ad   : > { %1240 = vmax.xlane.f32.xlu1 %v1239_v35 }
 0x7ae   : > { %v1242_v40 = vsel %vm850_vm6, %v1236_v33, -inf }
 0x7af   : > { %1243 = vmax.xlane.f32.xlu0 %v1242_v40 }
 0x7be   : > { %1266 = vrot.lane.b32.xlu1 %v2722_v13, %s2217_s14 }
 0x83a   : > { %v1241_v41 = vpop.xlane.xlu1 %1240 }
 0x83b   : > { %v1245_v43 = vsub.f32 %v1233_v30, %v1241_v41 }
 0x83c   : > { %v1244_v44 = vpop.xlane.xlu0 %1243 }
 0x83d   : > { %v1247_v46 = vmul.f32 1.442695, %v1245_v43  ;;  %v1246_v47 = vsub.f32 %v1236_v33, %v1244_v44 }
 0x83e   : > { %v1267_v53 = vpop.permute.xlu1 %1266 }
 0x83f   : > { %2079 = vpow2.f32 %v1247_v46  ;;  %v1249_v48 = vmul.f32 1.442695, %v1246_v47 }
 0x841   : > { %2081 = vpow2.f32 %v1249_v48 }
 0x849   : > { %v2080_v50 = vpop.eup %2079 }
 0x84a   : > { %v1251_v51 = vsel %vm850_vm6, %v2080_v50, 0.0 }
 0x84b   : > { %v2082_v52 = vpop.eup %2081  ;;  %1252 = vadd.xlane.f32.xlu0 %v1251_v51 }
 0x84c   : > { %v1254_v42 = vsel %vm850_vm6, %v2082_v52, 0.0 }
 0x84d   : > { %1255 = vadd.xlane.f32.xlu1 %v1254_v42 }
 0x85e   : > { %1329 = vrot.lane.b32.xlu1 %v2667_v7, %s2218_s27 }
 0x861   : > { %1264 = vrot.lane.b32.xlu0 %v2718_v14, %s2217_s14  ;;  %s2220_s14 = smov [#allocation5]  }
 0x862   : > { %1325 = vrot.lane.b32.xlu1 %v2695_v49, %s2218_s27 }
 0x865   : > { %1331 = vrot.lane.b32.xlu0 %v2678_v10, %s2218_s27 }
 0x8d8   : > { %v1253_v45 = vpop.xlane.xlu0 %1252 }
 0x8d9   : > { %2083 = vrcp.f32 %v1253_v45 }
 0x8da   : > { %v1256_v54 = vpop.xlane.xlu1 %1255 }
 0x8db   : > { %2085 = vrcp.f32 %v1256_v54 }
 0x8dc   : > { %v1265_v56 = vpop.permute.xlu0 %1264 }
 0x8dd   : > { %1920 = vmatpush3.bf16.msra.mxu1 %v1265_v56 }
 0x8de   : > { %1921 = vmatprep.subr.bf16.mxu1 %v2207_v38  ;;  %v1330_v62 = vpop.permute.xlu1 %1329 }
 0x8df   : > { %v1337_v63 = vsel %vm918_vm7, %v1330_v62, 0 }
 0x8e0   : > { %v1332_v1 = vpop.permute.xlu0 %1331 }
 0x8e1   : > { %1922 = vmatpush3.bf16.msra.mxu1 %v1267_v53  ;;  %v1340_v2 = vsel %vm918_vm7, %v1332_v1, 0 }
 0x8e2   : > { %1927 = vmatprep.subr.bf16.mxu1 %v2207_v38  ;;  %v1326_v3 = vpop.permute.xlu1 %1325 }
 0x8e3   : > { %v2084_v58 = vpop.eup %2083 }
 0x8e4   : > { %v1259_v60 = vmul.f32 %v2084_v58, %v2080_v50 }
 0x8e5   : > { %v2086_v59 = vpop.eup %2085 }
 0x8e6   : > { %v1260_v61 = vmul.f32 %v2086_v59, %v2082_v52 }
 0x8e8   : > { %v1261_v0 = vpack.c.bf16 %v1260_v61, %v1259_v60 }
 0x8ea   : > { %1924 = vmatmul.mubr.msk.bf16.vlgmr.msra.gmra.mrb[4].mxu1 %vm850_vm6, %v1261_v0 }
 0x8eb   : > { %1928 = vmatpush3.bf16.xpose.msra.mxu1 %v1337_v63  ;;  %1931 = vmatprep.mubr.msk.bf16.mxu1 %vm2208_vm5, %v2207_v38 }
 0x8ec   : > { %1929 = vmatprep.subr.bf16.mxu1 %v2207_v38 }
 0x8f3   : > { %1930 = vmatpush3.bf16.xpose.msra.mxu1 %v1340_v2 }
 0x8f4   : > { %1951 = vmatprep.subr.bf16.mxu1 %v2207_v38 }
 0x8fa   : > { %1932 = vmatmul.mubr.msk.bf16.vlgmr.msra.gmra.mrb[8].mxu1 %vm918_vm7, %v1326_v3 }
 0x8fb   : > { %1955 = vmatprep.mubr.msk.bf16.mxu1 %vm2208_vm5, %v2207_v38 }
 0x9bd   : > { %v2767_v4 = vpop.f32.mrb[4].mxu1 }
 0x9be   : > { %v1925_v5 = vpop.f32.mrb[5].mxu1 }
 0x9bf   : > { %v2769_v6 = vpop.f32.mrb[6].mxu1 }
 0x9c0   : > { %v1314_v8 = vpack.c.bf16 %v2769_v6, %v2767_v4  ;;  %v1926_v9 = vpop.f32.mrb[7].mxu1 }
 0x9cd   : > { %v1376_v11 = vpop.f32.mrb[8].mxu1 }
 0x9ce   : > { %v1377_v12 = vadd.f32 %v1376_v11, %v2703_v55  ;;  %v1933_v15 = vpop.f32.mrb[9].mxu1 }
 0x9cf   : > { %v1379_v16 = vpop.f32.mrb[10].mxu1 }
 0x9d0   : > { %v1380_v17 = vadd.f32 %v1379_v16, %v2706_v57  ;;  %v1934_v18 = vpop.f32.mrb[11].mxu1  ;;  %v1383_v19 = vsel %vm850_vm6, %v1377_v12, -inf  ;;  %v2069_v16 = vld [vmem:[%s2901_s5] sm:$0xff]  }
 0x9d1   : > { %1384 = vmax.xlane.f32.xlu0 %v1383_v19 }
 0x9d2   : > { %v1386_v20 = vsel %vm850_vm6, %v1380_v17, -inf }
 0x9d3   : > { %1387 = vmax.xlane.f32.xlu1 %v1386_v20 }
 0x9e4   : > { %1408 = vrot.lane.b32.xlu1 %v2718_v14, %s2218_s27 }
 0x9e8   : > { %1473 = vrot.lane.b32.xlu1 %v2667_v7, %s2219_s12 }
 0x9ec   : > { %1475 = vrot.lane.b32.xlu1 %v2678_v10, %s2219_s12 }
 0xa5e   : > { %v1385_v21 = vpop.xlane.xlu0 %1384 }
 0xa5f   : > { %v1389_v22 = vsub.f32 %v1377_v12, %v1385_v21 }
 0xa60   : > { %v1388_v23 = vpop.xlane.xlu1 %1387 }
 0xa61   : > { %v1391_v24 = vmul.f32 1.442695, %v1389_v22  ;;  %v1390_v37 = vsub.f32 %v1380_v17, %v1388_v23  ;;  %v2070_v17 = vld [vmem:[%s2901_s5 + $0x8] sm:$0xff]  }
 0xa63   : > { %2087 = vpow2.f32 %v1391_v24  ;;  %v1393_v25 = vmul.f32 1.442695, %v1390_v37 }
 0xa64   : > { %v1409_v7 = vpop.permute.xlu1 %1408 }
 0xa65   : > { %2089 = vpow2.f32 %v1393_v25  ;;  %1936 = vmatpush3.bf16.msra.mxu0 %v1409_v7 }
 0xa66   : > { %1937 = vmatprep.subr.bf16.mxu0 %v2207_v38 }
 0xa68   : > { %v1474_v32 = vpop.permute.xlu1 %1473 }
 0xa69   : > { %v1481_v35 = vsel %vm918_vm7, %v1474_v32, 0 }
 0xa6d   : > { %v2088_v39 = vpop.eup %2087 }
 0xa6e   : > { %v1395_v26 = vsel %vm850_vm6, %v2088_v39, 0.0 }
 0xa6f   : > { %v2090_v27 = vpop.eup %2089  ;;  %1396 = vadd.xlane.f32.xlu0 %v1395_v26 }
 0xa70   : > { %v1398_v36 = vsel %vm850_vm6, %v2090_v27, 0.0 }
 0xa73   : > { %1399 = vadd.xlane.f32.xlu0 %v1398_v36 }
 0xa89   : > { %1410 = vrot.lane.b32.xlu0 %v2722_v13, %s2218_s27  ;;  %s2107_s27 = sshll.u32 %s2220_s14, 4  ;;  %s2108_s27 = int_to_ptr.vmem [resolvable:$false] %s2107_s27 }
 0xa8a   : > { %p2110_p5 = scmp.lt.s32.totalorder %s2837_s21, %s2108_s27 }
 0xa8d   : > { %1469 = vrot.lane.b32.xlu0 %v2695_v49, %s2219_s12  ;;  %v1476_v49 = vpop.permute.xlu1 %1475 }
 0xa8e   : > { %v1484_v41 = vsel %vm918_vm7, %v1476_v49, 0 }
 0xafc   : > { %v1397_v10 = vpop.xlane.xlu0 %1396 }
 0xafd   : > { %2091 = vrcp.f32 %v1397_v10 }
 0xb00   : > { %v1400_v28 = vpop.xlane.xlu0 %1399 }
 0xb01   : > { %2093 = vrcp.f32 %v1400_v28 }
 0xb04   : > { %v1411_v29 = vpop.permute.xlu0 %1410 }
 0xb05   : > { %1938 = vmatpush3.bf16.msra.mxu0 %v1411_v29 }
 0xb06   : > { %1943 = vmatprep.subr.bf16.mxu0 %v2207_v38 }
 0xb07   : > { %v2092_v30 = vpop.eup %2091 }
 0xb08   : > { %v1403_v33 = vmul.f32 %v2092_v30, %v2088_v39  ;;  %v1470_v43 = vpop.permute.xlu0 %1469 }
 0xb0b   : > { %v2094_v31 = vpop.eup %2093 }
 0xb0c   : > { %v1404_v34 = vmul.f32 %v2094_v31, %v2090_v27 }
 0xb0e   : > { %v1405_v40 = vpack.c.bf16 %v1404_v34, %v1403_v33 }
 0xb10   : > { %1940 = vmatmul.mubr.msk.bf16.vlgmr.msra.gmra.mrb[12].mxu0 %vm850_vm6, %v1405_v40 }
 0xb11   : > { %1944 = vmatpush3.bf16.xpose.msra.mxu0 %v1481_v35  ;;  %1947 = vmatprep.mubr.msk.bf16.mxu0 %vm2208_vm5, %v2207_v38 }
 0xb12   : > { %1945 = vmatprep.subr.bf16.mxu0 %v2207_v38 }
 0xb19   : > { %1946 = vmatpush3.bf16.xpose.msra.mxu0 %v1484_v41 }
 0xb20   : > { %1948 = vmatmul.mubr.msk.bf16.vlgmr.msra.gmra.mrb[16].mxu0 %vm918_vm7, %v1470_v43 }
 0xbe3   : > { %v1451_v44 = vpop.f32.mrb[12].mxu0 }
 0xbe4   : > { %v1941_v46 = vpop.f32.mrb[13].mxu0 }
 0xbe5   : > { %v1454_v47 = vpop.f32.mrb[14].mxu0 }
 0xbe6   : > { %v1458_v48 = vpack.c.bf16 %v1454_v47, %v1451_v44  ;;  %v1942_v50 = vpop.f32.mrb[15].mxu0 }
 0xbf3   : > { %v1520_v51 = vpop.f32.mrb[16].mxu0 }
 0xbf4   : > { %v1521_v52 = vadd.f32 %v1520_v51, %v2703_v55  ;;  %v1949_v42 = vpop.f32.mrb[17].mxu0 }
 0xbf5   : > { %v1523_v53 = vpop.f32.mrb[18].mxu0 }
 0xbf6   : > { %v1524_v45 = vadd.f32 %v1523_v53, %v2706_v57  ;;  %v1950_v54 = vpop.f32.mrb[19].mxu0  ;;  %v1527_v56 = vsel %vm850_vm6, %v1521_v52, -inf }
 0xbf7   : > { %1528 = vmax.xlane.f32.xlu1 %v1527_v56 }
 0xbf8   : > { %v1530_v58 = vsel %vm850_vm6, %v1524_v45, -inf }
 0xbf9   : > { %1531 = vmax.xlane.f32.xlu0 %v1530_v58 }
 0xc84   : > { %v1529_v59 = vpop.xlane.xlu1 %1528 }
 0xc85   : > { %v1533_v60 = vsub.f32 %v1521_v52, %v1529_v59 }
 0xc86   : > { %v1532_v61 = vpop.xlane.xlu0 %1531 }
 0xc87   : > { %v1535_v62 = vmul.f32 1.442695, %v1533_v60  ;;  %v1534_v63 = vsub.f32 %v1524_v45, %v1532_v61 }
 0xc89   : > { %2095 = vpow2.f32 %v1535_v62  ;;  %v1537_v0 = vmul.f32 1.442695, %v1534_v63 }
 0xc8b   : > { %2097 = vpow2.f32 %v1537_v0 }
 0xc93   : > { %v2096_v55 = vpop.eup %2095 }
 0xc94   : > { %v1539_v1 = vsel %vm850_vm6, %v2096_v55, 0.0 }
 0xc95   : > { %v2098_v2 = vpop.eup %2097  ;;  %1540 = vadd.xlane.f32.xlu0 %v1539_v1 }
 0xc96   : > { %v1542_v57 = vsel %vm850_vm6, %v2098_v2, 0.0 }
 0xc97   : > { %1543 = vadd.xlane.f32.xlu1 %v1542_v57 }
 0xca8   : > { %1554 = vrot.lane.b32.xlu1 %v2722_v13, %s2219_s12 }
 0xcab   : > { %1552 = vrot.lane.b32.xlu0 %v2718_v14, %s2219_s12  ;;  %s2109_s12 = scalar_lea.vmem %s2108_s27, 512 }
 0xcac   : > { %1316 = vrot.lane.b32.xlu1 %v1314_v8, %s2209_s28 }
 0xcaf   : > { %1460 = vrot.lane.b32.xlu0 %v1458_v48, %s2210_s17 }
 0xd22   : > { %v1541_v3 = vpop.xlane.xlu0 %1540 }
 0xd23   : > { %2099 = vrcp.f32 %v1541_v3 }
 0xd24   : > { %v1544_v5 = vpop.xlane.xlu1 %1543 }
 0xd25   : > { %2101 = vrcp.f32 %v1544_v5 }
 0xd26   : > { %v1553_v9 = vpop.permute.xlu0 %1552 }
 0xd27   : > { %1952 = vmatpush3.bf16.msra.mxu1 %v1553_v9 }
 0xd28   : > { %v1555_v11 = vpop.permute.xlu1 %1554  ;;  %1953 = vmatprep.subr.bf16.mxu1 %v2207_v38 }
 0xd2a   : > { %v1461_v4 = vpop.permute.xlu0 %1460 }
 0xd2b   : > { %1954 = vmatpush3.bf16.msra.mxu1 %v1555_v11 }
 0xd2c   : > { %v1317_v14 = vpop.permute.xlu1 %1316  ;;  %1959 = vmatprep.subr.bf16.mxu1 %v2207_v38 }
 0xd2d   : > { %v2100_v13 = vpop.eup %2099  ;;  %1320 = vst.msk [vmem:[#allocation4] sm:$0xff] %vm1319_vm13, %v1317_v14 }
 0xd2e   : > { %1464 = vst.msk [vmem:[#allocation4] sm:$0xff] %vm1463_vm14, %v1461_v4  ;;  %v1547_v8 = vmul.f32 %v2100_v13, %v2096_v55 }
 0xd2f   : > { %v2102_v6 = vpop.eup %2101 }
 0xd30   : > { %v1548_v12 = vmul.f32 %v2102_v6, %v2098_v2 }
 0xd32   : > { %v1549_v15 = vpack.c.bf16 %v1548_v12, %v1547_v8 }
 0xd34   : > { %1956 = vmatmul.mubr.msk.bf16.vlgmr.msra.gmra.mrb[12].mxu1 %vm850_vm6, %v1549_v15 }
 0xd35   : > { %1963 = vmatprep.mubr.msk.bf16.mxu1 %vm2208_vm5, %v2207_v38  ;;  %1960 = vmatpush3.bf16.msra.mxu1 %v2069_v16 }
 0xd36   : > { %1961 = vmatprep.subr.bf16.mxu1 %v2207_v38 }
 0xd39   : > { %1962 = vmatpush3.bf16.msra.mxu1 %v2070_v17 }
 0xe07   : > { %v1595_v18 = vpop.f32.mrb[12].mxu1 }
 0xe08   : > { %v1957_v19 = vpop.f32.mrb[13].mxu1 }
 0xe09   : > { %v1598_v20 = vpop.f32.mrb[14].mxu1 }
 0xe0a   : > { %v1602_v21 = vpack.c.bf16 %v1598_v20, %v1595_v18  ;;  %v1958_v22 = vpop.f32.mrb[15].mxu1 }
 0xe0c   : > { %1604 = vrot.lane.b32.xlu1 %v1602_v21, %s2211_s26  ;;  %s2103_s26 = scalar_lea.vmem %s2837_s21, 256 }
 0xe0d   : > { %p2104_p1 = scmp.ne.s32.totalorder %s2837_s21, %s2103_s26  ;;  %p2111_p6 = scmp.lt.s32.totalorder %s2109_s12, %s2103_s26 }
 0xe0f   : > { %p2105_p2 = pnand %p2104_p1, %p2323_p3  ;;  %p2112_p7 = por %p2111_p6, %p2110_p5 }
 0xe11   : > { %p2106_p4 = pneg %p2105_p2 }
 0xe13   : > { %p2113_p9 = pnand %p2112_p7, %p2106_p4 }
 0xe7e   : > { %v1605_v23 = vpop.permute.xlu1 %1604 }
 0xe7f   : > { %1608 = vst.msk [vmem:[#allocation4] sm:$0xff] %vm1607_vm15, %v1605_v23 }
 0xe86   : > { %v1609_v24 = vld [vmem:[#allocation4] sm:$0xff] }
 0xe87   : > { %1964 = vmatmul.mubr.msk.bf16.vlgmr.msra.gmra.mrb[16].mxu1 %vm850_vm6, %v1609_v24 }
 0xf5a   : > { %v1663_v38 = vpop.f32.mrb[16].mxu1 }
 0xf5b   : > { %1670 = vst.msk [vmem:[%s2361_s30] sm:$0xff] %vm850_vm6, %v1663_v38  ;;  %v1965_v37 = vpop.f32.mrb[17].mxu1 }
 0xf5c   : > { %v1666_v25 = vpop.f32.mrb[18].mxu1 }
 0xf5d   : > { %1671 = vst.msk [vmem:[%s2361_s30 + $0x8] sm:$0xff] %vm850_vm6, %v1666_v25  ;;  %v1966_v39 = vpop.f32.mrb[19].mxu1 }
 0xf5e   : > { %2116 = shalt.err (!%p2113_p9)
}
 0xf5f   : > { %s2117_s30 = scalar_lea.hbm %s2833_s20, 256  ;;  %s2121_s24 = scalar_lea.hbm %s2905_s9, 1024 }
 0xf60   : > { %p2118_p10 = scmp.ne.s32.totalorder %s2833_s20, %s2117_s30  ;;  %p2122_p13 = scmp.lt.u32.totalorder %s2833_s20, %s2905_s9 }
 0xf61   : > { %p2123_p0 = scmp.lt.u32.totalorder %s2121_s24, %s2117_s30  ;;  %p2125_p2 = scmp.lt.u32.totalorder %s2117_s30, %s2833_s20 }
 0xf62   : > { %p2119_p11 = pnand %p2118_p10, %p2323_p3 }
 0xf63   : > { %p2124_p1 = por %p2123_p0, %p2122_p13 }
 0xf64   : > { %p2120_p12 = pneg %p2119_p11 }
 0xf65   : > { %p2126_p4 = por %p2125_p2, %p2124_p1 }
 0xf67   : > { %p2127_p5 = pnand %p2126_p4, %p2120_p12 }
 0xf69   : > { %2130 = shalt.err (!%p2127_p5)
}
 0xf6a   : > { %s2221_s25 = smov 128  }
 0xf6b   : > { %1967 = dma.vmem_to_hbm [thread:$0]  (%p2323_p3), %s2837_s21, 256, %s2833_s20, %s2843_s29, %s2221_s25, %s2221_s25, %s2209_s28  }
 0xf6c PF: > { %s2928_s18 = sld [smem:[#allocation12_spill]]  ;;  %s2929_s11 = sld [smem:[#allocation8_spill]] }
 0xf72   : > { %p1973_p6 = scmp.ge.s32.totalorder %s2928_s18, 2  ;;  %s1703_s13 = sand.u32 1, %s2929_s11  }
 0xf73   : > { %s1704_s26 = scalar_lea.sflag [#allocation6], %s1703_s13 }
 0xf74   : > { %p1970_p7 = pnand %p1973_p6, %p2332_p8 }
 0xf76   : > { %2164 = dma.done.wait (!%p1970_p7), %s1704_s26, 256  }
 0xf77   : > { %2166 = vsyncadd (!%p1970_p7), %s1704_s26, 4294967040  ;;  %s22_s16 = sadd.s32 1, %s2928_s18   ;;  %s2931_s22 = sld [smem:[#allocation9_spill]] }
 0xf78   : > { %p19_p9 = scmp.ge.s32.totalorder %s22_s16, 6   ;;  %s2932_s11 = sld [smem:[#allocation16_spill]] }
 0xf79   : > { %s2933_s12 = sld [smem:[#allocation10_spill]]  ;;  %s2934_s13 = sld [smem:[#allocation11_spill]] }
 0xf7a   : > { %s2935_s14 = sld [smem:[#allocation13_spill]]  ;;  %s2936_s15 = sld [smem:[#allocation14_spill]] }
 0xf7b   : > { %s2937_s30 = smov %s2173_s10  ;;  %21 = sbr.rel (!%p19_p9) target bundleno = 5 (0x5), region = 101 }
 0xf7d   : > { %s2938_s10 = smov %s2931_s22 }
 0xf82   :  { %1709 = vsyncpa [#allocation6], 1 }
 0xf83   :  { %1711 = vsyncpa [#allocation6 + $0x1], 1 }

</bundles_post_ra>
